<compile_context>
chip_gen: v5e
topology: v5e:2x2
jax: 0.10.0
libtpu: 0.0.40
codegen_flags: <defaults>
</compile_context>

<pallas_src>
import functools

import jax
import jax.numpy as jnp
from jax.experimental import pallas as pl
from jax.experimental.pallas import tpu as pltpu

_VMEM_LIMIT_BYTES = 32 * 1024 * 1024  # explicit scoped-VMEM budget, safe on v5e/v6e/v7x
_BN_EPS = 1e-5


def _round_up(x, m):
    return (x + m - 1) // m * m


# ---------------------------------------------------------------------------
# Kernel 1: pointwise (1x1) conv + folded BN (+ optional ReLU6 / fused residual)
# ---------------------------------------------------------------------------
def _pointwise_kernel(x_ref, w_ref, s_ref, b_ref, *rest, use_relu6):
    o_ref = rest[-1]
    y = jnp.dot(x_ref[...], w_ref[...],
                preferred_element_type=jnp.float32,
                precision=jax.lax.Precision.HIGHEST)
    y = y * s_ref[...] + b_ref[...]
    if use_relu6:
        y = jnp.clip(y, 0.0, 6.0)
    if len(rest) == 2:                       # fused residual input present
        y = y + rest[0][...]
    o_ref[...] = y.astype(o_ref.dtype)


def pointwise_conv_bn(x_nhwc, w_mat, scale, shift, *, use_relu6, residual=None):
    """x_nhwc: (N,H,W,Cin), w_mat: (Cin,Cout), scale/shift: (Cout,)."""
    n, h, w, cin = x_nhwc.shape
    cout = w_mat.shape[1]
    p = n * h * w
    # Tile the big (batch*spatial) axis: keeps blocks small / double-buffered and
    # makes the single grid axis large enough to shard across TensorCores.
    row_tile = 512 if p >= 512 else _round_up(p, 8)
    p_pad = _round_up(p, row_tile)

    x2d = x_nhwc.reshape(p, cin)
    if p_pad != p:
        x2d = jnp.pad(x2d, ((0, p_pad - p), (0, 0)))
    s_row = scale.reshape(1, cout)
    b_row = shift.reshape(1, cout)

    in_specs = [
        pl.BlockSpec((row_tile, cin), lambda i: (i, 0)),
        # Constant block index => fetched once, stays resident in VMEM (no per-step DMA).
        pl.BlockSpec((cin, cout), lambda i: (0, 0)),
        pl.BlockSpec((1, cout), lambda i: (0, 0)),
        pl.BlockSpec((1, cout), lambda i: (0, 0)),
    ]
    args = [x2d, w_mat, s_row, b_row]
    if residual is not None:
        r2d = residual.reshape(p, cout)
        if p_pad != p:
            r2d = jnp.pad(r2d, ((0, p_pad - p), (0, 0)))
        in_specs.append(pl.BlockSpec((row_tile, cout), lambda i: (i, 0)))
        args.append(r2d)

    out2d = pl.pallas_call(
        functools.partial(_pointwise_kernel, use_relu6=use_relu6),
        out_shape=jax.ShapeDtypeStruct((p_pad, cout), x_nhwc.dtype),
        grid_spec=pltpu.PrefetchScalarGridSpec(
            num_scalar_prefetch=0,
            grid=(p_pad // row_tile,),
            in_specs=in_specs,
            out_specs=pl.BlockSpec((row_tile, cout), lambda i: (i, 0)),
        ),
        compiler_params=pltpu.CompilerParams(
            dimension_semantics=("parallel",),
            vmem_limit_bytes=_VMEM_LIMIT_BYTES),
    )(*args)
    return out2d[:p].reshape(n, h, w, cout)


# ---------------------------------------------------------------------------
# Kernel 2: 3x3 depthwise conv + folded BN + ReLU6 (stride-1; wrapper subsamples)
# ---------------------------------------------------------------------------
def _depthwise_kernel(x_ref, k_ref, s_ref, b_ref, o_ref):
    _, hout, wout, c = o_ref.shape
    xp = x_ref[0]                       # (H+2, W+2, C), channels-last (lane = C)
    k = k_ref[...]                      # (9, C)
    acc = jnp.zeros((hout, wout, c), jnp.float32)
    for dy in range(3):                 # fully unrolled 3x3 taps -> VPU MACs
        for dx in range(3):
            acc = acc + xp[dy:dy + hout, dx:dx + wout, :] * k[dy * 3 + dx]
    y = acc * s_ref[...] + b_ref[...]
    y = jnp.clip(y, 0.0, 6.0)
    o_ref[0] = y.astype(o_ref.dtype)


def depthwise_conv_bn_relu6(x_nhwc, w_dw, scale, shift, stride):
    """x_nhwc: (N,H,W,C), w_dw: (C,1,3,3) PyTorch depthwise weight."""
    n, h, w, c = x_nhwc.shape
    xp = jnp.pad(x_nhwc, ((0, 0), (1, 1), (1, 1), (0, 0)))
    k9 = jnp.transpose(w_dw.reshape(c, 3, 3), (1, 2, 0)).reshape(9, c)
    s_row = scale.reshape(1, c)
    b_row = shift.reshape(1, c)

    out = pl.pallas_call(
        _depthwise_kernel,
        out_shape=jax.ShapeDtypeStruct((n, h, w, c), x_nhwc.dtype),
        grid_spec=pltpu.PrefetchScalarGridSpec(
            num_scalar_prefetch=0,
            grid=(n,),
            in_specs=[
                pl.BlockSpec((1, h + 2, w + 2, c), lambda i: (i, 0, 0, 0)),
                pl.BlockSpec((9, c), lambda i: (0, 0)),
                pl.BlockSpec((1, c), lambda i: (0, 0)),
                pl.BlockSpec((1, c), lambda i: (0, 0)),
            ],
            out_specs=pl.BlockSpec((1, h, w, c), lambda i: (i, 0, 0, 0)),
        ),
        compiler_params=pltpu.CompilerParams(
            dimension_semantics=("parallel",),
            vmem_limit_bytes=_VMEM_LIMIT_BYTES),
    )(xp, k9, s_row, b_row)

    if stride == 2:
        out = out[:, ::2, ::2, :]       # strided conv == dense conv subsampled
    return out


# ---------------------------------------------------------------------------
# Stem: dense 3x3 conv (3->32, stride 2) via wrapper im2col + pointwise kernel
# ---------------------------------------------------------------------------
def stem_conv_bn_relu6(x_nhwc, w_oihw, scale, shift, stride):
    n, h, w, cin = x_nhwc.shape
    cout = w_oihw.shape[0]
    xp = jnp.pad(x_nhwc, ((0, 0), (1, 1), (1, 1), (0, 0)))
    ho = (h + 2 - 3) // stride + 1
    wo = (w + 2 - 3) // stride + 1
    taps = []
    for dy in range(3):
        for dx in range(3):
            taps.append(xp[:, dy:dy + (ho - 1) * stride + 1:stride,
                           dx:dx + (wo - 1) * stride + 1:stride, :])
    patches = jnp.concatenate(taps, axis=-1)                      # (N,Ho,Wo,9*Cin)
    w_mat = jnp.transpose(w_oihw, (2, 3, 1, 0)).reshape(9 * cin, cout)
    return pointwise_conv_bn(patches, w_mat, scale, shift, use_relu6=True)


# ---------------------------------------------------------------------------
# Parameter construction (deterministic, eval-mode BN folded)
# ---------------------------------------------------------------------------
def _conv_w(key, cout, cin, kh, kw):
    fan_in = cin * kh * kw
    return jax.random.normal(key, (cout, cin, kh, kw), jnp.float32) * jnp.sqrt(2.0 / fan_in)


def _bn_fold(key, c):
    k1, k2, k3, k4 = jax.random.split(key, 4)
    gamma = jax.random.uniform(k1, (c,), jnp.float32, 0.5, 1.5)
    beta = jax.random.normal(k2, (c,), jnp.float32) * 0.1
    mean = jax.random.normal(k3, (c,), jnp.float32) * 0.1
    var = jax.random.uniform(k4, (c,), jnp.float32, 0.5, 1.5)
    scale = gamma / jnp.sqrt(var + _BN_EPS)
    shift = beta - mean * scale
    return scale, shift


def _make_conv_bn(key, cin, cout, stride):
    kw_, kb = jax.random.split(key)
    s, b = _bn_fold(kb, cout)
    return dict(kind='conv_bn', stride=stride, w=_conv_w(kw_, cout, cin, 3, 3),
                scale=s, shift=b)


def _make_conv_1x1_bn(key, cin, cout):
    kw_, kb = jax.random.split(key)
    s, b = _bn_fold(kb, cout)
    return dict(kind='pw_bn_relu', w=_conv_w(kw_, cout, cin, 1, 1), scale=s, shift=b)


def _make_ir(key, cin, cout, stride, expand):
    hidden = int(cin * expand)
    ks = jax.random.split(key, 6)
    blk = dict(kind='ir', stride=stride, expand=expand,
               use_res=(stride == 1 and cin == cout))
    if expand != 1:
        blk['pw1_w'] = _conv_w(ks[0], hidden, cin, 1, 1)
        blk['pw1_scale'], blk['pw1_shift'] = _bn_fold(ks[1], hidden)
    blk['dw_w'] = _conv_w(ks[2], hidden, 1, 3, 3)
    blk['dw_scale'], blk['dw_shift'] = _bn_fold(ks[3], hidden)
    blk['pw2_w'] = _conv_w(ks[4], cout, hidden, 1, 1)
    blk['pw2_scale'], blk['pw2_shift'] = _bn_fold(ks[5], cout)
    return blk


def build_mobilenetv2_params(key):
    keys = list(jax.random.split(key, 32))
    it = iter(keys)
    nk = lambda: next(it)
    stage1 = [_make_conv_bn(nk(), 3, 32, 2), _make_ir(nk(), 32, 16, 1, 1)]
    stage2 = [_make_ir(nk(), 16, 24, 2, 6), _make_ir(nk(), 24, 24, 1, 6)]
    stage3 = [_make_ir(nk(), 24, 32, 2, 6), _make_ir(nk(), 32, 32, 1, 6),
              _make_ir(nk(), 32, 32, 1, 6)]
    stage4 = ([_make_ir(nk(), 32, 64, 2, 6)]
              + [_make_ir(nk(), 64, 64, 1, 6) for _ in range(3)]
              + [_make_ir(nk(), 64, 96, 1, 6)]
              + [_make_ir(nk(), 96, 96, 1, 6) for _ in range(2)])
    stage5 = ([_make_ir(nk(), 96, 160, 2, 6)]
              + [_make_ir(nk(), 160, 160, 1, 6) for _ in range(2)]
              + [_make_ir(nk(), 160, 320, 1, 6)]
              + [_make_conv_1x1_bn(nk(), 320, 1280)])
    return [stage1, stage2, stage3, stage4, stage5]


# ---------------------------------------------------------------------------
# Pallas forward (matches MobileNetV2.forward: returns out1..out5 in NCHW)
# ---------------------------------------------------------------------------
def _pw_mat(w_oihw):
    return w_oihw[:, :, 0, 0].T          # (Cin, Cout)


def apply_block_pallas(x_nhwc, blk):
    if blk['kind'] == 'conv_bn':
        return stem_conv_bn_relu6(x_nhwc, blk['w'], blk['scale'], blk['shift'], blk['stride'])
    if blk['kind'] == 'pw_bn_relu':
        return pointwise_conv_bn(x_nhwc, _pw_mat(blk['w']), blk['scale'], blk['shift'],
                                 use_relu6=True)
    # inverted residual
    h = x_nhwc
    if blk['expand'] != 1:
        h = pointwise_conv_bn(h, _pw_mat(blk['pw1_w']), blk['pw1_scale'], blk['pw1_shift'],
                              use_relu6=True)
    h = depthwise_conv_bn_relu6(h, blk['dw_w'], blk['dw_scale'], blk['dw_shift'], blk['stride'])
    h = pointwise_conv_bn(h, _pw_mat(blk['pw2_w']), blk['pw2_scale'], blk['pw2_shift'],
                          use_relu6=False,
                          residual=x_nhwc if blk['use_res'] else None)
    return h


def pallas_forward(x_nchw, stages):
    x = jnp.transpose(x_nchw, (0, 2, 3, 1))        # NHWC internally
    outs = []
    for stage in stages:
        for blk in stage:
            x = apply_block_pallas(x, blk)
        outs.append(jnp.transpose(x, (0, 3, 1, 2)))  # report NCHW like the module
    return tuple(outs)


# ---------------------------------------------------------------------------
# Pure-JAX (XLA) reference for verification
# ---------------------------------------------------------------------------
def _ref_conv(x, w, stride, padding, groups=1):
    return jax.lax.conv_general_dilated(
        x, w, (stride, stride), ((padding, padding), (padding, padding)),
        dimension_numbers=('NCHW', 'OIHW', 'NCHW'),
        feature_group_count=groups,
        precision=jax.lax.Precision.HIGHEST)


def _ref_bn(x, scale, shift):
    return x * scale[None, :, None, None] + shift[None, :, None, None]


def _ref_relu6(x):
    return jnp.clip(x, 0.0, 6.0)


def ref_block(x, blk):
    if blk['kind'] == 'conv_bn':
        return _ref_relu6(_ref_bn(_ref_conv(x, blk['w'], blk['stride'], 1),
                                  blk['scale'], blk['shift']))
    if blk['kind'] == 'pw_bn_relu':
        return _ref_relu6(_ref_bn(_ref_conv(x, blk['w'], 1, 0), blk['scale'], blk['shift']))
    h = x
    if blk['expand'] != 1:
        h = _ref_relu6(_ref_bn(_ref_conv(h, blk['pw1_w'], 1, 0),
                               blk['pw1_scale'], blk['pw1_shift']))
    c = h.shape[1]
    h = _ref_relu6(_ref_bn(_ref_conv(h, blk['dw_w'], blk['stride'], 1, groups=c),
                           blk['dw_scale'], blk['dw_shift']))
    h = _ref_bn(_ref_conv(h, blk['pw2_w'], 1, 0), blk['pw2_scale'], blk['pw2_shift'])
    if blk['use_res']:
        h = x + h
    return h


def ref_forward(x, stages):
    outs = []
    for stage in stages:
        for blk in stage:
            x = ref_block(x, blk)
        outs.append(x)
    return tuple(outs)


if __name__ == "__main__":
    key = jax.random.PRNGKey(0)
    k_params, k_x = jax.random.split(key)
    stages = build_mobilenetv2_params(k_params)

    N, H, W = 2, 32, 32                      # small test shapes (5 stride-2 stages -> 1x1)
    x = jax.random.normal(k_x, (N, 3, H, W), dtype=jnp.float32)

    outs = pallas_forward(x, stages)
    outs = jax.block_until_ready(outs)

    refs = ref_forward(x, stages)
    expected_shapes = [(N, 16, 16, 16), (N, 24, 8, 8), (N, 32, 4, 4),
                       (N, 96, 2, 2), (N, 1280, 1, 1)]
    for i, (o, r, shp) in enumerate(zip(outs, refs, expected_shapes)):
        assert o.shape == shp, (i, o.shape, shp)
        assert jnp.allclose(o, r, atol=3e-3, rtol=3e-3), (
            "stage", i + 1, "max_abs_diff", float(jnp.max(jnp.abs(o - r))))

    print("KERNEL_OK")
</pallas_src>

<mosaic_0001>
module attributes {stable_mosaic.version = 11 : i64} {
  func.func @_pointwise_kernel(%arg0: i32, %arg1: memref<512x27xf32, #tpu.memory_space<vmem>>, %arg2: memref<27x32xf32, #tpu.memory_space<vmem>>, %arg3: memref<1x32xf32, #tpu.memory_space<vmem>>, %arg4: memref<1x32xf32, #tpu.memory_space<vmem>>, %arg5: memref<512x32xf32, #tpu.memory_space<vmem>>) attributes {dimension_semantics = [#tpu.dimension_semantics<parallel>], iteration_bounds = array<i64: 1>, scalar_prefetch = 0 : i64, scratch_operands = 0 : i64, tpu.core_type = #tpu.core_type<tc>, window_params = [{transform_indices = @transform_0, window_bounds = array<i64: 512, 27>}, {pipeline_mode = #tpu.pipeline_mode<synchronous>, transform_indices = @transform_1, window_bounds = array<i64: 27, 32>}, {pipeline_mode = #tpu.pipeline_mode<synchronous>, transform_indices = @transform_2, window_bounds = array<i64: 1, 32>}, {pipeline_mode = #tpu.pipeline_mode<synchronous>, transform_indices = @transform_3, window_bounds = array<i64: 1, 32>}, {transform_indices = @transform_4, window_bounds = array<i64: 512, 32>}]} {
    %c0 = arith.constant 0 : index
    %c0_0 = arith.constant 0 : index
    %0 = vector.load %arg1[%c0, %c0_0] : memref<512x27xf32, #tpu.memory_space<vmem>>, vector<512x27xf32>
    %c0_1 = arith.constant 0 : index
    %c0_2 = arith.constant 0 : index
    %1 = vector.load %arg2[%c0_1, %c0_2] : memref<27x32xf32, #tpu.memory_space<vmem>>, vector<27x32xf32>
    %cst = arith.constant dense<0.000000e+00> : vector<512x32xf32>
    %2 = tpu.matmul %0, %1, %cst {dimension_numbers = #tpu.dot_dimension_numbers<[1], [0], [0], [1], [0, 0, 1, 1], [], []>, precision = #tpu.contract_precision<fp32>} : vector<512x27xf32>, vector<27x32xf32>, vector<512x32xf32> -> vector<512x32xf32>
    %c0_3 = arith.constant 0 : index
    %c0_4 = arith.constant 0 : index
    %3 = vector.load %arg3[%c0_3, %c0_4] : memref<1x32xf32, #tpu.memory_space<vmem>>, vector<1x32xf32>
    %4 = vector.broadcast %3 : vector<1x32xf32> to vector<512x32xf32>
    %5 = arith.mulf %2, %4 : vector<512x32xf32>
    %c0_5 = arith.constant 0 : index
    %c0_6 = arith.constant 0 : index
    %6 = vector.load %arg4[%c0_5, %c0_6] : memref<1x32xf32, #tpu.memory_space<vmem>>, vector<1x32xf32>
    %7 = vector.broadcast %6 : vector<1x32xf32> to vector<512x32xf32>
    %8 = arith.addf %5, %7 : vector<512x32xf32>
    %cst_7 = arith.constant 0.000000e+00 : f32
    %cst_8 = arith.constant 6.000000e+00 : f32
    %9 = vector.broadcast %cst_7 : f32 to vector<512x32xf32>
    %10 = arith.maximumf %9, %8 : vector<512x32xf32>
    %11 = vector.broadcast %cst_8 : f32 to vector<512x32xf32>
    %12 = arith.minimumf %11, %10 : vector<512x32xf32>
    %c0_9 = arith.constant 0 : index
    %c0_10 = arith.constant 0 : index
    %13 = vector.load %arg5[%c0_9, %c0_10] : memref<512x32xf32, #tpu.memory_space<vmem>>, vector<512x32xf32>
    tpu.vector_store %arg5[%c0_9, %c0_10], %12 {strides = array<i32>} : memref<512x32xf32, #tpu.memory_space<vmem>>, vector<512x32xf32>,
    return
  }
  func.func @transform_0(%arg0: i32) -> (i32, i32) {
    %c0_i32 = arith.constant 0 : i32
    %c0_i32_0 = arith.constant 0 : i32
    return %arg0, %c0_i32 : i32, i32
  }
  func.func @transform_1(%arg0: i32) -> (i32, i32) {
    %c0_i32 = arith.constant 0 : i32
    %c0_i32_0 = arith.constant 0 : i32
    %c0_i32_1 = arith.constant 0 : i32
    return %c0_i32, %c0_i32_0 : i32, i32
  }
  func.func @transform_2(%arg0: i32) -> (i32, i32) {
    %c0_i32 = arith.constant 0 : i32
    %c0_i32_0 = arith.constant 0 : i32
    %c0_i32_1 = arith.constant 0 : i32
    return %c0_i32, %c0_i32_0 : i32, i32
  }
  func.func @transform_3(%arg0: i32) -> (i32, i32) {
    %c0_i32 = arith.constant 0 : i32
    %c0_i32_0 = arith.constant 0 : i32
    %c0_i32_1 = arith.constant 0 : i32
    return %c0_i32, %c0_i32_0 : i32, i32
  }
  func.func @transform_4(%arg0: i32) -> (i32, i32) {
    %c0_i32 = arith.constant 0 : i32
    %c0_i32_0 = arith.constant 0 : i32
    return %arg0, %c0_i32 : i32, i32
  }
}

</mosaic_0001>

<bundles_post_ra>
// kernel: tpu_custom_call.1
= control target key start
LH: loop header
LB: loop body
LE: loop exit
PB: predicated region body
PF: predicated region fallthrough
CT: control target
= control target key end

     0   :  { %vm278_vm0 = vcmask 1042432   ;;  %vm85_vm1 = vcmask 220160   ;;  %vm2684_vm2 = vcmask 261120   ;;  %s4756_s1 = inlined_call_operand.vmem [shape: f32[27,32], index: 1, kind: input, shape index: {}]   ;;  %s4757_s0 = inlined_call_operand.vmem [shape: f32[512,27], index: 0, kind: input, shape index: {}]   ;;  %s4758_s2 = inlined_call_operand.vmem [shape: f32[1,32], index: 2, kind: input, shape index: {}]   ;;  %s4759_s3 = inlined_call_operand.vmem [shape: f32[1,32], index: 3, kind: input, shape index: {}]   ;;  %s4760_s4 = inlined_call_operand.vmem [shape: f32[512,32], index: 4, kind: output, shape index: {}]  }
   0x1   :  { %v84_v0 = vld [vmem:[%s4756_s1 + $0x18] sm:$0x7]  ;;  %v83_v1 = vld [vmem:[%s4756_s1 + $0x10] sm:$0xff]  ;;  %v82_v2 = vld [vmem:[%s4756_s1 + $0x8] sm:$0xff] }
   0x2   :  { %v280_v3 = vsel %vm278_vm0, %v84_v0, 0  ;;  %v2801_v4 = vand.u32 4294901760, %v83_v1  ;;  %v2803_v5 = vand.u32 4294901760, %v82_v2  ;;  %v81_v6 = vld [vmem:[%s4756_s1] sm:$0xff]  ;;  %v50_v8 = vld [vmem:[%s4757_s0 + $0x108] sm:$0xff]  ;;  %v51_v14 = vld [vmem:[%s4757_s0 + $0x110] sm:$0xff] }
   0x3   :  { %v49_v7 = vld [vmem:[%s4757_s0 + $0x100] sm:$0xff]  ;;  %v2814_v9 = vand.u32 4294901760, %v280_v3  ;;  %v2816_v10 = vand.u32 4294901760, %v81_v6  ;;  %v186_v12 = vsel %vm85_vm1, %v50_v8, 0  ;;  %v189_v22 = vsel %vm85_vm1, %v51_v14, 0  ;;  %v18_v27 = vld [vmem:[%s4757_s0 + $0x8] sm:$0xff] }
   0x4   :  { %v183_v11 = vsel %vm85_vm1, %v49_v7, 0  ;;  %v17_v13 = vld [vmem:[%s4757_s0] sm:$0xff]  ;;  %v834_v16 = vsub.f32 %v83_v1, %v2801_v4  ;;  %v2830_v17 = vsub.f32 %v82_v2, %v2803_v5  ;;  %v2832_v18 = vand.u32 4294901760, %v186_v12  ;;  %v19_v40 = vld [vmem:[%s4757_s0 + $0x10] sm:$0xff]  ;;  %v52_v47 = vld [vmem:[%s4757_s0 + $0x118] sm:$0xff] }
   0x5   :  { %v2826_v15 = vand.u32 4294901760, %v183_v11  ;;  %2753 = vmatpush.msra.mxu2 %v2814_v9  ;;  %v828_v19 = vsub.f32 %v280_v3, %v2814_v9  ;;  %v2837_v20 = vsub.f32 %v81_v6, %v2816_v10  ;;  %295 = vmatpush.msra.mxu0 %v2814_v9  ;;  %v87_v21 = vsel %vm85_vm1, %v17_v13, 0  ;;  %v20_v59 = vld [vmem:[%s4757_s0 + $0x18] sm:$0xff]  ;;  %v53_v1 = vld [vmem:[%s4757_s0 + $0x120] sm:$0xff] }
   0x6   :  { %4990 = vst [vmem:[#allocation3_spill] sm:$0xff] %v2832_v18  ;;  %v835_v24 = vand.u32 4294901760, %v834_v16  ;;  %v841_v25 = vand.u32 4294901760, %v2830_v17  ;;  %v2847_v26 = vsub.f32 %v186_v12, %v2832_v18  ;;  %v2855_v30 = vand.u32 4294901760, %v87_v21 }
   0x7   :  { %4989 = vst [vmem:[#allocation2_spill] sm:$0xff] %v2826_v15  ;;  %v2843_v23 = vsub.f32 %v183_v11, %v2826_v15  ;;  %2754 = vmatpush.msra.mxu2 %v2801_v4  ;;  %v829_v28 = vand.u32 4294901760, %v828_v19  ;;  %v847_v29 = vand.u32 4294901760, %v2837_v20  ;;  %297 = vmatpush.msra.mxu0 %v2801_v4  ;;  %v2858_v33 = vand.u32 4294901760, %v189_v22 }
   0x8   :  { %4992 = vst [vmem:[#allocation5_spill] sm:$0xff] %v2847_v26  ;;  %v836_v32 = vsub.f32 %v834_v16, %v835_v24  ;;  %v842_v35 = vsub.f32 %v2830_v17, %v841_v25  ;;  %v2864_v36 = vsub.f32 %v87_v21, %v2855_v30  ;;  %v90_v37 = vsel %vm85_vm1, %v18_v27, 0 }
   0x9   :  { %4991 = vst [vmem:[#allocation4_spill] sm:$0xff] %v2843_v23  ;;  %v4769_v31 = vand.u32 4294901760, %v2843_v23  ;;  %2755 = vmatpush.msra.mxu2 %v2803_v5  ;;  %v830_v34 = vsub.f32 %v828_v19, %v829_v28  ;;  %299 = vmatpush.msra.mxu0 %v2803_v5  ;;  %v4768_v39 = vand.u32 4294901760, %v2847_v26  ;;  %v848_v43 = vsub.f32 %v2837_v20, %v847_v29 }
   0xa   :  { %4993 = vst [vmem:[#allocation6_spill] sm:$0xff] %v2858_v33  ;;  %v837_v42 = vand.u32 4294901760, %v836_v32  ;;  %v4782_v44 = vand.u32 4294901760, %v2864_v36  ;;  %v2880_v46 = vand.u32 4294901760, %v90_v37  ;;  %v843_v48 = vand.u32 4294901760, %v842_v35 }
   0xb   :  { %v561_v38 = vsub.f32 %v2843_v23, %v4769_v31  ;;  %2756 = vmatpush.msra.mxu2 %v2816_v10  ;;  %v831_v41 = vand.u32 4294901760, %v830_v34  ;;  %301 = vmatpush.msra.mxu0 %v2816_v10  ;;  %v2889_v50 = vsub.f32 %v189_v22, %v2858_v33  ;;  %v93_v51 = vsel %vm85_vm1, %v19_v40, 0 }
   0xc   :  { %v305_v49 = vsub.f32 %v2864_v36, %v4782_v44  ;;  %v569_v52 = vsub.f32 %v2847_v26, %v4768_v39  ;;  %v2896_v53 = vsub.f32 %v90_v37, %v2880_v46  ;;  %v2898_v54 = vand.u32 4294901760, %v93_v51  ;;  %v55_v37 = vld [vmem:[%s4757_s0 + $0x130] sm:$0xff] }
   0xd   :  { %v562_v45 = vand.u32 4294901760, %v561_v38  ;;  %1122 = vmatpush.msrb.mxu2 %v828_v19  ;;  %1873 = vmatpush.msrb.mxu0 %v829_v28  ;;  %4994 = vst [vmem:[#allocation7_spill] sm:$0xff] %v2889_v50  ;;  %v849_v55 = vand.u32 4294901760, %v848_v43  ;;  %v192_v57 = vsel %vm85_vm1, %v52_v47, 0  ;;  %v4767_v60 = vand.u32 4294901760, %v2889_v50  ;;  %v54_v19 = vld [vmem:[%s4757_s0 + $0x128] sm:$0xff] }
   0xe   :  { %2757 = vmatpush.msra.mxu3 %v831_v41  ;;  %832 = vmatpush.msra.mxu1 %v831_v41  ;;  %v306_v56 = vand.u32 4294901760, %v305_v49  ;;  %v4781_v58 = vand.u32 4294901760, %v2896_v53  ;;  %v570_v61 = vand.u32 4294901760, %v569_v52  ;;  %v2909_v63 = vand.u32 4294901760, %v192_v57 }
   0xf   :  { %563 = vmatmul.f32.vlgmr.msra.gmra.mxu2 %v562_v45  ;;  %1877 = vmatpush.msrb.mxu0 %v835_v24  ;;  %v2912_v0 = vsub.f32 %v93_v51, %v2898_v54  ;;  %v96_v2 = vsel %vm85_vm1, %v20_v59, 0  ;;  %v577_v3 = vsub.f32 %v2889_v50, %v4767_v60  ;;  %v195_v6 = vsel %vm85_vm1, %v53_v1, 0 }
  0x10   :  { %2758 = vmatpush.msra.mxu3 %v837_v42  ;;  %838 = vmatpush.msra.mxu1 %v837_v42  ;;  %v313_v62 = vsub.f32 %v2896_v53, %v4781_v58  ;;  %4995 = vst [vmem:[#allocation8_spill] sm:$0xff] %v2909_v63  ;;  %v2928_v8 = vsub.f32 %v192_v57, %v2909_v63  ;;  %v2931_v12 = vand.u32 4294901760, %v96_v2  ;;  %v2941_v13 = vand.u32 4294901760, %v195_v6  ;;  %v56_v57 = vld [vmem:[%s4757_s0 + $0x138] sm:$0xff] }
  0x11   :  { %1125 = vmatpush.msrb.mxu2 %v834_v16  ;;  %1881 = vmatpush.msrb.mxu0 %v841_v25  ;;  %v4780_v11 = vand.u32 4294901760, %v2912_v0  ;;  %v578_v14 = vand.u32 4294901760, %v577_v3  ;;  %v198_v21 = vsel %vm85_vm1, %v54_v19, 0  ;;  %v201_v41 = vsel %vm85_vm1, %v55_v37, 0 }
  0x12   :  { %2759 = vmatpush.msra.mxu3 %v843_v48  ;;  %844 = vmatpush.msra.mxu1 %v843_v48  ;;  %v314_v7 = vand.u32 4294901760, %v313_v62  ;;  %4996 = vst [vmem:[#allocation9_spill] sm:$0xff] %v2928_v8  ;;  %v4766_v16 = vand.u32 4294901760, %v2928_v8  ;;  %v2973_v28 = vand.u32 4294901760, %v198_v21  ;;  %v23_v48 = vld [vmem:[%s4757_s0 + $0x30] sm:$0xff]  ;;  %v3002_v51 = vand.u32 4294901760, %v201_v41 }
  0x13   :  { %307 = vmatmul.f32.vlgmr.msra.gmra.mxu0 %v306_v56  ;;  %1128 = vmatpush.msrb.mxu2 %v2830_v17  ;;  %4997 = vst [vmem:[#allocation10_spill] sm:$0xff] %v2941_v13  ;;  %v2950_v17 = vsub.f32 %v96_v2, %v2931_v12  ;;  %v105_v59 = vsel %vm85_vm1, %v23_v48, 0  ;;  %v204_v3 = vsel %vm85_vm1, %v56_v57, 0  ;;  %v58_v57 = vld [vmem:[%s4757_s0 + $0x148] sm:$0xff] }
  0x14   :  { %2760 = vmatpush.msra.mxu3 %v849_v55  ;;  %850 = vmatpush.msra.mxu1 %v849_v55  ;;  %v585_v22 = vsub.f32 %v2928_v8, %v4766_v16  ;;  %4999 = vst [vmem:[#allocation12_spill] sm:$0xff] %v2973_v28  ;;  %v2989_v40 = vsub.f32 %v198_v21, %v2973_v28  ;;  %v57_v21 = vld [vmem:[%s4757_s0 + $0x140] sm:$0xff] }
  0x15   :  { %980 = vmatmul.f32.vlgmr.msra.gmra.mxu3 %v2826_v15  ;;  %852 = vmatmul.f32.vlgmr.msra.gmra.mxu1 %v2855_v30  ;;  %v4779_v25 = vand.u32 4294901760, %v2950_v17  ;;  %5001 = vst [vmem:[#allocation14_spill] sm:$0xff] %v3002_v51  ;;  %v3020_v62 = vsub.f32 %v201_v41, %v3002_v51  ;;  %v207_v37 = vsel %vm85_vm1, %v57_v21, 0  ;;  %v25_v41 = vld [vmem:[%s4757_s0 + $0x40] sm:$0xff]  ;;  %v26_v21 = vld [vmem:[%s4757_s0 + $0x48] sm:$0xff] }
  0x16   :  { %1466 = vmatpush.msrb.mxu3 %v2814_v9  ;;  %2156 = vmatpush.msrb.mxu1 %v2814_v9  ;;  %v21_v9 = vld [vmem:[%s4757_s0 + $0x20] sm:$0xff]  ;;  %5000 = vst [vmem:[#allocation13_spill] sm:$0xff] %v2989_v40  ;;  %v4763_v49 = vand.u32 4294901760, %v2989_v40 }
  0x17   :  { %571 = vmatmul.f32.gmra.mxu2 %v570_v61  ;;  %1885 = vmatpush.msrb.mxu0 %v847_v29  ;;  %v586_v29 = vand.u32 4294901760, %v585_v22  ;;  %v329_v34 = vsub.f32 %v2950_v17, %v4779_v25  ;;  %5002 = vst [vmem:[#allocation15_spill] sm:$0xff] %v3020_v62 }
  0x18   :  { %1468 = vmatpush.msrb.mxu3 %v2801_v4  ;;  %2158 = vmatpush.msrb.mxu1 %v2801_v4  ;;  %v321_v4 = vsub.f32 %v2912_v0, %v4780_v11  ;;  %v601_v61 = vsub.f32 %v2989_v40, %v4763_v49 }
  0x19   :  { %1131 = vmatpush.msrb.mxu2 %v2837_v20  ;;  %v99_v20 = vsel %vm85_vm1, %v21_v9, 0  ;;  %v330_v43 = vand.u32 4294901760, %v329_v34  ;;  %v4762_v9 = vand.u32 4294901760, %v3020_v62 }
  0x1a   :  { %1470 = vmatpush.msrb.mxu3 %v2803_v5  ;;  %2160 = vmatpush.msrb.mxu1 %v2803_v5  ;;  %v2961_v5 = vsub.f32 %v195_v6, %v2941_v13  ;;  %v322_v24 = vand.u32 4294901760, %v321_v4  ;;  %v2968_v27 = vand.u32 4294901760, %v99_v20  ;;  %v3024_v6 = vand.u32 4294901760, %v105_v59 }
  0x1b   :  { %315 = vmatmul.f32.gmra.mxu0 %v314_v7  ;;  %v24_v7 = vld [vmem:[%s4757_s0 + $0x38] sm:$0xff]  ;;  %v602_v4 = vand.u32 4294901760, %v601_v61 }
  0x1c   :  { %1472 = vmatpush.msrb.mxu3 %v2816_v10  ;;  %2162 = vmatpush.msrb.mxu1 %v2816_v10  ;;  %4998 = vst [vmem:[#allocation11_spill] sm:$0xff] %v2961_v5  ;;  %v22_v10 = vld [vmem:[%s4757_s0 + $0x28] sm:$0xff]  ;;  %v4764_v32 = vand.u32 4294901760, %v2961_v5  ;;  %v2980_v35 = vsub.f32 %v99_v20, %v2968_v27  ;;  %v3036_v20 = vsub.f32 %v105_v59, %v3024_v6  ;;  %v108_v22 = vsel %vm85_vm1, %v24_v7, 0 }
  0x1d   :  { %984 = vmatmul.f32.gmra.mxu3 %v2832_v18  ;;  %856 = vmatmul.f32.gmra.mxu1 %v2880_v46  ;;  %v102_v38 = vsel %vm85_vm1, %v22_v10, 0  ;;  %v111_v59 = vsel %vm85_vm1, %v25_v41, 0 }
  0x1e   :  { %v593_v42 = vsub.f32 %v2961_v5, %v4764_v32  ;;  %v4776_v45 = vand.u32 4294901760, %v2980_v35  ;;  %v2996_v47 = vand.u32 4294901760, %v102_v38  ;;  %v4774_v34 = vand.u32 4294901760, %v3036_v20 }
  0x1f   :  { %579 = vmatmul.f32.gmra.mxu2 %v578_v14  ;;  %v3030_v14 = vand.u32 4294901760, %v204_v3 }
  0x20   :  { %v594_v52 = vand.u32 4294901760, %v593_v42  ;;  %v337_v55 = vsub.f32 %v2980_v35, %v4776_v45  ;;  %v3008_v56 = vsub.f32 %v102_v38, %v2996_v47  ;;  %v3052_v38 = vand.u32 4294901760, %v108_v22 }
  0x21   :  { %5003 = vst [vmem:[#allocation16_spill] sm:$0xff] %v3030_v14  ;;  %v3048_v10 = vsub.f32 %v204_v3, %v3030_v14 }
  0x22   :  { %v338_v1 = vand.u32 4294901760, %v337_v55  ;;  %v4775_v2 = vand.u32 4294901760, %v3008_v56  ;;  %v3064_v55 = vsub.f32 %v108_v22, %v3052_v38 }
  0x23   :  { %323 = vmatmul.f32.gmra.mxu0 %v322_v24  ;;  %v609_v24 = vsub.f32 %v3020_v62, %v4762_v9  ;;  %5004 = vst [vmem:[#allocation17_spill] sm:$0xff] %v3048_v10  ;;  %v4761_v42 = vand.u32 4294901760, %v3048_v10 }
  0x24   :  { %v345_v19 = vsub.f32 %v3008_v56, %v4775_v2  ;;  %v4773_v7 = vand.u32 4294901760, %v3064_v55 }
  0x25   :  { %988 = vmatmul.f32.gmra.mxu3 %v2858_v33  ;;  %860 = vmatmul.f32.gmra.mxu1 %v2898_v54  ;;  %v610_v48 = vand.u32 4294901760, %v609_v24  ;;  %v617_v61 = vsub.f32 %v3048_v10, %v4761_v42 }
  0x27   :  { %587 = vmatmul.f32.gmra.mxu2 %v586_v29  ;;  %v346_v29 = vand.u32 4294901760, %v345_v19  ;;  %v3080_v19 = vand.u32 4294901760, %v111_v59 }
  0x29   :  { %v3092_v41 = vsub.f32 %v111_v59, %v3080_v19 }
  0x2b   :  { %331 = vmatmul.f32.gmra.mxu0 %v330_v43  ;;  %v3058_v43 = vand.u32 4294901760, %v207_v37 }
  0x2d   :  { %992 = vmatmul.f32.gmra.mxu3 %v2909_v63  ;;  %864 = vmatmul.f32.gmra.mxu1 %v2931_v12  ;;  %5005 = vst [vmem:[#allocation18_spill] sm:$0xff] %v3058_v43 }
  0x2f   :  { %595 = vmatmul.f32.gmra.mxu2 %v594_v52  ;;  %v353_v52 = vsub.f32 %v3036_v20, %v4774_v34 }
  0x31   :  { %v354_v3 = vand.u32 4294901760, %v353_v52  ;;  %v114_v52 = vsel %vm85_vm1, %v26_v21, 0  ;;  %v27_v21 = vld [vmem:[%s4757_s0 + $0x50] sm:$0xff] }
  0x32   :  { %v3108_v9 = vand.u32 4294901760, %v114_v52 }
  0x33   :  { %339 = vmatmul.f32.gmra.mxu0 %v338_v1  ;;  %v3076_v1 = vsub.f32 %v207_v37, %v3058_v43  ;;  %v361_v37 = vsub.f32 %v3064_v55, %v4773_v7 }
  0x35   :  { %996 = vmatmul.f32.gmra.mxu3 %v2941_v13  ;;  %868 = vmatmul.f32.gmra.mxu1 %v2968_v27  ;;  %5006 = vst [vmem:[#allocation19_spill] sm:$0xff] %v3076_v1  ;;  %v4765_v22 = vand.u32 4294901760, %v3076_v1  ;;  %v362_v59 = vand.u32 4294901760, %v361_v37  ;;  %v60_v37 = vld [vmem:[%s4757_s0 + $0x158] sm:$0xff] }
  0x36   :  { %v216_v60 = vsel %vm85_vm1, %v60_v37, 0 }
  0x37   :  { %603 = vmatmul.f32.gmra.mxu2 %v602_v4  ;;  %v210_v4 = vsel %vm85_vm1, %v58_v57, 0  ;;  %v625_v57 = vsub.f32 %v3076_v1, %v4765_v22 }
  0x38   :  { %v3086_v24 = vand.u32 4294901760, %v210_v4 }
  0x39   :  { %v626_v22 = vand.u32 4294901760, %v625_v57 }
  0x3a   :  { %5007 = vst [vmem:[#allocation20_spill] sm:$0xff] %v3086_v24 }
  0x3b   :  { %347 = vmatmul.f32.gmra.mxu0 %v346_v29  ;;  %v618_v29 = vand.u32 4294901760, %v617_v61  ;;  %v3104_v61 = vsub.f32 %v210_v4, %v3086_v24 }
  0x3d   :  { %1000 = vmatmul.f32.gmra.mxu3 %v2973_v28  ;;  %872 = vmatmul.f32.gmra.mxu1 %v2996_v47  ;;  %5008 = vst [vmem:[#allocation21_spill] sm:$0xff] %v3104_v61  ;;  %v4771_v49 = vand.u32 4294901760, %v3104_v61 }
  0x3f   :  { %611 = vmatmul.f32.gmra.mxu2 %v610_v48  ;;  %v59_v48 = vld [vmem:[%s4757_s0 + $0x150] sm:$0xff]  ;;  %v633_v57 = vsub.f32 %v3104_v61, %v4771_v49 }
  0x40   :  { %v213_v42 = vsel %vm85_vm1, %v59_v48, 0  ;;  %v117_v48 = vsel %vm85_vm1, %v27_v21, 0  ;;  %v28_v21 = vld [vmem:[%s4757_s0 + $0x58] sm:$0xff] }
  0x41   :  { %v3114_v32 = vand.u32 4294901760, %v213_v42  ;;  %v3136_v39 = vand.u32 4294901760, %v117_v48  ;;  %v634_v49 = vand.u32 4294901760, %v633_v57  ;;  %v120_v37 = vsel %vm85_vm1, %v28_v21, 0  ;;  %v29_v21 = vld [vmem:[%s4757_s0 + $0x60] sm:$0xff] }
  0x42   :  { %v3164_v34 = vand.u32 4294901760, %v120_v37 }
  0x43   :  { %355 = vmatmul.f32.gmra.mxu0 %v354_v3  ;;  %v4770_v3 = vand.u32 4294901760, %v3092_v41  ;;  %5009 = vst [vmem:[#allocation22_spill] sm:$0xff] %v3114_v32 }
  0x45   :  { %1004 = vmatmul.f32.gmra.mxu3 %v3002_v51  ;;  %876 = vmatmul.f32.gmra.mxu1 %v3024_v6  ;;  %v369_v4 = vsub.f32 %v3092_v41, %v4770_v3  ;;  %v3142_v3 = vand.u32 4294901760, %v216_v60 }
  0x47   :  { %619 = vmatmul.f32.gmra.mxu2 %v618_v29  ;;  %v3120_v29 = vsub.f32 %v114_v52, %v3108_v9  ;;  %v370_v52 = vand.u32 4294901760, %v369_v4  ;;  %5011 = vst [vmem:[#allocation24_spill] sm:$0xff] %v3142_v3  ;;  %v61_v4 = vld [vmem:[%s4757_s0 + $0x160] sm:$0xff] }
  0x48   :  { %v219_v7 = vsel %vm85_vm1, %v61_v4, 0  ;;  %v123_v4 = vsel %vm85_vm1, %v29_v21, 0  ;;  %v30_v21 = vld [vmem:[%s4757_s0 + $0x68] sm:$0xff] }
  0x49   :  { %v4772_v16 = vand.u32 4294901760, %v3120_v29  ;;  %v3170_v45 = vand.u32 4294901760, %v219_v7  ;;  %v3192_v11 = vand.u32 4294901760, %v123_v4 }
  0x4b   :  { %363 = vmatmul.f32.gmra.mxu0 %v362_v59  ;;  %v3132_v59 = vsub.f32 %v213_v42, %v3114_v32  ;;  %v377_v42 = vsub.f32 %v3120_v29, %v4772_v16  ;;  %5013 = vst [vmem:[#allocation26_spill] sm:$0xff] %v3170_v45 }
  0x4d   :  { %1008 = vmatmul.f32.gmra.mxu3 %v3030_v14  ;;  %880 = vmatmul.f32.gmra.mxu1 %v3052_v38  ;;  %5010 = vst [vmem:[#allocation23_spill] sm:$0xff] %v3132_v59  ;;  %v4777_v31 = vand.u32 4294901760, %v3132_v59 }
  0x4f   :  { %627 = vmatmul.f32.gmra.mxu2 %v626_v22  ;;  %v3148_v22 = vsub.f32 %v117_v48, %v3136_v39  ;;  %v641_v57 = vsub.f32 %v3132_v59, %v4777_v31  ;;  %v378_v48 = vand.u32 4294901760, %v377_v42  ;;  %v62_v42 = vld [vmem:[%s4757_s0 + $0x168] sm:$0xff] }
  0x50   :  { %v222_v25 = vsel %vm85_vm1, %v62_v42, 0  ;;  %v126_v42 = vsel %vm85_vm1, %v30_v21, 0  ;;  %v31_v21 = vld [vmem:[%s4757_s0 + $0x70] sm:$0xff] }
  0x51   :  { %v4778_v16 = vand.u32 4294901760, %v3148_v22  ;;  %v642_v31 = vand.u32 4294901760, %v641_v57  ;;  %v3198_v44 = vand.u32 4294901760, %v222_v25  ;;  %v3220_v59 = vand.u32 4294901760, %v126_v42 }
  0x53   :  { %371 = vmatmul.f32.gmra.mxu0 %v370_v52  ;;  %v3160_v52 = vsub.f32 %v216_v60, %v3142_v3  ;;  %v385_v60 = vsub.f32 %v3148_v22, %v4778_v16  ;;  %5015 = vst [vmem:[#allocation28_spill] sm:$0xff] %v3198_v44 }
  0x55   :  { %1012 = vmatmul.f32.gmra.mxu3 %v3058_v43  ;;  %884 = vmatmul.f32.gmra.mxu1 %v3080_v19  ;;  %5012 = vst [vmem:[#allocation25_spill] sm:$0xff] %v3160_v52  ;;  %v4783_v2 = vand.u32 4294901760, %v3160_v52 }
  0x57   :  { %635 = vmatmul.f32.gmra.mxu2 %v634_v49  ;;  %v3176_v49 = vsub.f32 %v120_v37, %v3164_v34  ;;  %v649_v57 = vsub.f32 %v3160_v52, %v4783_v2  ;;  %v386_v37 = vand.u32 4294901760, %v385_v60  ;;  %v63_v60 = vld [vmem:[%s4757_s0 + $0x170] sm:$0xff] }
  0x58   :  { %v225_v52 = vsel %vm85_vm1, %v63_v60, 0  ;;  %v129_v60 = vsel %vm85_vm1, %v31_v21, 0  ;;  %v32_v21 = vld [vmem:[%s4757_s0 + $0x78] sm:$0xff] }
  0x59   :  { %v4784_v16 = vand.u32 4294901760, %v3176_v49  ;;  %v650_v2 = vand.u32 4294901760, %v649_v57  ;;  %v3248_v61 = vand.u32 4294901760, %v129_v60 }
  0x5b   :  { %379 = vmatmul.f32.gmra.mxu0 %v378_v48  ;;  %v3188_v48 = vsub.f32 %v219_v7, %v3170_v45  ;;  %v3204_v7 = vsub.f32 %v123_v4, %v3192_v11 }
  0x5d   :  { %1016 = vmatmul.f32.gmra.mxu3 %v3086_v24  ;;  %888 = vmatmul.f32.gmra.mxu1 %v3108_v9  ;;  %5014 = vst [vmem:[#allocation27_spill] sm:$0xff] %v3188_v48  ;;  %v4793_v58 = vand.u32 4294901760, %v3188_v48  ;;  %v3226_v24 = vand.u32 4294901760, %v225_v52 }
  0x5f   :  { %643 = vmatmul.f32.gmra.mxu2 %v642_v31  ;;  %v393_v31 = vsub.f32 %v3176_v49, %v4784_v16  ;;  %v657_v57 = vsub.f32 %v3188_v48, %v4793_v58  ;;  %v4794_v16 = vand.u32 4294901760, %v3204_v7  ;;  %5017 = vst [vmem:[#allocation30_spill] sm:$0xff] %v3226_v24 }
  0x61   :  { %v394_v4 = vand.u32 4294901760, %v393_v31  ;;  %v658_v58 = vand.u32 4294901760, %v657_v57  ;;  %v64_v31 = vld [vmem:[%s4757_s0 + $0x178] sm:$0xff] }
  0x62   :  { %v228_v48 = vsel %vm85_vm1, %v64_v31, 0  ;;  %v132_v31 = vsel %vm85_vm1, %v32_v21, 0  ;;  %v33_v21 = vld [vmem:[%s4757_s0 + $0x80] sm:$0xff] }
  0x63   :  { %387 = vmatmul.f32.gmra.mxu0 %v386_v37  ;;  %v3216_v37 = vsub.f32 %v222_v25, %v3198_v44  ;;  %v401_v25 = vsub.f32 %v3204_v7, %v4794_v16  ;;  %v3254_v43 = vand.u32 4294901760, %v228_v48  ;;  %v3276_v1 = vand.u32 4294901760, %v132_v31 }
  0x65   :  { %1020 = vmatmul.f32.gmra.mxu3 %v3114_v32  ;;  %892 = vmatmul.f32.gmra.mxu1 %v3136_v39  ;;  %5016 = vst [vmem:[#allocation29_spill] sm:$0xff] %v3216_v37  ;;  %v4803_v32 = vand.u32 4294901760, %v3216_v37 }
  0x66   :  { %5019 = vst [vmem:[#allocation32_spill] sm:$0xff] %v3254_v43 }
  0x67   :  { %651 = vmatmul.f32.gmra.mxu2 %v650_v2  ;;  %v3232_v2 = vsub.f32 %v126_v42, %v3220_v59  ;;  %v665_v57 = vsub.f32 %v3216_v37, %v4803_v32  ;;  %v402_v42 = vand.u32 4294901760, %v401_v25  ;;  %v65_v25 = vld [vmem:[%s4757_s0 + $0x180] sm:$0xff] }
  0x68   :  { %v231_v37 = vsel %vm85_vm1, %v65_v25, 0  ;;  %v135_v25 = vsel %vm85_vm1, %v33_v21, 0  ;;  %v34_v21 = vld [vmem:[%s4757_s0 + $0x88] sm:$0xff] }
  0x69   :  { %v4804_v16 = vand.u32 4294901760, %v3232_v2  ;;  %v666_v32 = vand.u32 4294901760, %v665_v57  ;;  %v3282_v14 = vand.u32 4294901760, %v231_v37  ;;  %v3304_v10 = vand.u32 4294901760, %v135_v25 }
  0x6b   :  { %395 = vmatmul.f32.gmra.mxu0 %v394_v4  ;;  %v3244_v4 = vsub.f32 %v225_v52, %v3226_v24  ;;  %v3260_v52 = vsub.f32 %v129_v60, %v3248_v61  ;;  %5021 = vst [vmem:[#allocation34_spill] sm:$0xff] %v3282_v14 }
  0x6d   :  { %1024 = vmatmul.f32.gmra.mxu3 %v3142_v3  ;;  %896 = vmatmul.f32.gmra.mxu1 %v3164_v34  ;;  %5018 = vst [vmem:[#allocation31_spill] sm:$0xff] %v3244_v4  ;;  %v4813_v3 = vand.u32 4294901760, %v3244_v4 }
  0x6f   :  { %659 = vmatmul.f32.gmra.mxu2 %v658_v58  ;;  %v409_v58 = vsub.f32 %v3232_v2, %v4804_v16  ;;  %v673_v57 = vsub.f32 %v3244_v4, %v4813_v3  ;;  %v4814_v16 = vand.u32 4294901760, %v3260_v52 }
  0x71   :  { %v410_v60 = vand.u32 4294901760, %v409_v58  ;;  %v674_v3 = vand.u32 4294901760, %v673_v57  ;;  %v66_v58 = vld [vmem:[%s4757_s0 + $0x188] sm:$0xff] }
  0x72   :  { %v234_v4 = vsel %vm85_vm1, %v66_v58, 0  ;;  %v138_v58 = vsel %vm85_vm1, %v34_v21, 0  ;;  %v35_v21 = vld [vmem:[%s4757_s0 + $0x90] sm:$0xff] }
  0x73   :  { %403 = vmatmul.f32.gmra.mxu0 %v402_v42  ;;  %v3272_v42 = vsub.f32 %v228_v48, %v3254_v43  ;;  %v3288_v48 = vsub.f32 %v132_v31, %v3276_v1  ;;  %v3310_v51 = vand.u32 4294901760, %v234_v4  ;;  %v3332_v62 = vand.u32 4294901760, %v138_v58 }
  0x75   :  { %1028 = vmatmul.f32.gmra.mxu3 %v3170_v45  ;;  %900 = vmatmul.f32.gmra.mxu1 %v3192_v11  ;;  %5020 = vst [vmem:[#allocation33_spill] sm:$0xff] %v3272_v42  ;;  %v4823_v45 = vand.u32 4294901760, %v3272_v42 }
  0x76   :  { %5023 = vst [vmem:[#allocation36_spill] sm:$0xff] %v3310_v51 }
  0x77   :  { %667 = vmatmul.f32.gmra.mxu2 %v666_v32  ;;  %v417_v32 = vsub.f32 %v3260_v52, %v4814_v16  ;;  %v681_v57 = vsub.f32 %v3272_v42, %v4823_v45  ;;  %v4824_v16 = vand.u32 4294901760, %v3288_v48 }
  0x79   :  { %v418_v31 = vand.u32 4294901760, %v417_v32  ;;  %v682_v45 = vand.u32 4294901760, %v681_v57  ;;  %v67_v32 = vld [vmem:[%s4757_s0 + $0x190] sm:$0xff] }
  0x7a   :  { %v237_v42 = vsel %vm85_vm1, %v67_v32, 0  ;;  %v141_v32 = vsel %vm85_vm1, %v35_v21, 0 }
  0x7b   :  { %411 = vmatmul.f32.gmra.mxu0 %v410_v60  ;;  %v3300_v60 = vsub.f32 %v231_v37, %v3282_v14  ;;  %v3316_v37 = vsub.f32 %v135_v25, %v3304_v10  ;;  %v3338_v28 = vand.u32 4294901760, %v237_v42  ;;  %v3360_v40 = vand.u32 4294901760, %v141_v32 }
  0x7d   :  { %1032 = vmatmul.f32.gmra.mxu3 %v3198_v44  ;;  %904 = vmatmul.f32.gmra.mxu1 %v3220_v59  ;;  %5022 = vst [vmem:[#allocation35_spill] sm:$0xff] %v3300_v60  ;;  %v4833_v44 = vand.u32 4294901760, %v3300_v60 }
  0x7e   :  { %5025 = vst [vmem:[#allocation38_spill] sm:$0xff] %v3338_v28 }
  0x7f   :  { %675 = vmatmul.f32.gmra.mxu2 %v674_v3  ;;  %v425_v3 = vsub.f32 %v3288_v48, %v4824_v16  ;;  %v689_v57 = vsub.f32 %v3300_v60, %v4833_v44  ;;  %v4834_v16 = vand.u32 4294901760, %v3316_v37  ;;  %5027 = vst [vmem:[#allocation40_spill] sm:$0xff] %v3360_v40 }
  0x81   :  { %v426_v25 = vand.u32 4294901760, %v425_v3  ;;  %v690_v44 = vand.u32 4294901760, %v689_v57  ;;  %v68_v3 = vld [vmem:[%s4757_s0 + $0x198] sm:$0xff] }
  0x82   :  { %v240_v60 = vsel %vm85_vm1, %v68_v3, 0  ;;  %v3376_v3 = vsub.f32 %v141_v32, %v3360_v40 }
  0x83   :  { %419 = vmatmul.f32.gmra.mxu0 %v418_v31  ;;  %v3328_v31 = vsub.f32 %v234_v4, %v3310_v51  ;;  %v3344_v4 = vsub.f32 %v138_v58, %v3332_v62 }
  0x84   :  { %5029 = vst [vmem:[#allocation42_spill] sm:$0xff] %v3376_v3 }
  0x85   :  { %1036 = vmatmul.f32.gmra.mxu3 %v3226_v24  ;;  %908 = vmatmul.f32.gmra.mxu1 %v3248_v61  ;;  %5024 = vst [vmem:[#allocation37_spill] sm:$0xff] %v3328_v31  ;;  %v4845_v24 = vand.u32 4294901760, %v3328_v31 }
  0x87   :  { %683 = vmatmul.f32.gmra.mxu2 %v682_v45  ;;  %v433_v45 = vsub.f32 %v3316_v37, %v4834_v16  ;;  %v697_v57 = vsub.f32 %v3328_v31, %v4845_v24  ;;  %v4850_v16 = vand.u32 4294901760, %v3344_v4  ;;  %v3370_v24 = vand.u32 4294901760, %v240_v60  ;;  %v69_v31 = vld [vmem:[%s4757_s0 + $0x1a0] sm:$0xff] }
  0x88   :  { %v243_v8 = vsel %vm85_vm1, %v69_v31, 0  ;;  %v5034_v31 = vand.u32 4294901760, %v3376_v3 }
  0x89   :  { %v434_v58 = vand.u32 4294901760, %v433_v45  ;;  %5028 = vst [vmem:[#allocation41_spill] sm:$0xff] %v3370_v24  ;;  %v441_v45 = vsub.f32 %v3344_v4, %v4850_v16 }
  0x8a   :  { %v449_v18 = vsub.f32 %v3376_v3, %v5034_v31 }
  0x8b   :  { %427 = vmatmul.f32.gmra.mxu0 %v426_v25  ;;  %v3356_v25 = vsub.f32 %v237_v42, %v3338_v28  ;;  %v442_v32 = vand.u32 4294901760, %v441_v45  ;;  %v3404_v45 = vand.u32 4294901760, %v243_v8 }
  0x8d   :  { %1040 = vmatmul.f32.gmra.mxu3 %v3254_v43  ;;  %912 = vmatmul.f32.gmra.mxu1 %v3276_v1  ;;  %5026 = vst [vmem:[#allocation39_spill] sm:$0xff] %v3356_v25  ;;  %v36_v43 = vld [vmem:[%s4757_s0 + $0x98] sm:$0xff]  ;;  %v4859_v42 = vand.u32 4294901760, %v3356_v25 }
  0x8e   :  { %v144_v63 = vsel %vm85_vm1, %v36_v43, 0  ;;  %5033 = vst [vmem:[#allocation46_spill] sm:$0xff] %v3404_v45 }
  0x8f   :  { %691 = vmatmul.f32.gmra.mxu2 %v690_v44  ;;  %v698_v44 = vand.u32 4294901760, %v697_v57  ;;  %v705_v57 = vsub.f32 %v3356_v25, %v4859_v42  ;;  %v3392_v33 = vand.u32 4294901760, %v144_v63  ;;  %v37_v42 = vld [vmem:[%s4757_s0 + $0xa0] sm:$0xff] }
  0x90   :  { %v3362_v21 = vpop.f32.mrf.mxu0 }
  0x91   :  { %5031 = vst [vmem:[#allocation44_spill] sm:$0xff] %v3392_v33  ;;  %v706_v16 = vand.u32 4294901760, %v705_v57 }
  0x92   :  { %v564_v13 = vpop.f32.mrf.mxu2  ;;  %v3367_v5 = vpop.f32.mrf.mxu1 }
  0x93   :  { %435 = vmatmul.f32.gmra.mxu0 %v434_v58  ;;  %v3388_v58 = vsub.f32 %v240_v60, %v3370_v24 }
  0x95   :  { %1044 = vmatmul.f32.gmra.mxu3 %v3282_v14  ;;  %916 = vmatmul.f32.gmra.mxu1 %v3304_v10  ;;  %5030 = vst [vmem:[#allocation43_spill] sm:$0xff] %v3388_v58 }
  0x97   :  { %699 = vmatmul.f32.gmra.mxu2 %v698_v44  ;;  %v4872_v44 = vand.u32 4294901760, %v3388_v58 }
  0x98   :  { %v981_v43 = vpop.f32.mrf.mxu3  ;;  %v3394_v50 = vpop.f32.mrf.mxu0 }
  0x99   :  { %v3396_v14 = vadd.f32 %v981_v43, %v564_v13  ;;  %v3410_v13 = vsub.f32 %v144_v63, %v3392_v33  ;;  %v70_v43 = vld [vmem:[%s4757_s0 + $0x1a8] sm:$0xff]  ;;  %v713_v57 = vsub.f32 %v3388_v58, %v4872_v44  ;;  %v450_v63 = vand.u32 4294901760, %v449_v18 }
  0x9a   :  { %v572_v25 = vpop.f32.mrf.mxu2  ;;  %v3401_v60 = vpop.f32.mrf.mxu1  ;;  %v246_v26 = vsel %vm85_vm1, %v70_v43, 0  ;;  %v38_v44 = vld [vmem:[%s4757_s0 + $0xa8] sm:$0xff] }
  0x9b   :  { %5032 = vst [vmem:[#allocation45_spill] sm:$0xff] %v3396_v14  ;;  %443 = vmatmul.f32.gmra.mxu0 %v442_v32  ;;  %v147_v14 = vsel %vm85_vm1, %v37_v42, 0  ;;  %v3422_v32 = vsub.f32 %v243_v8, %v3404_v45  ;;  %v714_v31 = vand.u32 4294901760, %v713_v57  ;;  %v5042_v43 = vand.u32 4294901760, %v3410_v13 }
  0x9c   :  { %5035 = vst [vmem:[#allocation47_spill] sm:$0xff] %v3410_v13  ;;  %v3426_v15 = vand.u32 4294901760, %v147_v14 }
  0x9d   :  { %1048 = vmatmul.f32.gmra.mxu3 %v3310_v51  ;;  %920 = vmatmul.f32.gmra.mxu1 %v3332_v62  ;;  %5036 = vst [vmem:[#allocation48_spill] sm:$0xff] %v3422_v32  ;;  %v4881_v18 = vand.u32 4294901760, %v3422_v32  ;;  %v457_v3 = vsub.f32 %v3410_v13, %v5042_v43 }
  0x9e   :  { %5037 = vst [vmem:[#allocation49_spill] sm:$0xff] %v3426_v15 }
  0x9f   :  { %707 = vmatmul.f32.gmra.mxu2 %v706_v16  ;;  %v3438_v16 = vand.u32 4294901760, %v246_v26  ;;  %v721_v57 = vsub.f32 %v3422_v32, %v4881_v18  ;;  %v39_v18 = vld [vmem:[%s4757_s0 + $0xb0] sm:$0xff] }
  0xa0   :  { %v985_v42 = vpop.f32.mrf.mxu3  ;;  %v3428_v23 = vpop.f32.mrf.mxu0 }
  0xa1   :  { %5038 = vst [vmem:[#allocation50_spill] sm:$0xff] %v3428_v23  ;;  %v3430_v51 = vadd.f32 %v985_v42, %v572_v25  ;;  %v3444_v25 = vsub.f32 %v147_v14, %v3426_v15  ;;  %v71_v42 = vld [vmem:[%s4757_s0 + $0x1b0] sm:$0xff]  ;;  %v458_v14 = vand.u32 4294901760, %v457_v3  ;;  %v722_v43 = vand.u32 4294901760, %v721_v57 }
  0xa2   :  { %v580_v58 = vpop.f32.mrf.mxu2  ;;  %v3435_v8 = vpop.f32.mrf.mxu1  ;;  %5041 = vst [vmem:[#allocation53_spill] sm:$0xff] %v3438_v16  ;;  %v249_v13 = vsel %vm85_vm1, %v71_v42, 0 }
  0xa3   :  { %5039 = vst [vmem:[#allocation51_spill] sm:$0xff] %v3430_v51  ;;  %451 = vmatmul.f32.gmra.mxu0 %v450_v63  ;;  %v150_v51 = vsel %vm85_vm1, %v38_v44, 0  ;;  %v3456_v63 = vsub.f32 %v246_v26, %v3438_v16  ;;  %v5050_v42 = vand.u32 4294901760, %v3444_v25 }
  0xa4   :  { %5040 = vst [vmem:[#allocation52_spill] sm:$0xff] %v3435_v8  ;;  %v3460_v8 = vand.u32 4294901760, %v150_v51 }
  0xa5   :  { %5043 = vst [vmem:[#allocation54_spill] sm:$0xff] %v3444_v25  ;;  %1052 = vmatmul.f32.gmra.mxu3 %v3338_v28  ;;  %924 = vmatmul.f32.gmra.mxu1 %v3360_v40  ;;  %v4890_v3 = vand.u32 4294901760, %v3456_v63  ;;  %v465_v40 = vsub.f32 %v3444_v25, %v5050_v42 }
  0xa6   :  { %5044 = vst [vmem:[#allocation55_spill] sm:$0xff] %v3456_v63 }
  0xa7   :  { %715 = vmatmul.f32.gmra.mxu2 %v714_v31  ;;  %5045 = vst [vmem:[#allocation56_spill] sm:$0xff] %v3460_v8  ;;  %v3472_v31 = vand.u32 4294901760, %v249_v13  ;;  %v729_v57 = vsub.f32 %v3456_v63, %v4890_v3  ;;  %v40_v3 = vld [vmem:[%s4757_s0 + $0xb8] sm:$0xff] }
  0xa8   :  { %v989_v44 = vpop.f32.mrf.mxu3  ;;  %v3462_v23 = vpop.f32.mrf.mxu0 }
  0xa9   :  { %5046 = vst [vmem:[#allocation57_spill] sm:$0xff] %v3462_v23  ;;  %v3464_v28 = vadd.f32 %v989_v44, %v580_v58  ;;  %v3478_v58 = vsub.f32 %v150_v51, %v3460_v8  ;;  %v72_v44 = vld [vmem:[%s4757_s0 + $0x1b8] sm:$0xff]  ;;  %v466_v51 = vand.u32 4294901760, %v465_v40  ;;  %v730_v42 = vand.u32 4294901760, %v729_v57 }
  0xaa   :  { %v588_v32 = vpop.f32.mrf.mxu2  ;;  %v3469_v26 = vpop.f32.mrf.mxu1  ;;  %5049 = vst [vmem:[#allocation60_spill] sm:$0xff] %v3472_v31  ;;  %v252_v25 = vsel %vm85_vm1, %v72_v44, 0 }
  0xab   :  { %5047 = vst [vmem:[#allocation58_spill] sm:$0xff] %v3464_v28  ;;  %459 = vmatmul.f32.gmra.mxu0 %v458_v14  ;;  %v153_v28 = vsel %vm85_vm1, %v39_v18, 0  ;;  %v3490_v14 = vsub.f32 %v249_v13, %v3472_v31  ;;  %v5058_v44 = vand.u32 4294901760, %v3478_v58 }
  0xac   :  { %5048 = vst [vmem:[#allocation59_spill] sm:$0xff] %v3469_v26  ;;  %v3494_v26 = vand.u32 4294901760, %v153_v28 }
  0xad   :  { %5051 = vst [vmem:[#allocation61_spill] sm:$0xff] %v3478_v58  ;;  %1056 = vmatmul.f32.gmra.mxu3 %v3370_v24  ;;  %928 = vmatmul.f32.gmra.mxu1 %v3392_v33  ;;  %v4899_v40 = vand.u32 4294901760, %v3490_v14  ;;  %v473_v33 = vsub.f32 %v3478_v58, %v5058_v44 }
  0xae   :  { %5052 = vst [vmem:[#allocation62_spill] sm:$0xff] %v3490_v14 }
  0xaf   :  { %723 = vmatmul.f32.gmra.mxu2 %v722_v43  ;;  %5053 = vst [vmem:[#allocation63_spill] sm:$0xff] %v3494_v26  ;;  %v3506_v43 = vand.u32 4294901760, %v252_v25  ;;  %v737_v57 = vsub.f32 %v3490_v14, %v4899_v40  ;;  %v41_v40 = vld [vmem:[%s4757_s0 + $0xc0] sm:$0xff] }
  0xb0   :  { %v993_v18 = vpop.f32.mrf.mxu3  ;;  %v3496_v23 = vpop.f32.mrf.mxu0 }
  0xb1   :  { %5054 = vst [vmem:[#allocation64_spill] sm:$0xff] %v3496_v23  ;;  %v3498_v24 = vadd.f32 %v993_v18, %v588_v32  ;;  %v3512_v32 = vsub.f32 %v153_v28, %v3494_v26  ;;  %v73_v18 = vld [vmem:[%s4757_s0 + $0x1c0] sm:$0xff]  ;;  %v474_v28 = vand.u32 4294901760, %v473_v33  ;;  %v738_v44 = vand.u32 4294901760, %v737_v57 }
  0xb2   :  { %v596_v63 = vpop.f32.mrf.mxu2  ;;  %v3503_v13 = vpop.f32.mrf.mxu1  ;;  %5057 = vst [vmem:[#allocation67_spill] sm:$0xff] %v3506_v43  ;;  %v255_v58 = vsel %vm85_vm1, %v73_v18, 0 }
  0xb3   :  { %5055 = vst [vmem:[#allocation65_spill] sm:$0xff] %v3498_v24  ;;  %467 = vmatmul.f32.gmra.mxu0 %v466_v51  ;;  %v156_v24 = vsel %vm85_vm1, %v40_v3, 0  ;;  %v3524_v51 = vsub.f32 %v252_v25, %v3506_v43  ;;  %v5066_v18 = vand.u32 4294901760, %v3512_v32 }
  0xb4   :  { %5056 = vst [vmem:[#allocation66_spill] sm:$0xff] %v3503_v13  ;;  %v3528_v13 = vand.u32 4294901760, %v156_v24 }
  0xb5   :  { %5059 = vst [vmem:[#allocation68_spill] sm:$0xff] %v3512_v32  ;;  %1060 = vmatmul.f32.gmra.mxu3 %v3404_v45  ;;  %932 = vmatmul.f32.gmra.mxu1 %v3426_v15  ;;  %v4908_v33 = vand.u32 4294901760, %v3524_v51  ;;  %v481_v15 = vsub.f32 %v3512_v32, %v5066_v18 }
  0xb6   :  { %5060 = vst [vmem:[#allocation69_spill] sm:$0xff] %v3524_v51 }
  0xb7   :  { %731 = vmatmul.f32.gmra.mxu2 %v730_v42  ;;  %5061 = vst [vmem:[#allocation70_spill] sm:$0xff] %v3528_v13  ;;  %v3540_v42 = vand.u32 4294901760, %v255_v58  ;;  %v745_v57 = vsub.f32 %v3524_v51, %v4908_v33  ;;  %v42_v33 = vld [vmem:[%s4757_s0 + $0xc8] sm:$0xff] }
  0xb8   :  { %v997_v3 = vpop.f32.mrf.mxu3  ;;  %v3530_v23 = vpop.f32.mrf.mxu0 }
  0xb9   :  { %5062 = vst [vmem:[#allocation71_spill] sm:$0xff] %v3530_v23  ;;  %v3532_v45 = vadd.f32 %v997_v3, %v596_v63  ;;  %v3546_v63 = vsub.f32 %v156_v24, %v3528_v13  ;;  %v74_v3 = vld [vmem:[%s4757_s0 + $0x1c8] sm:$0xff]  ;;  %v482_v24 = vand.u32 4294901760, %v481_v15  ;;  %v746_v18 = vand.u32 4294901760, %v745_v57 }
  0xba   :  { %v604_v14 = vpop.f32.mrf.mxu2  ;;  %v3537_v25 = vpop.f32.mrf.mxu1  ;;  %5065 = vst [vmem:[#allocation74_spill] sm:$0xff] %v3540_v42  ;;  %v258_v32 = vsel %vm85_vm1, %v74_v3, 0 }
  0xbb   :  { %5063 = vst [vmem:[#allocation72_spill] sm:$0xff] %v3532_v45  ;;  %475 = vmatmul.f32.gmra.mxu0 %v474_v28  ;;  %v159_v45 = vsel %vm85_vm1, %v41_v40, 0  ;;  %v3558_v28 = vsub.f32 %v255_v58, %v3540_v42  ;;  %v5074_v3 = vand.u32 4294901760, %v3546_v63 }
  0xbc   :  { %5064 = vst [vmem:[#allocation73_spill] sm:$0xff] %v3537_v25  ;;  %v3562_v25 = vand.u32 4294901760, %v159_v45 }
  0xbd   :  { %5067 = vst [vmem:[#allocation75_spill] sm:$0xff] %v3546_v63  ;;  %1064 = vmatmul.f32.gmra.mxu3 %v3438_v16  ;;  %936 = vmatmul.f32.gmra.mxu1 %v3460_v8  ;;  %v4917_v15 = vand.u32 4294901760, %v3558_v28  ;;  %v489_v8 = vsub.f32 %v3546_v63, %v5074_v3 }
  0xbe   :  { %5068 = vst [vmem:[#allocation76_spill] sm:$0xff] %v3558_v28 }
  0xbf   :  { %739 = vmatmul.f32.gmra.mxu2 %v738_v44  ;;  %5069 = vst [vmem:[#allocation77_spill] sm:$0xff] %v3562_v25  ;;  %v3574_v44 = vand.u32 4294901760, %v258_v32  ;;  %v753_v57 = vsub.f32 %v3558_v28, %v4917_v15  ;;  %v43_v15 = vld [vmem:[%s4757_s0 + $0xd0] sm:$0xff] }
  0xc0   :  { %v1001_v40 = vpop.f32.mrf.mxu3  ;;  %v3564_v23 = vpop.f32.mrf.mxu0 }
  0xc1   :  { %5070 = vst [vmem:[#allocation78_spill] sm:$0xff] %v3564_v23  ;;  %v3566_v16 = vadd.f32 %v1001_v40, %v604_v14  ;;  %v3580_v14 = vsub.f32 %v159_v45, %v3562_v25  ;;  %v75_v40 = vld [vmem:[%s4757_s0 + $0x1d0] sm:$0xff]  ;;  %v490_v45 = vand.u32 4294901760, %v489_v8  ;;  %v754_v3 = vand.u32 4294901760, %v753_v57 }
  0xc2   :  { %v612_v51 = vpop.f32.mrf.mxu2  ;;  %v3571_v58 = vpop.f32.mrf.mxu1  ;;  %5073 = vst [vmem:[#allocation81_spill] sm:$0xff] %v3574_v44  ;;  %v261_v63 = vsel %vm85_vm1, %v75_v40, 0 }
  0xc3   :  { %5071 = vst [vmem:[#allocation79_spill] sm:$0xff] %v3566_v16  ;;  %483 = vmatmul.f32.gmra.mxu0 %v482_v24  ;;  %v162_v16 = vsel %vm85_vm1, %v42_v33, 0  ;;  %v3592_v24 = vsub.f32 %v258_v32, %v3574_v44  ;;  %v5082_v40 = vand.u32 4294901760, %v3580_v14 }
  0xc4   :  { %5072 = vst [vmem:[#allocation80_spill] sm:$0xff] %v3571_v58  ;;  %v3596_v58 = vand.u32 4294901760, %v162_v16 }
  0xc5   :  { %5075 = vst [vmem:[#allocation82_spill] sm:$0xff] %v3580_v14  ;;  %1068 = vmatmul.f32.gmra.mxu3 %v3472_v31  ;;  %940 = vmatmul.f32.gmra.mxu1 %v3494_v26  ;;  %v4926_v8 = vand.u32 4294901760, %v3592_v24  ;;  %v497_v26 = vsub.f32 %v3580_v14, %v5082_v40 }
  0xc6   :  { %5076 = vst [vmem:[#allocation83_spill] sm:$0xff] %v3592_v24 }
  0xc7   :  { %747 = vmatmul.f32.gmra.mxu2 %v746_v18  ;;  %5077 = vst [vmem:[#allocation84_spill] sm:$0xff] %v3596_v58  ;;  %v3608_v18 = vand.u32 4294901760, %v261_v63  ;;  %v761_v57 = vsub.f32 %v3592_v24, %v4926_v8  ;;  %v44_v8 = vld [vmem:[%s4757_s0 + $0xd8] sm:$0xff] }
  0xc8   :  { %v1005_v33 = vpop.f32.mrf.mxu3  ;;  %v3598_v23 = vpop.f32.mrf.mxu0 }
  0xc9   :  { %5078 = vst [vmem:[#allocation85_spill] sm:$0xff] %v3598_v23  ;;  %v3600_v31 = vadd.f32 %v1005_v33, %v612_v51  ;;  %v3614_v51 = vsub.f32 %v162_v16, %v3596_v58  ;;  %v76_v33 = vld [vmem:[%s4757_s0 + $0x1d8] sm:$0xff]  ;;  %v498_v16 = vand.u32 4294901760, %v497_v26  ;;  %v762_v40 = vand.u32 4294901760, %v761_v57 }
  0xca   :  { %v620_v28 = vpop.f32.mrf.mxu2  ;;  %v3605_v32 = vpop.f32.mrf.mxu1  ;;  %5081 = vst [vmem:[#allocation88_spill] sm:$0xff] %v3608_v18  ;;  %v264_v14 = vsel %vm85_vm1, %v76_v33, 0 }
  0xcb   :  { %5079 = vst [vmem:[#allocation86_spill] sm:$0xff] %v3600_v31  ;;  %491 = vmatmul.f32.gmra.mxu0 %v490_v45  ;;  %v165_v31 = vsel %vm85_vm1, %v43_v15, 0  ;;  %v3626_v45 = vsub.f32 %v261_v63, %v3608_v18  ;;  %v5090_v33 = vand.u32 4294901760, %v3614_v51 }
  0xcc   :  { %5080 = vst [vmem:[#allocation87_spill] sm:$0xff] %v3605_v32  ;;  %v3630_v32 = vand.u32 4294901760, %v165_v31 }
  0xcd   :  { %5083 = vst [vmem:[#allocation89_spill] sm:$0xff] %v3614_v51  ;;  %1072 = vmatmul.f32.gmra.mxu3 %v3506_v43  ;;  %944 = vmatmul.f32.gmra.mxu1 %v3528_v13  ;;  %v4935_v26 = vand.u32 4294901760, %v3626_v45  ;;  %v505_v13 = vsub.f32 %v3614_v51, %v5090_v33 }
  0xce   :  { %5084 = vst [vmem:[#allocation90_spill] sm:$0xff] %v3626_v45 }
  0xcf   :  { %755 = vmatmul.f32.gmra.mxu2 %v754_v3  ;;  %5085 = vst [vmem:[#allocation91_spill] sm:$0xff] %v3630_v32  ;;  %v3642_v3 = vand.u32 4294901760, %v264_v14  ;;  %v769_v57 = vsub.f32 %v3626_v45, %v4935_v26  ;;  %v45_v26 = vld [vmem:[%s4757_s0 + $0xe0] sm:$0xff] }
  0xd0   :  { %v1009_v15 = vpop.f32.mrf.mxu3  ;;  %v3632_v23 = vpop.f32.mrf.mxu0 }
  0xd1   :  { %5086 = vst [vmem:[#allocation92_spill] sm:$0xff] %v3632_v23  ;;  %v3634_v43 = vadd.f32 %v1009_v15, %v620_v28  ;;  %v3648_v28 = vsub.f32 %v165_v31, %v3630_v32  ;;  %v77_v15 = vld [vmem:[%s4757_s0 + $0x1e0] sm:$0xff]  ;;  %v506_v31 = vand.u32 4294901760, %v505_v13  ;;  %v770_v33 = vand.u32 4294901760, %v769_v57 }
  0xd2   :  { %v628_v24 = vpop.f32.mrf.mxu2  ;;  %v3639_v63 = vpop.f32.mrf.mxu1  ;;  %5089 = vst [vmem:[#allocation95_spill] sm:$0xff] %v3642_v3  ;;  %v267_v51 = vsel %vm85_vm1, %v77_v15, 0 }
  0xd3   :  { %5087 = vst [vmem:[#allocation93_spill] sm:$0xff] %v3634_v43  ;;  %499 = vmatmul.f32.gmra.mxu0 %v498_v16  ;;  %v168_v43 = vsel %vm85_vm1, %v44_v8, 0  ;;  %v3660_v16 = vsub.f32 %v264_v14, %v3642_v3  ;;  %v5098_v15 = vand.u32 4294901760, %v3648_v28 }
  0xd4   :  { %5088 = vst [vmem:[#allocation94_spill] sm:$0xff] %v3639_v63  ;;  %v3664_v63 = vand.u32 4294901760, %v168_v43 }
  0xd5   :  { %5091 = vst [vmem:[#allocation96_spill] sm:$0xff] %v3648_v28  ;;  %1076 = vmatmul.f32.gmra.mxu3 %v3540_v42  ;;  %948 = vmatmul.f32.gmra.mxu1 %v3562_v25  ;;  %v4944_v13 = vand.u32 4294901760, %v3660_v16  ;;  %v513_v25 = vsub.f32 %v3648_v28, %v5098_v15 }
  0xd6   :  { %5092 = vst [vmem:[#allocation97_spill] sm:$0xff] %v3660_v16 }
  0xd7   :  { %763 = vmatmul.f32.gmra.mxu2 %v762_v40  ;;  %5093 = vst [vmem:[#allocation98_spill] sm:$0xff] %v3664_v63  ;;  %v3676_v40 = vand.u32 4294901760, %v267_v51  ;;  %v777_v57 = vsub.f32 %v3660_v16, %v4944_v13  ;;  %v46_v13 = vld [vmem:[%s4757_s0 + $0xe8] sm:$0xff] }
  0xd8   :  { %v1013_v8 = vpop.f32.mrf.mxu3  ;;  %v3666_v23 = vpop.f32.mrf.mxu0 }
  0xd9   :  { %5094 = vst [vmem:[#allocation99_spill] sm:$0xff] %v3666_v23  ;;  %v3668_v42 = vadd.f32 %v1013_v8, %v628_v24  ;;  %v3682_v24 = vsub.f32 %v168_v43, %v3664_v63  ;;  %v78_v8 = vld [vmem:[%s4757_s0 + $0x1e8] sm:$0xff]  ;;  %v514_v43 = vand.u32 4294901760, %v513_v25  ;;  %v778_v15 = vand.u32 4294901760, %v777_v57 }
  0xda   :  { %v636_v45 = vpop.f32.mrf.mxu2  ;;  %v3673_v14 = vpop.f32.mrf.mxu1  ;;  %5097 = vst [vmem:[#allocation102_spill] sm:$0xff] %v3676_v40  ;;  %v270_v28 = vsel %vm85_vm1, %v78_v8, 0 }
  0xdb   :  { %5095 = vst [vmem:[#allocation100_spill] sm:$0xff] %v3668_v42  ;;  %507 = vmatmul.f32.gmra.mxu0 %v506_v31  ;;  %v171_v42 = vsel %vm85_vm1, %v45_v26, 0  ;;  %v3694_v31 = vsub.f32 %v267_v51, %v3676_v40  ;;  %v5106_v8 = vand.u32 4294901760, %v3682_v24 }
  0xdc   :  { %5096 = vst [vmem:[#allocation101_spill] sm:$0xff] %v3673_v14  ;;  %v3698_v14 = vand.u32 4294901760, %v171_v42 }
  0xdd   :  { %5099 = vst [vmem:[#allocation103_spill] sm:$0xff] %v3682_v24  ;;  %1080 = vmatmul.f32.gmra.mxu3 %v3574_v44  ;;  %952 = vmatmul.f32.gmra.mxu1 %v3596_v58  ;;  %v4953_v25 = vand.u32 4294901760, %v3694_v31  ;;  %v521_v58 = vsub.f32 %v3682_v24, %v5106_v8 }
  0xde   :  { %5100 = vst [vmem:[#allocation104_spill] sm:$0xff] %v3694_v31 }
  0xdf   :  { %771 = vmatmul.f32.gmra.mxu2 %v770_v33  ;;  %5101 = vst [vmem:[#allocation105_spill] sm:$0xff] %v3698_v14  ;;  %v3710_v33 = vand.u32 4294901760, %v270_v28  ;;  %v785_v57 = vsub.f32 %v3694_v31, %v4953_v25  ;;  %v47_v25 = vld [vmem:[%s4757_s0 + $0xf0] sm:$0xff] }
  0xe0   :  { %v1017_v26 = vpop.f32.mrf.mxu3  ;;  %v3700_v23 = vpop.f32.mrf.mxu0 }
  0xe1   :  { %5102 = vst [vmem:[#allocation106_spill] sm:$0xff] %v3700_v23  ;;  %v3702_v44 = vadd.f32 %v1017_v26, %v636_v45  ;;  %v3716_v45 = vsub.f32 %v171_v42, %v3698_v14  ;;  %v79_v26 = vld [vmem:[%s4757_s0 + $0x1f0] sm:$0xff]  ;;  %v522_v42 = vand.u32 4294901760, %v521_v58  ;;  %v786_v58 = vand.u32 4294901760, %v785_v57  ;;  %v80_v57 = vld [vmem:[%s4757_s0 + $0x1f8] sm:$0xff] }
  0xe2   :  { %v644_v16 = vpop.f32.mrf.mxu2  ;;  %v3707_v51 = vpop.f32.mrf.mxu1  ;;  %5105 = vst [vmem:[#allocation109_spill] sm:$0xff] %v3710_v33  ;;  %v273_v24 = vsel %vm85_vm1, %v79_v26, 0 }
  0xe3   :  { %5103 = vst [vmem:[#allocation107_spill] sm:$0xff] %v3702_v44  ;;  %515 = vmatmul.f32.gmra.mxu0 %v514_v43  ;;  %v174_v44 = vsel %vm85_vm1, %v46_v13, 0  ;;  %v3728_v43 = vsub.f32 %v270_v28, %v3710_v33  ;;  %v4958_v8 = vand.u32 4294901760, %v3716_v45 }
  0xe4   :  { %5104 = vst [vmem:[#allocation108_spill] sm:$0xff] %v3707_v51  ;;  %v3732_v51 = vand.u32 4294901760, %v174_v44 }
  0xe5   :  { %5107 = vst [vmem:[#allocation110_spill] sm:$0xff] %v3716_v45  ;;  %1084 = vmatmul.f32.gmra.mxu3 %v3608_v18  ;;  %956 = vmatmul.f32.gmra.mxu1 %v3630_v32  ;;  %v4965_v26 = vand.u32 4294901760, %v3728_v43  ;;  %v529_v32 = vsub.f32 %v3716_v45, %v4958_v8 }
  0xe6   :  { %5108 = vst [vmem:[#allocation111_spill] sm:$0xff] %v3728_v43 }
  0xe7   :  { %779 = vmatmul.f32.gmra.mxu2 %v778_v15  ;;  %v3743_v15 = vand.u32 4294901760, %v273_v24  ;;  %v793_v8 = vsub.f32 %v3728_v43, %v4965_v26 }
  0xe8   :  { %v1021_v13 = vpop.f32.mrf.mxu3  ;;  %v3734_v23 = vpop.f32.mrf.mxu0 }
  0xe9   :  { %5109 = vst [vmem:[#allocation112_spill] sm:$0xff] %v3734_v23  ;;  %v3736_v18 = vadd.f32 %v1021_v13, %v644_v16  ;;  %v3750_v16 = vsub.f32 %v174_v44, %v3732_v51  ;;  %v177_v13 = vsel %vm85_vm1, %v47_v25, 0  ;;  %v530_v44 = vand.u32 4294901760, %v529_v32 }
  0xea   :  { %v652_v31 = vpop.f32.mrf.mxu2  ;;  %v3741_v28 = vpop.f32.mrf.mxu1  ;;  %5112 = vst [vmem:[#allocation115_spill] sm:$0xff] %v3743_v15  ;;  %v3765_v25 = vand.u32 4294901760, %v177_v13  ;;  %v794_v26 = vand.u32 4294901760, %v793_v8 }
  0xeb   :  { %5110 = vst [vmem:[#allocation113_spill] sm:$0xff] %v3736_v18  ;;  %523 = vmatmul.f32.gmra.mxu0 %v522_v42  ;;  %v3759_v42 = vsub.f32 %v273_v24, %v3743_v15  ;;  %v4968_v18 = vand.u32 4294901760, %v3750_v16  ;;  %v48_v24 = vld [vmem:[%s4757_s0 + $0xf8] sm:$0xff] }
  0xec   :  { %5111 = vst [vmem:[#allocation114_spill] sm:$0xff] %v3741_v28  ;;  %v276_v28 = vsel %vm85_vm1, %v80_v57, 0 }
  0xed   :  { %5113 = vst [vmem:[#allocation116_spill] sm:$0xff] %v3750_v16  ;;  %1088 = vmatmul.f32.gmra.mxu3 %v3642_v3  ;;  %960 = vmatmul.f32.gmra.mxu1 %v3664_v63  ;;  %v4975_v32 = vand.u32 4294901760, %v3759_v42  ;;  %v537_v43 = vsub.f32 %v3750_v16, %v4968_v18 }
  0xee   :  { %5114 = vst [vmem:[#allocation117_spill] sm:$0xff] %v3759_v42 }
  0xef   :  { %787 = vmatmul.f32.gmra.mxu2 %v786_v58  ;;  %v801_v8 = vsub.f32 %v3759_v42, %v4975_v32  ;;  %v538_v57 = vand.u32 4294901760, %v537_v43 }
  0xf0   :  { %v1025_v3 = vpop.f32.mrf.mxu3  ;;  %v3767_v45 = vpop.f32.mrf.mxu0 }
  0xf1   :  { %5115 = vst [vmem:[#allocation118_spill] sm:$0xff] %v3767_v45  ;;  %v3770_v23 = vadd.f32 %v1025_v3, %v652_v31  ;;  %v3781_v45 = vand.u32 4294901760, %v276_v28  ;;  %v3784_v3 = vsub.f32 %v177_v13, %v3765_v25  ;;  %v180_v31 = vsel %vm85_vm1, %v48_v24, 0 }
  0xf2   :  { %v660_v58 = vpop.f32.mrf.mxu2  ;;  %v3775_v63 = vpop.f32.mrf.mxu1 }
  0xf3   :  { %5116 = vst [vmem:[#allocation119_spill] sm:$0xff] %v3770_v23  ;;  %531 = vmatmul.f32.gmra.mxu0 %v530_v44  ;;  %v3793_v44 = vsub.f32 %v276_v28, %v3781_v45  ;;  %v4978_v18 = vand.u32 4294901760, %v3784_v3  ;;  %v3796_v23 = vand.u32 4294901760, %v180_v31 }
  0xf4   :  { %5117 = vst [vmem:[#allocation120_spill] sm:$0xff] %v3775_v63 }
  0xf5   :  { %5118 = vst [vmem:[#allocation121_spill] sm:$0xff] %v3781_v45  ;;  %1092 = vmatmul.f32.gmra.mxu3 %v3676_v40  ;;  %964 = vmatmul.f32.gmra.mxu1 %v3698_v14  ;;  %v802_v14 = vand.u32 4294901760, %v801_v8  ;;  %v545_v43 = vsub.f32 %v3784_v3, %v4978_v18  ;;  %v3809_v28 = vsub.f32 %v180_v31, %v3796_v23 }
  0xf6   :  { %5119 = vst [vmem:[#allocation122_spill] sm:$0xff] %v3793_v44 }
  0xf7   :  { %795 = vmatmul.f32.gmra.mxu2 %v794_v26  ;;  %v4979_v26 = vand.u32 4294901760, %v3793_v44  ;;  %v546_v8 = vand.u32 4294901760, %v545_v43 }
  0xf8   :  { %v1029_v13 = vpop.f32.mrf.mxu3  ;;  %v3798_v16 = vpop.f32.mrf.mxu0 }
  0xf9   :  { %v3800_v24 = vadd.f32 %v1029_v13, %v660_v58  ;;  %v809_v58 = vsub.f32 %v3793_v44, %v4979_v26 }
  0xfa   :  { %v668_v40 = vpop.f32.mrf.mxu2  ;;  %v3802_v63 = vpop.f32.mrf.mxu1 }
  0xfb   :  { %5120 = vst [vmem:[#allocation123_spill] sm:$0xff] %v3800_v24  ;;  %539 = vmatmul.f32.gmra.mxu0 %v538_v57  ;;  %v4982_v57 = vand.u32 4294901760, %v3809_v28  ;;  %v810_v24 = vand.u32 4294901760, %v809_v58 }
  0xfd   :  { %1096 = vmatmul.f32.gmra.mxu3 %v3710_v33  ;;  %968 = vmatmul.f32.gmra.mxu1 %v3732_v51  ;;  %v4025_v33 = vld [vmem:[%s4758_s2] ss:$0 sm:$0xff] }
  0xff   :  { %803 = vmatmul.f32.gmra.mxu2 %v802_v14  ;;  %v553_v14 = vsub.f32 %v3809_v28, %v4982_v57 }
 0x100   :  { %v1033_v13 = vpop.f32.mrf.mxu3  ;;  %v3817_v32 = vpop.f32.mrf.mxu0 }
 0x101   :  { %v3819_v42 = vadd.f32 %v1033_v13, %v668_v40  ;;  %v554_v43 = vand.u32 4294901760, %v553_v14 }
 0x102   :  { %v676_v18 = vpop.f32.mrf.mxu2  ;;  %v3821_v31 = vpop.f32.mrf.mxu1 }
 0x103   :  { %5121 = vst [vmem:[#allocation124_spill] sm:$0xff] %v3819_v42  ;;  %547 = vmatmul.f32.gmra.mxu0 %v546_v8 }
 0x105   :  { %1100 = vmatmul.f32.gmra.mxu3 %v3743_v15  ;;  %972 = vmatmul.f32.gmra.mxu1 %v3765_v25 }
 0x107   :  { %811 = vmatmul.f32.gmra.mxu2 %v810_v24 }
 0x108   :  { %v1037_v26 = vpop.f32.mrf.mxu3  ;;  %v3828_v44 = vpop.f32.mrf.mxu0 }
 0x109   :  { %v3830_v40 = vadd.f32 %v1037_v26, %v676_v18  ;;  %v5124_v18 = vand.u32 4294901760, %v2864_v36 }
 0x10a   :  { %v684_v13 = vpop.f32.mrf.mxu2  ;;  %v3832_v42 = vpop.f32.mrf.mxu1 }
 0x10b   :  { %5122 = vst [vmem:[#allocation125_spill] sm:$0xff] %v3830_v40  ;;  %555 = vmatmul.f32.gmra.mxu0 %v554_v43 }
 0x10d   :  { %1104 = vmatmul.f32.gmra.mxu3 %v3781_v45  ;;  %976 = vmatmul.f32.gmra.mxu1 %v3796_v23 }
 0x10f   :  { %1134 = vmatmul.f32.vlgmr.msrb.gmra.mxu2 %v2864_v36 }
 0x110   :  { %v1041_v58 = vpop.f32.mrf.mxu3  ;;  %v3837_v8 = vpop.f32.mrf.mxu0 }
 0x111   :  { %v3839_v24 = vadd.f32 %v1041_v58, %v684_v13  ;;  %v5126_v58 = vand.u32 4294901760, %v2896_v53 }
 0x112   :  { %v692_v14 = vpop.f32.mrf.mxu2  ;;  %v3841_v57 = vpop.f32.mrf.mxu1 }
 0x113   :  { %5123 = vst [vmem:[#allocation126_spill] sm:$0xff] %v3839_v24  ;;  %1887 = vmatmul.f32.vlgmr.msrb.gmra.mxu0 %v2855_v30 }
 0x115   :  { %1476 = vmatmul.f32.vlgmr.msrb.gmra.mxu3 %v5124_v18  ;;  %2164 = vmatmul.f32.vlgmr.msrb.gmra.mxu1 %v2855_v30 }
 0x117   :  { %1139 = vmatmul.f32.gmra.mxu2 %v2896_v53 }
 0x118   :  { %v1045_v26 = vpop.f32.mrf.mxu3  ;;  %v3848_v43 = vpop.f32.mrf.mxu0 }
 0x119   :  { %v3850_v45 = vadd.f32 %v1045_v26, %v692_v14  ;;  %v5128_v26 = vand.u32 4294901760, %v2912_v0 }
 0x11a   :  { %v700_v40 = vpop.f32.mrf.mxu2  ;;  %v3852_v13 = vpop.f32.mrf.mxu1 }
 0x11b   :  { %5125 = vst [vmem:[#allocation127_spill] sm:$0xff] %v3850_v45  ;;  %1891 = vmatmul.f32.gmra.mxu0 %v2880_v46 }
 0x11d   :  { %1482 = vmatmul.f32.gmra.mxu3 %v5126_v58  ;;  %2168 = vmatmul.f32.gmra.mxu1 %v2880_v46 }
 0x11f   :  { %1144 = vmatmul.f32.gmra.mxu2 %v2912_v0 }
 0x120   :  { %v1049_v30 = vpop.f32.mrf.mxu3  ;;  %v3859_v36 = vpop.f32.mrf.mxu0 }
 0x121   :  { %v3861_v18 = vadd.f32 %v1049_v30, %v700_v40  ;;  %v5130_v30 = vand.u32 4294901760, %v2950_v17 }
 0x122   :  { %v708_v24 = vpop.f32.mrf.mxu2  ;;  %v3863_v14 = vpop.f32.mrf.mxu1 }
 0x123   :  { %5127 = vst [vmem:[#allocation128_spill] sm:$0xff] %v3861_v18  ;;  %1895 = vmatmul.f32.gmra.mxu0 %v2898_v54 }
 0x125   :  { %1488 = vmatmul.f32.gmra.mxu3 %v5128_v26  ;;  %2172 = vmatmul.f32.gmra.mxu1 %v2898_v54 }
 0x127   :  { %1149 = vmatmul.f32.gmra.mxu2 %v2950_v17 }
 0x128   :  { %v1053_v46 = vpop.f32.mrf.mxu3  ;;  %v3870_v53 = vpop.f32.mrf.mxu0 }
 0x129   :  { %v3872_v58 = vadd.f32 %v1053_v46, %v708_v24  ;;  %v5132_v46 = vand.u32 4294901760, %v2980_v35 }
 0x12a   :  { %v716_v45 = vpop.f32.mrf.mxu2  ;;  %v3874_v40 = vpop.f32.mrf.mxu1 }
 0x12b   :  { %5129 = vst [vmem:[#allocation129_spill] sm:$0xff] %v3872_v58  ;;  %1899 = vmatmul.f32.gmra.mxu0 %v2931_v12 }
 0x12d   :  { %1494 = vmatmul.f32.gmra.mxu3 %v5130_v30  ;;  %2176 = vmatmul.f32.gmra.mxu1 %v2931_v12 }
 0x12f   :  { %1154 = vmatmul.f32.gmra.mxu2 %v2980_v35 }
 0x130   :  { %v1057_v54 = vpop.f32.mrf.mxu3  ;;  %v3881_v0 = vpop.f32.mrf.mxu0 }
 0x131   :  { %v3883_v26 = vadd.f32 %v1057_v54, %v716_v45  ;;  %v5134_v54 = vand.u32 4294901760, %v3008_v56 }
 0x132   :  { %v724_v18 = vpop.f32.mrf.mxu2  ;;  %v3885_v24 = vpop.f32.mrf.mxu1 }
 0x133   :  { %5131 = vst [vmem:[#allocation130_spill] sm:$0xff] %v3883_v26  ;;  %1903 = vmatmul.f32.gmra.mxu0 %v2968_v27 }
 0x135   :  { %1500 = vmatmul.f32.gmra.mxu3 %v5132_v46  ;;  %2180 = vmatmul.f32.gmra.mxu1 %v2968_v27 }
 0x137   :  { %1159 = vmatmul.f32.gmra.mxu2 %v3008_v56 }
 0x138   :  { %v1061_v12 = vpop.f32.mrf.mxu3  ;;  %v3892_v17 = vpop.f32.mrf.mxu0 }
 0x139   :  { %v3894_v30 = vadd.f32 %v1061_v12, %v724_v18  ;;  %v5136_v12 = vand.u32 4294901760, %v3036_v20 }
 0x13a   :  { %v732_v58 = vpop.f32.mrf.mxu2  ;;  %v3896_v45 = vpop.f32.mrf.mxu1 }
 0x13b   :  { %5133 = vst [vmem:[#allocation131_spill] sm:$0xff] %v3894_v30  ;;  %1907 = vmatmul.f32.gmra.mxu0 %v2996_v47 }
 0x13d   :  { %1506 = vmatmul.f32.gmra.mxu3 %v5134_v54  ;;  %2184 = vmatmul.f32.gmra.mxu1 %v2996_v47 }
 0x13f   :  { %1164 = vmatmul.f32.gmra.mxu2 %v3036_v20 }
 0x140   :  { %v1065_v27 = vpop.f32.mrf.mxu3  ;;  %v3903_v35 = vpop.f32.mrf.mxu0 }
 0x141   :  { %v3905_v46 = vadd.f32 %v1065_v27, %v732_v58  ;;  %v5138_v27 = vand.u32 4294901760, %v3064_v55 }
 0x142   :  { %v740_v26 = vpop.f32.mrf.mxu2  ;;  %v3907_v18 = vpop.f32.mrf.mxu1 }
 0x143   :  { %5135 = vst [vmem:[#allocation132_spill] sm:$0xff] %v3905_v46  ;;  %1911 = vmatmul.f32.gmra.mxu0 %v3024_v6 }
 0x145   :  { %1512 = vmatmul.f32.gmra.mxu3 %v5136_v12  ;;  %2188 = vmatmul.f32.gmra.mxu1 %v3024_v6 }
 0x147   :  { %1169 = vmatmul.f32.gmra.mxu2 %v3064_v55 }
 0x148   :  { %v1069_v47 = vpop.f32.mrf.mxu3  ;;  %v3914_v56 = vpop.f32.mrf.mxu0 }
 0x149   :  { %v3916_v54 = vadd.f32 %v1069_v47, %v740_v26  ;;  %v5140_v47 = vand.u32 4294901760, %v3092_v41 }
 0x14a   :  { %v748_v30 = vpop.f32.mrf.mxu2  ;;  %v3918_v58 = vpop.f32.mrf.mxu1 }
 0x14b   :  { %5137 = vst [vmem:[#allocation133_spill] sm:$0xff] %v3916_v54  ;;  %1915 = vmatmul.f32.gmra.mxu0 %v3052_v38 }
 0x14d   :  { %1518 = vmatmul.f32.gmra.mxu3 %v5138_v27  ;;  %2192 = vmatmul.f32.gmra.mxu1 %v3052_v38 }
 0x14f   :  { %1174 = vmatmul.f32.gmra.mxu2 %v3092_v41 }
 0x150   :  { %v1073_v6 = vpop.f32.mrf.mxu3  ;;  %v3925_v20 = vpop.f32.mrf.mxu0 }
 0x151   :  { %v3927_v12 = vadd.f32 %v1073_v6, %v748_v30  ;;  %v5142_v6 = vand.u32 4294901760, %v3120_v29 }
 0x152   :  { %v756_v46 = vpop.f32.mrf.mxu2  ;;  %v3929_v26 = vpop.f32.mrf.mxu1 }
 0x153   :  { %5139 = vst [vmem:[#allocation134_spill] sm:$0xff] %v3927_v12  ;;  %1919 = vmatmul.f32.gmra.mxu0 %v3080_v19 }
 0x155   :  { %1524 = vmatmul.f32.gmra.mxu3 %v5140_v47  ;;  %2196 = vmatmul.f32.gmra.mxu1 %v3080_v19 }
 0x157   :  { %1179 = vmatmul.f32.gmra.mxu2 %v3120_v29 }
 0x158   :  { %v1077_v38 = vpop.f32.mrf.mxu3  ;;  %v3936_v55 = vpop.f32.mrf.mxu0 }
 0x159   :  { %v3938_v27 = vadd.f32 %v1077_v38, %v756_v46  ;;  %v5144_v38 = vand.u32 4294901760, %v3148_v22 }
 0x15a   :  { %v764_v54 = vpop.f32.mrf.mxu2  ;;  %v3940_v30 = vpop.f32.mrf.mxu1 }
 0x15b   :  { %5141 = vst [vmem:[#allocation135_spill] sm:$0xff] %v3938_v27  ;;  %1923 = vmatmul.f32.gmra.mxu0 %v3108_v9 }
 0x15d   :  { %1530 = vmatmul.f32.gmra.mxu3 %v5142_v6  ;;  %2200 = vmatmul.f32.gmra.mxu1 %v3108_v9 }
 0x15f   :  { %1184 = vmatmul.f32.gmra.mxu2 %v3148_v22 }
 0x160   :  { %v1081_v19 = vpop.f32.mrf.mxu3  ;;  %v3947_v41 = vpop.f32.mrf.mxu0 }
 0x161   :  { %v3949_v47 = vadd.f32 %v1081_v19, %v764_v54  ;;  %v5146_v19 = vand.u32 4294901760, %v3176_v49 }
 0x162   :  { %v772_v12 = vpop.f32.mrf.mxu2  ;;  %v3951_v46 = vpop.f32.mrf.mxu1 }
 0x163   :  { %5143 = vst [vmem:[#allocation136_spill] sm:$0xff] %v3949_v47  ;;  %1927 = vmatmul.f32.gmra.mxu0 %v3136_v39 }
 0x165   :  { %1536 = vmatmul.f32.gmra.mxu3 %v5144_v38  ;;  %2204 = vmatmul.f32.gmra.mxu1 %v3136_v39 }
 0x167   :  { %1189 = vmatmul.f32.gmra.mxu2 %v3176_v49 }
 0x168   :  { %v1085_v9 = vpop.f32.mrf.mxu3  ;;  %v3958_v29 = vpop.f32.mrf.mxu0 }
 0x169   :  { %v3960_v6 = vadd.f32 %v1085_v9, %v772_v12  ;;  %v5148_v9 = vand.u32 4294901760, %v3204_v7 }
 0x16a   :  { %v780_v27 = vpop.f32.mrf.mxu2  ;;  %v3962_v54 = vpop.f32.mrf.mxu1 }
 0x16b   :  { %5145 = vst [vmem:[#allocation137_spill] sm:$0xff] %v3960_v6  ;;  %1931 = vmatmul.f32.gmra.mxu0 %v3164_v34 }
 0x16d   :  { %1542 = vmatmul.f32.gmra.mxu3 %v5146_v19  ;;  %2208 = vmatmul.f32.gmra.mxu1 %v3164_v34 }
 0x16f   :  { %1194 = vmatmul.f32.gmra.mxu2 %v3204_v7 }
 0x170   :  { %v1089_v39 = vpop.f32.mrf.mxu3  ;;  %v3969_v22 = vpop.f32.mrf.mxu0 }
 0x171   :  { %v3971_v38 = vadd.f32 %v1089_v39, %v780_v27  ;;  %v5150_v39 = vand.u32 4294901760, %v3232_v2 }
 0x172   :  { %v788_v47 = vpop.f32.mrf.mxu2  ;;  %v3973_v12 = vpop.f32.mrf.mxu1 }
 0x173   :  { %5147 = vst [vmem:[#allocation138_spill] sm:$0xff] %v3971_v38  ;;  %1935 = vmatmul.f32.gmra.mxu0 %v3192_v11 }
 0x175   :  { %1548 = vmatmul.f32.gmra.mxu3 %v5148_v9  ;;  %2212 = vmatmul.f32.gmra.mxu1 %v3192_v11 }
 0x177   :  { %1199 = vmatmul.f32.gmra.mxu2 %v3232_v2 }
 0x178   :  { %v1093_v34 = vpop.f32.mrf.mxu3  ;;  %v3980_v49 = vpop.f32.mrf.mxu0 }
 0x179   :  { %v3982_v19 = vadd.f32 %v1093_v34, %v788_v47  ;;  %v5152_v34 = vand.u32 4294901760, %v3260_v52 }
 0x17a   :  { %v796_v6 = vpop.f32.mrf.mxu2  ;;  %v3984_v27 = vpop.f32.mrf.mxu1 }
 0x17b   :  { %5149 = vst [vmem:[#allocation139_spill] sm:$0xff] %v3982_v19  ;;  %1939 = vmatmul.f32.gmra.mxu0 %v3220_v59 }
 0x17d   :  { %1554 = vmatmul.f32.gmra.mxu3 %v5150_v39  ;;  %2216 = vmatmul.f32.gmra.mxu1 %v3220_v59 }
 0x17f   :  { %1204 = vmatmul.f32.gmra.mxu2 %v3260_v52 }
 0x180   :  { %v1097_v11 = vpop.f32.mrf.mxu3  ;;  %v3991_v7 = vpop.f32.mrf.mxu0 }
 0x181   :  { %v3993_v9 = vadd.f32 %v1097_v11, %v796_v6  ;;  %v5156_v11 = vand.u32 4294901760, %v3288_v48 }
 0x182   :  { %v804_v38 = vpop.f32.mrf.mxu2  ;;  %v3995_v47 = vpop.f32.mrf.mxu1 }
 0x183   :  { %5151 = vst [vmem:[#allocation140_spill] sm:$0xff] %v3993_v9  ;;  %1943 = vmatmul.f32.gmra.mxu0 %v3248_v61 }
 0x185   :  { %1560 = vmatmul.f32.gmra.mxu3 %v5152_v34  ;;  %2220 = vmatmul.f32.gmra.mxu1 %v3248_v61 }
 0x187   :  { %1209 = vmatmul.f32.gmra.mxu2 %v3288_v48 }
 0x188   :  { %v1101_v59 = vpop.f32.mrf.mxu3  ;;  %v4002_v2 = vpop.f32.mrf.mxu0 }
 0x189   :  { %5153 = vst [vmem:[#allocation141_spill] sm:$0xff] %v4002_v2  ;;  %v4004_v39 = vadd.f32 %v1101_v59, %v804_v38  ;;  %v854_v38 = vadd.f32 %v3367_v5, %v3362_v21  ;;  %v5158_v59 = vand.u32 4294901760, %v3316_v37  ;;  %v858_v5 = vadd.f32 %v3401_v60, %v3394_v50 }
 0x18a   :  { %v812_v19 = vpop.f32.mrf.mxu2  ;;  %v4006_v6 = vpop.f32.mrf.mxu1  ;;  %v5159_v21 = vand.u32 4294901760, %v3344_v4 }
 0x18b   :  { %5154 = vst [vmem:[#allocation142_spill] sm:$0xff] %v4004_v39  ;;  %1947 = vmatmul.f32.gmra.mxu0 %v3276_v1 }
 0x18c   :  { %5155 = vst [vmem:[#allocation143_spill] sm:$0xff] %v4006_v6  ;;  %v5161_v6 = vld [vmem:[#allocation40_spill] sm:$0xff] }
 0x18d   :  { %1566 = vmatmul.f32.gmra.mxu3 %v5156_v11  ;;  %2224 = vmatmul.f32.gmra.mxu1 %v3276_v1 }
 0x18f   :  { %1214 = vmatmul.f32.gmra.mxu2 %v3316_v37  ;;  %v4033_v37 = vld [vmem:[%s4759_s3] ss:$0 sm:$0xff] }
 0x190   :  { %v1105_v61 = vpop.f32.mrf.mxu3  ;;  %v1888_v52 = vpop.f32.mrf.mxu0 }
 0x191   :  { %v4013_v34 = vadd.f32 %v1105_v61, %v812_v19 }
 0x192   :  { %v1135_v9 = vpop.f32.mrf.mxu2  ;;  %v2165_v15 = vpop.f32.mrf.mxu1 }
 0x193   :  { %5157 = vst [vmem:[#allocation144_spill] sm:$0xff] %v4013_v34  ;;  %1951 = vmatmul.f32.gmra.mxu0 %v3304_v10  ;;  %v1136_v48 = vadd.f32 %v1135_v9, %v854_v38 }
 0x195   :  { %1572 = vmatmul.f32.gmra.mxu3 %v5158_v59  ;;  %2228 = vmatmul.f32.gmra.mxu1 %v3304_v10 }
 0x197   :  { %1219 = vmatmul.f32.gmra.mxu2 %v3344_v4  ;;  %v5162_v4 = vld [vmem:[#allocation50_spill] sm:$0xff] }
 0x198   :  { %v1477_v1 = vpop.f32.mrf.mxu3  ;;  %v1892_v11 = vpop.f32.mrf.mxu0 }
 0x199   :  { %v1478_v39 = vadd.f32 %v1477_v1, %v1136_v48 }
 0x19a   :  { %v1140_v19 = vpop.f32.mrf.mxu2  ;;  %v2169_v61 = vpop.f32.mrf.mxu1 }
 0x19b   :  { %v1889_v34 = vadd.f32 %v1888_v52, %v1478_v39  ;;  %1955 = vmatmul.f32.gmra.mxu0 %v3332_v62  ;;  %v1141_v9 = vadd.f32 %v1140_v19, %v858_v5  ;;  %v5160_v52 = vld [vmem:[#allocation42_spill] sm:$0xff] }
 0x19d   :  { %v2166_v10 = vadd.f32 %v2165_v15, %v1889_v34  ;;  %1578 = vmatmul.f32.gmra.mxu3 %v5159_v21  ;;  %2232 = vmatmul.f32.gmra.mxu1 %v3332_v62  ;;  %v5163_v21 = vld [vmem:[#allocation52_spill] sm:$0xff] }
 0x19e   :  { %v862_v62 = vadd.f32 %v5163_v21, %v5162_v4  ;;  %v5167_v21 = vld [vmem:[#allocation57_spill] sm:$0xff] }
 0x19f   :  { %v2424_v39 = vmul.f32 %v4025_v33, %v2166_v10  ;;  %1224 = vmatmul.f32.gmra.mxu2 %v5160_v52  ;;  %v5164_v10 = vand.u32 4294901760, %v5160_v52 }
 0x1a0   :  { %v1483_v38 = vpop.f32.mrf.mxu3  ;;  %v1896_v59 = vpop.f32.mrf.mxu0 }
 0x1a1   :  { %v2492_v50 = vadd.f32 %v4033_v37, %v2424_v39  ;;  %v1484_v60 = vadd.f32 %v1483_v38, %v1141_v9  ;;  %v5165_v39 = vld [vmem:[#allocation47_spill] sm:$0xff] }
 0x1a2   :  { %v1145_v15 = vpop.f32.mrf.mxu2  ;;  %v2173_v34 = vpop.f32.mrf.mxu1 }
 0x1a3   :  { %v2556_v48 = vmax.f32 %v2492_v50, 0.0  ;;  %v1893_v1 = vadd.f32 %v1892_v11, %v1484_v60  ;;  %1959 = vmatmul.f32.gmra.mxu0 %v5161_v6  ;;  %v1146_v9 = vadd.f32 %v1145_v15, %v862_v62  ;;  %v5169_v62 = vand.u32 4294901760, %v5165_v39 }
 0x1a5   :  { %v2620_v19 = vmin.f32 %v2556_v48, 6.0  ;;  %v2170_v5 = vadd.f32 %v2169_v61, %v1893_v1  ;;  %1584 = vmatmul.f32.gmra.mxu3 %v5164_v10  ;;  %2236 = vmatmul.f32.gmra.mxu1 %v5161_v6  ;;  %v5166_v6 = vld [vmem:[#allocation44_spill] sm:$0xff]  ;;  %v5168_v10 = vld [vmem:[#allocation59_spill] sm:$0xff] }
 0x1a6   :  { %v866_v2 = vadd.f32 %v5168_v10, %v5167_v21  ;;  %v5172_v21 = vld [vmem:[#allocation64_spill] sm:$0xff]  ;;  %v5173_v10 = vld [vmem:[#allocation66_spill] sm:$0xff] }
 0x1a7   :  { %2685 = vst.msk [vmem:[%s4760_s4] sm:$0xff] %vm2684_vm2, %v2620_v19  ;;  %v2425_v11 = vmul.f32 %v4025_v33, %v2170_v5  ;;  %1229 = vmatmul.f32.gmra.mxu2 %v5165_v39 }
 0x1a8   :  { %v1489_v38 = vpop.f32.mrf.mxu3  ;;  %v1900_v50 = vpop.f32.mrf.mxu0 }
 0x1a9   :  { %v2493_v60 = vadd.f32 %v4033_v37, %v2425_v11  ;;  %v1490_v61 = vadd.f32 %v1489_v38, %v1146_v9  ;;  %v5170_v9 = vld [vmem:[#allocation54_spill] sm:$0xff] }
 0x1aa   :  { %v1150_v48 = vpop.f32.mrf.mxu2  ;;  %v2177_v52 = vpop.f32.mrf.mxu1 }
 0x1ab   :  { %v2557_v1 = vmax.f32 %v2493_v60, 0.0  ;;  %v1897_v4 = vadd.f32 %v1896_v59, %v1490_v61  ;;  %1963 = vmatmul.f32.gmra.mxu0 %v5166_v6  ;;  %v1151_v5 = vadd.f32 %v1150_v48, %v866_v2  ;;  %v5174_v48 = vand.u32 4294901760, %v5170_v9 }
 0x1ad   :  { %v2621_v19 = vmin.f32 %v2557_v1, 6.0  ;;  %v2174_v15 = vadd.f32 %v2173_v34, %v1897_v4  ;;  %1590 = vmatmul.f32.gmra.mxu3 %v5169_v62  ;;  %2240 = vmatmul.f32.gmra.mxu1 %v5166_v6  ;;  %v5171_v6 = vld [vmem:[#allocation49_spill] sm:$0xff]  ;;  %v870_v62 = vadd.f32 %v5173_v10, %v5172_v21  ;;  %v5177_v21 = vld [vmem:[#allocation71_spill] sm:$0xff] }
 0x1ae   :  { %v5178_v10 = vld [vmem:[#allocation73_spill] sm:$0xff] }
 0x1af   :  { %2686 = vst.msk [vmem:[%s4760_s4 + $0x8] sm:$0xff] %vm2684_vm2, %v2621_v19  ;;  %v2426_v59 = vmul.f32 %v4025_v33, %v2174_v15  ;;  %1234 = vmatmul.f32.gmra.mxu2 %v5170_v9 }
 0x1b0   :  { %v1495_v11 = vpop.f32.mrf.mxu3  ;;  %v1904_v38 = vpop.f32.mrf.mxu0 }
 0x1b1   :  { %v2494_v60 = vadd.f32 %v4033_v37, %v2426_v59  ;;  %v1496_v34 = vadd.f32 %v1495_v11, %v1151_v5  ;;  %v5175_v5 = vld [vmem:[#allocation61_spill] sm:$0xff] }
 0x1b2   :  { %v1155_v61 = vpop.f32.mrf.mxu2  ;;  %v2181_v39 = vpop.f32.mrf.mxu1 }
 0x1b3   :  { %v2558_v1 = vmax.f32 %v2494_v60, 0.0  ;;  %v1901_v4 = vadd.f32 %v1900_v50, %v1496_v34  ;;  %1967 = vmatmul.f32.gmra.mxu0 %v5171_v6  ;;  %v1156_v15 = vadd.f32 %v1155_v61, %v870_v62  ;;  %v5179_v62 = vand.u32 4294901760, %v5175_v5 }
 0x1b5   :  { %v2622_v19 = vmin.f32 %v2558_v1, 6.0  ;;  %v2178_v2 = vadd.f32 %v2177_v52, %v1901_v4  ;;  %1596 = vmatmul.f32.gmra.mxu3 %v5174_v48  ;;  %2244 = vmatmul.f32.gmra.mxu1 %v5171_v6  ;;  %v5176_v6 = vld [vmem:[#allocation56_spill] sm:$0xff]  ;;  %v874_v48 = vadd.f32 %v5178_v10, %v5177_v21  ;;  %v5182_v21 = vld [vmem:[#allocation78_spill] sm:$0xff] }
 0x1b6   :  { %v5183_v10 = vld [vmem:[#allocation80_spill] sm:$0xff] }
 0x1b7   :  { %2687 = vst.msk [vmem:[%s4760_s4 + $0x10] sm:$0xff] %vm2684_vm2, %v2622_v19  ;;  %v2427_v50 = vmul.f32 %v4025_v33, %v2178_v2  ;;  %1239 = vmatmul.f32.gmra.mxu2 %v5175_v5 }
 0x1b8   :  { %v1501_v59 = vpop.f32.mrf.mxu3  ;;  %v1908_v11 = vpop.f32.mrf.mxu0 }
 0x1b9   :  { %v2495_v60 = vadd.f32 %v4033_v37, %v2427_v50  ;;  %v1502_v52 = vadd.f32 %v1501_v59, %v1156_v15  ;;  %v5180_v15 = vld [vmem:[#allocation68_spill] sm:$0xff] }
 0x1ba   :  { %v1160_v34 = vpop.f32.mrf.mxu2  ;;  %v2185_v9 = vpop.f32.mrf.mxu1 }
 0x1bb   :  { %v2559_v1 = vmax.f32 %v2495_v60, 0.0  ;;  %v1905_v4 = vadd.f32 %v1904_v38, %v1502_v52  ;;  %1971 = vmatmul.f32.gmra.mxu0 %v5176_v6  ;;  %v1161_v2 = vadd.f32 %v1160_v34, %v874_v48  ;;  %v5184_v48 = vand.u32 4294901760, %v5180_v15 }
 0x1bd   :  { %v2623_v19 = vmin.f32 %v2559_v1, 6.0  ;;  %v2182_v61 = vadd.f32 %v2181_v39, %v1905_v4  ;;  %1602 = vmatmul.f32.gmra.mxu3 %v5179_v62  ;;  %2248 = vmatmul.f32.gmra.mxu1 %v5176_v6  ;;  %v5181_v6 = vld [vmem:[#allocation63_spill] sm:$0xff]  ;;  %v878_v62 = vadd.f32 %v5183_v10, %v5182_v21  ;;  %v5187_v21 = vld [vmem:[#allocation85_spill] sm:$0xff] }
 0x1be   :  { %v5188_v10 = vld [vmem:[#allocation87_spill] sm:$0xff] }
 0x1bf   :  { %2688 = vst.msk [vmem:[%s4760_s4 + $0x18] sm:$0xff] %vm2684_vm2, %v2623_v19  ;;  %v2428_v38 = vmul.f32 %v4025_v33, %v2182_v61  ;;  %1244 = vmatmul.f32.gmra.mxu2 %v5180_v15 }
 0x1c0   :  { %v1507_v50 = vpop.f32.mrf.mxu3  ;;  %v1912_v59 = vpop.f32.mrf.mxu0 }
 0x1c1   :  { %v2496_v60 = vadd.f32 %v4033_v37, %v2428_v38  ;;  %v1508_v39 = vadd.f32 %v1507_v50, %v1161_v2  ;;  %v5185_v2 = vld [vmem:[#allocation75_spill] sm:$0xff] }
 0x1c2   :  { %v1165_v52 = vpop.f32.mrf.mxu2  ;;  %v2189_v5 = vpop.f32.mrf.mxu1 }
 0x1c3   :  { %v2560_v1 = vmax.f32 %v2496_v60, 0.0  ;;  %v1909_v4 = vadd.f32 %v1908_v11, %v1508_v39  ;;  %1975 = vmatmul.f32.gmra.mxu0 %v5181_v6  ;;  %v1166_v61 = vadd.f32 %v1165_v52, %v878_v62  ;;  %v5189_v62 = vand.u32 4294901760, %v5185_v2 }
 0x1c5   :  { %v2624_v19 = vmin.f32 %v2560_v1, 6.0  ;;  %v2186_v34 = vadd.f32 %v2185_v9, %v1909_v4  ;;  %1608 = vmatmul.f32.gmra.mxu3 %v5184_v48  ;;  %2252 = vmatmul.f32.gmra.mxu1 %v5181_v6  ;;  %v5186_v6 = vld [vmem:[#allocation70_spill] sm:$0xff]  ;;  %v882_v48 = vadd.f32 %v5188_v10, %v5187_v21  ;;  %v5192_v21 = vld [vmem:[#allocation92_spill] sm:$0xff] }
 0x1c6   :  { %v5193_v10 = vld [vmem:[#allocation94_spill] sm:$0xff] }
 0x1c7   :  { %2689 = vst.msk [vmem:[%s4760_s4 + $0x20] sm:$0xff] %vm2684_vm2, %v2624_v19  ;;  %v2429_v11 = vmul.f32 %v4025_v33, %v2186_v34  ;;  %1249 = vmatmul.f32.gmra.mxu2 %v5185_v2 }
 0x1c8   :  { %v1513_v38 = vpop.f32.mrf.mxu3  ;;  %v1916_v50 = vpop.f32.mrf.mxu0 }
 0x1c9   :  { %v2497_v60 = vadd.f32 %v4033_v37, %v2429_v11  ;;  %v1514_v9 = vadd.f32 %v1513_v38, %v1166_v61  ;;  %v5190_v61 = vld [vmem:[#allocation82_spill] sm:$0xff] }
 0x1ca   :  { %v1170_v39 = vpop.f32.mrf.mxu2  ;;  %v2193_v15 = vpop.f32.mrf.mxu1 }
 0x1cb   :  { %v2561_v1 = vmax.f32 %v2497_v60, 0.0  ;;  %v1913_v4 = vadd.f32 %v1912_v59, %v1514_v9  ;;  %1979 = vmatmul.f32.gmra.mxu0 %v5186_v6  ;;  %v1171_v34 = vadd.f32 %v1170_v39, %v882_v48  ;;  %v5194_v48 = vand.u32 4294901760, %v5190_v61 }
 0x1cd   :  { %v2625_v19 = vmin.f32 %v2561_v1, 6.0  ;;  %v2190_v52 = vadd.f32 %v2189_v5, %v1913_v4  ;;  %1614 = vmatmul.f32.gmra.mxu3 %v5189_v62  ;;  %2256 = vmatmul.f32.gmra.mxu1 %v5186_v6  ;;  %v5191_v6 = vld [vmem:[#allocation77_spill] sm:$0xff]  ;;  %v886_v62 = vadd.f32 %v5193_v10, %v5192_v21  ;;  %v5197_v21 = vld [vmem:[#allocation99_spill] sm:$0xff] }
 0x1ce   :  { %v5198_v10 = vld [vmem:[#allocation101_spill] sm:$0xff] }
 0x1cf   :  { %2690 = vst.msk [vmem:[%s4760_s4 + $0x28] sm:$0xff] %vm2684_vm2, %v2625_v19  ;;  %v2430_v59 = vmul.f32 %v4025_v33, %v2190_v52  ;;  %1254 = vmatmul.f32.gmra.mxu2 %v5190_v61 }
 0x1d0   :  { %v1519_v11 = vpop.f32.mrf.mxu3  ;;  %v1920_v38 = vpop.f32.mrf.mxu0 }
 0x1d1   :  { %v2498_v60 = vadd.f32 %v4033_v37, %v2430_v59  ;;  %v1520_v5 = vadd.f32 %v1519_v11, %v1171_v34  ;;  %v5195_v34 = vld [vmem:[#allocation89_spill] sm:$0xff] }
 0x1d2   :  { %v1175_v9 = vpop.f32.mrf.mxu2  ;;  %v2197_v2 = vpop.f32.mrf.mxu1 }
 0x1d3   :  { %v2562_v1 = vmax.f32 %v2498_v60, 0.0  ;;  %v1917_v4 = vadd.f32 %v1916_v50, %v1520_v5  ;;  %1983 = vmatmul.f32.gmra.mxu0 %v5191_v6  ;;  %v1176_v52 = vadd.f32 %v1175_v9, %v886_v62  ;;  %v5199_v62 = vand.u32 4294901760, %v5195_v34 }
 0x1d5   :  { %v2626_v19 = vmin.f32 %v2562_v1, 6.0  ;;  %v2194_v39 = vadd.f32 %v2193_v15, %v1917_v4  ;;  %1620 = vmatmul.f32.gmra.mxu3 %v5194_v48  ;;  %2260 = vmatmul.f32.gmra.mxu1 %v5191_v6  ;;  %v5196_v6 = vld [vmem:[#allocation84_spill] sm:$0xff]  ;;  %v890_v48 = vadd.f32 %v5198_v10, %v5197_v21  ;;  %v5202_v21 = vld [vmem:[#allocation106_spill] sm:$0xff] }
 0x1d6   :  { %v5203_v10 = vld [vmem:[#allocation108_spill] sm:$0xff] }
 0x1d7   :  { %2691 = vst.msk [vmem:[%s4760_s4 + $0x30] sm:$0xff] %vm2684_vm2, %v2626_v19  ;;  %v2431_v50 = vmul.f32 %v4025_v33, %v2194_v39  ;;  %1259 = vmatmul.f32.gmra.mxu2 %v5195_v34 }
 0x1d8   :  { %v1525_v59 = vpop.f32.mrf.mxu3  ;;  %v1924_v11 = vpop.f32.mrf.mxu0 }
 0x1d9   :  { %v2499_v60 = vadd.f32 %v4033_v37, %v2431_v50  ;;  %v1526_v15 = vadd.f32 %v1525_v59, %v1176_v52  ;;  %v5200_v52 = vld [vmem:[#allocation96_spill] sm:$0xff] }
 0x1da   :  { %v1180_v5 = vpop.f32.mrf.mxu2  ;;  %v2201_v61 = vpop.f32.mrf.mxu1 }
 0x1db   :  { %v2563_v1 = vmax.f32 %v2499_v60, 0.0  ;;  %v1921_v4 = vadd.f32 %v1920_v38, %v1526_v15  ;;  %1987 = vmatmul.f32.gmra.mxu0 %v5196_v6  ;;  %v1181_v39 = vadd.f32 %v1180_v5, %v890_v48  ;;  %v5204_v48 = vand.u32 4294901760, %v5200_v52 }
 0x1dd   :  { %v2627_v19 = vmin.f32 %v2563_v1, 6.0  ;;  %v2198_v9 = vadd.f32 %v2197_v2, %v1921_v4  ;;  %1626 = vmatmul.f32.gmra.mxu3 %v5199_v62  ;;  %2264 = vmatmul.f32.gmra.mxu1 %v5196_v6  ;;  %v5201_v6 = vld [vmem:[#allocation91_spill] sm:$0xff]  ;;  %v894_v62 = vadd.f32 %v5203_v10, %v5202_v21  ;;  %v5207_v21 = vld [vmem:[#allocation112_spill] sm:$0xff]  ;;  %v5208_v10 = vld [vmem:[#allocation114_spill] sm:$0xff] }
 0x1df   :  { %2692 = vst.msk [vmem:[%s4760_s4 + $0x38] sm:$0xff] %vm2684_vm2, %v2627_v19  ;;  %v2432_v38 = vmul.f32 %v4025_v33, %v2198_v9  ;;  %1264 = vmatmul.f32.gmra.mxu2 %v5200_v52 }
 0x1e0   :  { %v1531_v50 = vpop.f32.mrf.mxu3  ;;  %v1928_v59 = vpop.f32.mrf.mxu0 }
 0x1e1   :  { %v2500_v60 = vadd.f32 %v4033_v37, %v2432_v38  ;;  %v1532_v2 = vadd.f32 %v1531_v50, %v1181_v39  ;;  %v5205_v39 = vld [vmem:[#allocation103_spill] sm:$0xff] }
 0x1e2   :  { %v1185_v15 = vpop.f32.mrf.mxu2  ;;  %v2205_v34 = vpop.f32.mrf.mxu1 }
 0x1e3   :  { %v2564_v1 = vmax.f32 %v2500_v60, 0.0  ;;  %v1925_v4 = vadd.f32 %v1924_v11, %v1532_v2  ;;  %1991 = vmatmul.f32.gmra.mxu0 %v5201_v6  ;;  %v1186_v9 = vadd.f32 %v1185_v15, %v894_v62  ;;  %v5209_v62 = vand.u32 4294901760, %v5205_v39 }
 0x1e5   :  { %v2628_v19 = vmin.f32 %v2564_v1, 6.0  ;;  %v2202_v5 = vadd.f32 %v2201_v61, %v1925_v4  ;;  %1632 = vmatmul.f32.gmra.mxu3 %v5204_v48  ;;  %2268 = vmatmul.f32.gmra.mxu1 %v5201_v6  ;;  %v5206_v6 = vld [vmem:[#allocation98_spill] sm:$0xff]  ;;  %v898_v48 = vadd.f32 %v5208_v10, %v5207_v21  ;;  %v5213_v10 = vld [vmem:[#allocation120_spill] sm:$0xff] }
 0x1e6   :  { %v5212_v21 = vld [vmem:[#allocation118_spill] sm:$0xff] }
 0x1e7   :  { %2693 = vst.msk [vmem:[%s4760_s4 + $0x40] sm:$0xff] %vm2684_vm2, %v2628_v19  ;;  %v2433_v11 = vmul.f32 %v4025_v33, %v2202_v5  ;;  %1269 = vmatmul.f32.gmra.mxu2 %v5205_v39 }
 0x1e8   :  { %v1537_v38 = vpop.f32.mrf.mxu3  ;;  %v1932_v50 = vpop.f32.mrf.mxu0 }
 0x1e9   :  { %v2501_v60 = vadd.f32 %v4033_v37, %v2433_v11  ;;  %v1538_v61 = vadd.f32 %v1537_v38, %v1186_v9  ;;  %v5210_v9 = vld [vmem:[#allocation110_spill] sm:$0xff] }
 0x1ea   :  { %v1190_v2 = vpop.f32.mrf.mxu2  ;;  %v2209_v52 = vpop.f32.mrf.mxu1 }
 0x1eb   :  { %v2565_v1 = vmax.f32 %v2501_v60, 0.0  ;;  %v1929_v4 = vadd.f32 %v1928_v59, %v1538_v61  ;;  %1995 = vmatmul.f32.gmra.mxu0 %v5206_v6  ;;  %v1191_v5 = vadd.f32 %v1190_v2, %v898_v48  ;;  %v5214_v48 = vand.u32 4294901760, %v5210_v9 }
 0x1ed   :  { %v2629_v19 = vmin.f32 %v2565_v1, 6.0  ;;  %v2206_v15 = vadd.f32 %v2205_v34, %v1929_v4  ;;  %1638 = vmatmul.f32.gmra.mxu3 %v5209_v62  ;;  %2272 = vmatmul.f32.gmra.mxu1 %v5206_v6  ;;  %v5211_v6 = vld [vmem:[#allocation105_spill] sm:$0xff]  ;;  %v902_v62 = vadd.f32 %v5213_v10, %v5212_v21 }
 0x1ef   :  { %2694 = vst.msk [vmem:[%s4760_s4 + $0x48] sm:$0xff] %vm2684_vm2, %v2629_v19  ;;  %v2434_v59 = vmul.f32 %v4025_v33, %v2206_v15  ;;  %1274 = vmatmul.f32.gmra.mxu2 %v5210_v9 }
 0x1f0   :  { %v1543_v11 = vpop.f32.mrf.mxu3  ;;  %v1936_v38 = vpop.f32.mrf.mxu0 }
 0x1f1   :  { %v2502_v60 = vadd.f32 %v4033_v37, %v2434_v59  ;;  %v1544_v34 = vadd.f32 %v1543_v11, %v1191_v5  ;;  %v5215_v5 = vld [vmem:[#allocation116_spill] sm:$0xff] }
 0x1f2   :  { %v1195_v61 = vpop.f32.mrf.mxu2  ;;  %v2213_v39 = vpop.f32.mrf.mxu1  ;;  %v5216_v10 = vand.u32 4294901760, %v5215_v5 }
 0x1f3   :  { %v2566_v1 = vmax.f32 %v2502_v60, 0.0  ;;  %v1933_v4 = vadd.f32 %v1932_v50, %v1544_v34  ;;  %1999 = vmatmul.f32.gmra.mxu0 %v5211_v6  ;;  %v1196_v15 = vadd.f32 %v1195_v61, %v902_v62 }
 0x1f5   :  { %v2630_v19 = vmin.f32 %v2566_v1, 6.0  ;;  %v2210_v2 = vadd.f32 %v2209_v52, %v1933_v4  ;;  %1644 = vmatmul.f32.gmra.mxu3 %v5214_v48  ;;  %2276 = vmatmul.f32.gmra.mxu1 %v5211_v6  ;;  %v906_v6 = vadd.f32 %v3802_v63, %v3798_v16 }
 0x1f7   :  { %2695 = vst.msk [vmem:[%s4760_s4 + $0x50] sm:$0xff] %vm2684_vm2, %v2630_v19  ;;  %v2435_v50 = vmul.f32 %v4025_v33, %v2210_v2  ;;  %1279 = vmatmul.f32.gmra.mxu2 %v5215_v5 }
 0x1f8   :  { %v1549_v59 = vpop.f32.mrf.mxu3  ;;  %v1940_v11 = vpop.f32.mrf.mxu0 }
 0x1f9   :  { %v2503_v60 = vadd.f32 %v4033_v37, %v2435_v50  ;;  %v1550_v52 = vadd.f32 %v1549_v59, %v1196_v15 }
 0x1fa   :  { %v1200_v34 = vpop.f32.mrf.mxu2  ;;  %v2217_v9 = vpop.f32.mrf.mxu1 }
 0x1fb   :  { %v2567_v1 = vmax.f32 %v2503_v60, 0.0  ;;  %v1937_v4 = vadd.f32 %v1936_v38, %v1550_v52  ;;  %2003 = vmatmul.f32.gmra.mxu0 %v3732_v51  ;;  %v1201_v62 = vadd.f32 %v1200_v34, %v906_v6  ;;  %v5217_v60 = vand.u32 4294901760, %v3784_v3 }
 0x1fd   :  { %v2631_v21 = vmin.f32 %v2567_v1, 6.0  ;;  %v2214_v61 = vadd.f32 %v2213_v39, %v1937_v4  ;;  %1650 = vmatmul.f32.gmra.mxu3 %v5216_v10  ;;  %2280 = vmatmul.f32.gmra.mxu1 %v3732_v51  ;;  %v910_v51 = vadd.f32 %v3821_v31, %v3817_v32  ;;  %v5218_v10 = vand.u32 4294901760, %v3809_v28 }
 0x1ff   :  { %2696 = vst.msk [vmem:[%s4760_s4 + $0x58] sm:$0xff] %vm2684_vm2, %v2631_v21  ;;  %v2436_v38 = vmul.f32 %v4025_v33, %v2214_v61  ;;  %1284 = vmatmul.f32.gmra.mxu2 %v3784_v3 }
 0x200   :  { %v1555_v19 = vpop.f32.mrf.mxu3  ;;  %v1944_v2 = vpop.f32.mrf.mxu0 }
 0x201   :  { %v2504_v63 = vadd.f32 %v4033_v37, %v2436_v38  ;;  %v1556_v16 = vadd.f32 %v1555_v19, %v1201_v62  ;;  %v5219_v19 = vld [vmem:[#allocation4_spill] sm:$0xff] }
 0x202   :  { %v1205_v39 = vpop.f32.mrf.mxu2  ;;  %v2221_v48 = vpop.f32.mrf.mxu1 }
 0x203   :  { %v2568_v15 = vmax.f32 %v2504_v63, 0.0  ;;  %v1941_v50 = vadd.f32 %v1940_v11, %v1556_v16  ;;  %2007 = vmatmul.f32.gmra.mxu0 %v3765_v25  ;;  %v1206_v52 = vadd.f32 %v1205_v39, %v910_v51 }
 0x205   :  { %v2632_v5 = vmin.f32 %v2568_v15, 6.0  ;;  %v2218_v59 = vadd.f32 %v2217_v9, %v1941_v50  ;;  %1656 = vmatmul.f32.gmra.mxu3 %v5217_v60  ;;  %2284 = vmatmul.f32.gmra.mxu1 %v3765_v25  ;;  %v914_v25 = vadd.f32 %v3832_v42, %v3828_v44  ;;  %v918_v15 = vadd.f32 %v3841_v57, %v3837_v8 }
 0x207   :  { %2697 = vst.msk [vmem:[%s4760_s4 + $0x60] sm:$0xff] %vm2684_vm2, %v2632_v5  ;;  %v2437_v11 = vmul.f32 %v4025_v33, %v2218_v59  ;;  %1289 = vmatmul.f32.gmra.mxu2 %v3809_v28  ;;  %v5221_v5 = vand.u32 4294901760, %v5219_v19 }
 0x208   :  { %v1561_v34 = vpop.f32.mrf.mxu3  ;;  %v1948_v1 = vpop.f32.mrf.mxu0 }
 0x209   :  { %v2505_v32 = vadd.f32 %v4033_v37, %v2437_v11  ;;  %v1562_v31 = vadd.f32 %v1561_v34, %v1206_v52  ;;  %v5222_v52 = vld [vmem:[#allocation5_spill] sm:$0xff] }
 0x20a   :  { %v1210_v9 = vpop.f32.mrf.mxu2  ;;  %v2225_v3 = vpop.f32.mrf.mxu1 }
 0x20b   :  { %v2569_v4 = vmax.f32 %v2505_v32, 0.0  ;;  %v1945_v6 = vadd.f32 %v1944_v2, %v1562_v31  ;;  %2011 = vmatmul.f32.gmra.mxu0 %v3796_v23  ;;  %v1211_v62 = vadd.f32 %v1210_v9, %v914_v25 }
 0x20d   :  { %v2633_v21 = vmin.f32 %v2569_v4, 6.0  ;;  %v2222_v61 = vadd.f32 %v2221_v48, %v1945_v6  ;;  %1662 = vmatmul.f32.gmra.mxu3 %v5218_v10  ;;  %2288 = vmatmul.f32.gmra.mxu1 %v3796_v23  ;;  %v5220_v23 = vld [vmem:[#allocation2_spill] sm:$0xff]  ;;  %v922_v4 = vadd.f32 %v3852_v13, %v3848_v43 }
 0x20f   :  { %2698 = vst.msk [vmem:[%s4760_s4 + $0x68] sm:$0xff] %vm2684_vm2, %v2633_v21  ;;  %v2438_v38 = vmul.f32 %v4025_v33, %v2222_v61  ;;  %1294 = vmatmul.f32.gmra.mxu2 %v5219_v19  ;;  %v5224_v21 = vand.u32 4294901760, %v5222_v52 }
 0x210   :  { %v1567_v2 = vpop.f32.mrf.mxu3  ;;  %v1952_v63 = vpop.f32.mrf.mxu0 }
 0x211   :  { %v2506_v42 = vadd.f32 %v4033_v37, %v2438_v38  ;;  %v1568_v44 = vadd.f32 %v1567_v2, %v1211_v62  ;;  %v5225_v62 = vld [vmem:[#allocation7_spill] sm:$0xff] }
 0x212   :  { %v1215_v16 = vpop.f32.mrf.mxu2  ;;  %v2229_v28 = vpop.f32.mrf.mxu1 }
 0x213   :  { %v2570_v39 = vmax.f32 %v2506_v42, 0.0  ;;  %v1949_v48 = vadd.f32 %v1948_v1, %v1568_v44  ;;  %2015 = vmatmul.f32.gmra.mxu0 %v5220_v23  ;;  %v1216_v59 = vadd.f32 %v1215_v16, %v918_v15  ;;  %v5226_v16 = vld [vmem:[#allocation6_spill] sm:$0xff] }
 0x215   :  { %v2634_v50 = vmin.f32 %v2570_v39, 6.0  ;;  %v2226_v51 = vadd.f32 %v2225_v3, %v1949_v48  ;;  %1668 = vmatmul.f32.gmra.mxu3 %v5221_v5  ;;  %2292 = vmatmul.f32.gmra.mxu1 %v5220_v23  ;;  %v5223_v3 = vld [vmem:[#allocation3_spill] sm:$0xff]  ;;  %v5227_v23 = vand.u32 4294901760, %v5225_v62 }
 0x217   :  { %2699 = vst.msk [vmem:[%s4760_s4 + $0x70] sm:$0xff] %vm2684_vm2, %v2634_v50  ;;  %v2439_v60 = vmul.f32 %v4025_v33, %v2226_v51  ;;  %1299 = vmatmul.f32.gmra.mxu2 %v5222_v52  ;;  %v5228_v51 = vld [vmem:[#allocation9_spill] sm:$0xff] }
 0x218   :  { %v1573_v11 = vpop.f32.mrf.mxu3  ;;  %v1956_v34 = vpop.f32.mrf.mxu0 }
 0x219   :  { %v2507_v57 = vadd.f32 %v4033_v37, %v2439_v60  ;;  %v1574_v8 = vadd.f32 %v1573_v11, %v1216_v59 }
 0x21a   :  { %v1220_v1 = vpop.f32.mrf.mxu2  ;;  %v2233_v32 = vpop.f32.mrf.mxu1 }
 0x21b   :  { %v2571_v31 = vmax.f32 %v2507_v57, 0.0  ;;  %v1953_v9 = vadd.f32 %v1952_v63, %v1574_v8  ;;  %2019 = vmatmul.f32.gmra.mxu0 %v5223_v3  ;;  %v1221_v61 = vadd.f32 %v1220_v1, %v922_v4  ;;  %v5229_v57 = vld [vmem:[#allocation8_spill] sm:$0xff]  ;;  %v930_v8 = vadd.f32 %v3874_v40, %v3870_v53  ;;  %v5231_v4 = vld [vmem:[#allocation11_spill] sm:$0xff] }
 0x21d   :  { %v2635_v6 = vmin.f32 %v2571_v31, 6.0  ;;  %v2230_v25 = vadd.f32 %v2229_v28, %v1953_v9  ;;  %1674 = vmatmul.f32.gmra.mxu3 %v5224_v21  ;;  %2296 = vmatmul.f32.gmra.mxu1 %v5223_v3  ;;  %v926_v28 = vadd.f32 %v3863_v14, %v3859_v36  ;;  %v5230_v31 = vand.u32 4294901760, %v5228_v51 }
 0x21f   :  { %2700 = vst.msk [vmem:[%s4760_s4 + $0x78] sm:$0xff] %vm2684_vm2, %v2635_v6  ;;  %v2440_v10 = vmul.f32 %v4025_v33, %v2230_v25  ;;  %1304 = vmatmul.f32.gmra.mxu2 %v5225_v62 }
 0x220   :  { %v1579_v38 = vpop.f32.mrf.mxu3  ;;  %v1960_v19 = vpop.f32.mrf.mxu0 }
 0x221   :  { %v2508_v43 = vadd.f32 %v4033_v37, %v2440_v10  ;;  %v1580_v13 = vadd.f32 %v1579_v38, %v1221_v61  ;;  %v5232_v38 = vld [vmem:[#allocation10_spill] sm:$0xff] }
 0x222   :  { %v1225_v2 = vpop.f32.mrf.mxu2  ;;  %v2237_v63 = vpop.f32.mrf.mxu1 }
 0x223   :  { %v2572_v42 = vmax.f32 %v2508_v43, 0.0  ;;  %v1957_v44 = vadd.f32 %v1956_v34, %v1580_v13  ;;  %2023 = vmatmul.f32.gmra.mxu0 %v5226_v16  ;;  %v1226_v15 = vadd.f32 %v1225_v2, %v926_v28  ;;  %v5233_v2 = vand.u32 4294901760, %v5231_v4 }
 0x225   :  { %v2636_v39 = vmin.f32 %v2572_v42, 6.0  ;;  %v2234_v48 = vadd.f32 %v2233_v32, %v1957_v44  ;;  %1680 = vmatmul.f32.gmra.mxu3 %v5227_v23  ;;  %2300 = vmatmul.f32.gmra.mxu1 %v5226_v16  ;;  %v5234_v44 = vld [vmem:[#allocation13_spill] sm:$0xff] }
 0x227   :  { %2701 = vst.msk [vmem:[%s4760_s4 + $0x80] sm:$0xff] %vm2684_vm2, %v2636_v39  ;;  %v2441_v50 = vmul.f32 %v4025_v33, %v2234_v48  ;;  %1309 = vmatmul.f32.gmra.mxu2 %v5228_v51  ;;  %v938_v51 = vadd.f32 %v3896_v45, %v3892_v17 }
 0x228   :  { %v1585_v5 = vpop.f32.mrf.mxu3  ;;  %v1964_v59 = vpop.f32.mrf.mxu0 }
 0x229   :  { %v2509_v36 = vadd.f32 %v4033_v37, %v2441_v50  ;;  %v1586_v14 = vadd.f32 %v1585_v5, %v1226_v15  ;;  %v5235_v50 = vld [vmem:[#allocation12_spill] sm:$0xff] }
 0x22a   :  { %v1230_v60 = vpop.f32.mrf.mxu2  ;;  %v2241_v52 = vpop.f32.mrf.mxu1 }
 0x22b   :  { %v2573_v11 = vmax.f32 %v2509_v36, 0.0  ;;  %v1961_v34 = vadd.f32 %v1960_v19, %v1586_v14  ;;  %2027 = vmatmul.f32.gmra.mxu0 %v5229_v57  ;;  %v1231_v9 = vadd.f32 %v1230_v60, %v930_v8  ;;  %v934_v19 = vadd.f32 %v3885_v24, %v3881_v0 }
 0x22c   :  { %v5236_v36 = vand.u32 4294901760, %v5234_v44 }
 0x22d   :  { %v2637_v1 = vmin.f32 %v2573_v11, 6.0  ;;  %v2238_v32 = vadd.f32 %v2237_v63, %v1961_v34  ;;  %1686 = vmatmul.f32.gmra.mxu3 %v5230_v31  ;;  %2304 = vmatmul.f32.gmra.mxu1 %v5229_v57  ;;  %v5238_v31 = vld [vmem:[#allocation14_spill] sm:$0xff] }
 0x22f   :  { %2702 = vst.msk [vmem:[%s4760_s4 + $0x88] sm:$0xff] %vm2684_vm2, %v2637_v1  ;;  %v2442_v3 = vmul.f32 %v4025_v33, %v2238_v32  ;;  %1314 = vmatmul.f32.gmra.mxu2 %v5231_v4 }
 0x230   :  { %v1591_v6 = vpop.f32.mrf.mxu3  ;;  %v1968_v25 = vpop.f32.mrf.mxu0 }
 0x231   :  { %v2510_v53 = vadd.f32 %v4033_v37, %v2442_v3  ;;  %v1592_v40 = vadd.f32 %v1591_v6, %v1231_v9  ;;  %v942_v9 = vadd.f32 %v3907_v18, %v3903_v35 }
 0x232   :  { %v1235_v21 = vpop.f32.mrf.mxu2  ;;  %v2245_v61 = vpop.f32.mrf.mxu1 }
 0x233   :  { %v2574_v10 = vmax.f32 %v2510_v53, 0.0  ;;  %v1965_v62 = vadd.f32 %v1964_v59, %v1592_v40  ;;  %2031 = vmatmul.f32.gmra.mxu0 %v5232_v38  ;;  %v1236_v63 = vadd.f32 %v1235_v21, %v934_v19  ;;  %v5240_v40 = vld [vmem:[#allocation17_spill] sm:$0xff] }
 0x235   :  { %v2638_v43 = vmin.f32 %v2574_v10, 6.0  ;;  %v2242_v13 = vadd.f32 %v2241_v52, %v1965_v62  ;;  %1692 = vmatmul.f32.gmra.mxu3 %v5233_v2  ;;  %2308 = vmatmul.f32.gmra.mxu1 %v5232_v38  ;;  %v5237_v52 = vld [vmem:[#allocation15_spill] sm:$0xff] }
 0x236   :  { %v5239_v6 = vand.u32 4294901760, %v5237_v52 }
 0x237   :  { %2703 = vst.msk [vmem:[%s4760_s4 + $0x90] sm:$0xff] %vm2684_vm2, %v2638_v43  ;;  %v2443_v42 = vmul.f32 %v4025_v33, %v2242_v13  ;;  %1319 = vmatmul.f32.gmra.mxu2 %v5234_v44  ;;  %v5241_v43 = vld [vmem:[#allocation16_spill] sm:$0xff]  ;;  %v946_v13 = vadd.f32 %v3918_v58, %v3914_v56 }
 0x238   :  { %v1597_v16 = vpop.f32.mrf.mxu3  ;;  %v1972_v28 = vpop.f32.mrf.mxu0 }
 0x239   :  { %v2511_v0 = vadd.f32 %v4033_v37, %v2443_v42  ;;  %v1598_v24 = vadd.f32 %v1597_v16, %v1236_v63  ;;  %v5242_v42 = vand.u32 4294901760, %v5240_v40 }
 0x23a   :  { %v1240_v39 = vpop.f32.mrf.mxu2  ;;  %v2249_v48 = vpop.f32.mrf.mxu1 }
 0x23b   :  { %v2575_v23 = vmax.f32 %v2511_v0, 0.0  ;;  %v1969_v15 = vadd.f32 %v1968_v25, %v1598_v24  ;;  %2035 = vmatmul.f32.gmra.mxu0 %v5235_v50  ;;  %v1241_v14 = vadd.f32 %v1240_v39, %v938_v51  ;;  %v950_v51 = vadd.f32 %v3929_v26, %v3925_v20 }
 0x23d   :  { %v2639_v5 = vmin.f32 %v2575_v23, 6.0  ;;  %v2246_v59 = vadd.f32 %v2245_v61, %v1969_v15  ;;  %1698 = vmatmul.f32.gmra.mxu3 %v5236_v36  ;;  %2312 = vmatmul.f32.gmra.mxu1 %v5235_v50  ;;  %v5244_v50 = vld [vmem:[#allocation18_spill] sm:$0xff] }
 0x23f   :  { %2704 = vst.msk [vmem:[%s4760_s4 + $0x98] sm:$0xff] %vm2684_vm2, %v2639_v5  ;;  %v2444_v60 = vmul.f32 %v4025_v33, %v2246_v59  ;;  %1324 = vmatmul.f32.gmra.mxu2 %v5237_v52  ;;  %v5246_v52 = vld [vmem:[#allocation21_spill] sm:$0xff] }
 0x240   :  { %v1603_v11 = vpop.f32.mrf.mxu3  ;;  %v1976_v34 = vpop.f32.mrf.mxu0 }
 0x241   :  { %v2512_v17 = vadd.f32 %v4033_v37, %v2444_v60  ;;  %v1604_v45 = vadd.f32 %v1603_v11, %v1241_v14 }
 0x242   :  { %v1245_v57 = vpop.f32.mrf.mxu2  ;;  %v2253_v8 = vpop.f32.mrf.mxu1 }
 0x243   :  { %v2576_v1 = vmax.f32 %v2512_v17, 0.0  ;;  %v1973_v32 = vadd.f32 %v1972_v28, %v1604_v45  ;;  %2039 = vmatmul.f32.gmra.mxu0 %v5238_v31  ;;  %v1246_v25 = vadd.f32 %v1245_v57, %v942_v9  ;;  %v5243_v28 = vld [vmem:[#allocation19_spill] sm:$0xff] }
 0x244   :  { %v5245_v36 = vand.u32 4294901760, %v5243_v28 }
 0x245   :  { %v2640_v3 = vmin.f32 %v2576_v1, 6.0  ;;  %v2250_v4 = vadd.f32 %v2249_v48, %v1973_v32  ;;  %1704 = vmatmul.f32.gmra.mxu3 %v5239_v6  ;;  %2316 = vmatmul.f32.gmra.mxu1 %v5238_v31  ;;  %v5247_v1 = vld [vmem:[#allocation20_spill] sm:$0xff]  ;;  %v954_v32 = vadd.f32 %v3940_v30, %v3936_v55 }
 0x247   :  { %2705 = vst.msk [vmem:[%s4760_s4 + $0xa0] sm:$0xff] %vm2684_vm2, %v2640_v3  ;;  %v2445_v53 = vmul.f32 %v4025_v33, %v2250_v4  ;;  %1329 = vmatmul.f32.gmra.mxu2 %v5240_v40  ;;  %v5248_v3 = vand.u32 4294901760, %v5246_v52 }
 0x248   :  { %v1609_v21 = vpop.f32.mrf.mxu3  ;;  %v1980_v61 = vpop.f32.mrf.mxu0 }
 0x249   :  { %v2513_v35 = vadd.f32 %v4033_v37, %v2445_v53  ;;  %v1610_v18 = vadd.f32 %v1609_v21, %v1246_v25  ;;  %v5249_v25 = vld [vmem:[#allocation23_spill] sm:$0xff] }
 0x24a   :  { %v1250_v10 = vpop.f32.mrf.mxu2  ;;  %v2257_v62 = vpop.f32.mrf.mxu1 }
 0x24b   :  { %v2577_v38 = vmax.f32 %v2513_v35, 0.0  ;;  %v1977_v19 = vadd.f32 %v1976_v34, %v1610_v18  ;;  %2043 = vmatmul.f32.gmra.mxu0 %v5241_v43  ;;  %v1251_v44 = vadd.f32 %v1250_v10, %v946_v13  ;;  %v5250_v10 = vld [vmem:[#allocation22_spill] sm:$0xff] }
 0x24d   :  { %v2641_v2 = vmin.f32 %v2577_v38, 6.0  ;;  %v2254_v63 = vadd.f32 %v2253_v8, %v1977_v19  ;;  %1710 = vmatmul.f32.gmra.mxu3 %v5242_v42  ;;  %2320 = vmatmul.f32.gmra.mxu1 %v5241_v43  ;;  %v5251_v43 = vand.u32 4294901760, %v5249_v25 }
 0x24f   :  { %2706 = vst.msk [vmem:[%s4760_s4 + $0xa8] sm:$0xff] %vm2684_vm2, %v2641_v2  ;;  %v2446_v16 = vmul.f32 %v4025_v33, %v2254_v63  ;;  %1334 = vmatmul.f32.gmra.mxu2 %v5243_v28  ;;  %v5252_v63 = vld [vmem:[#allocation25_spill] sm:$0xff] }
 0x250   :  { %v1615_v0 = vpop.f32.mrf.mxu3  ;;  %v1984_v24 = vpop.f32.mrf.mxu0 }
 0x251   :  { %v2514_v56 = vadd.f32 %v4033_v37, %v2446_v16  ;;  %v1616_v58 = vadd.f32 %v1615_v0, %v1251_v44 }
 0x252   :  { %v1255_v39 = vpop.f32.mrf.mxu2  ;;  %v2261_v48 = vpop.f32.mrf.mxu1 }
 0x253   :  { %v2578_v23 = vmax.f32 %v2514_v56, 0.0  ;;  %v1981_v15 = vadd.f32 %v1980_v61, %v1616_v58  ;;  %2047 = vmatmul.f32.gmra.mxu0 %v5244_v50  ;;  %v1256_v14 = vadd.f32 %v1255_v39, %v950_v51  ;;  %v5253_v56 = vld [vmem:[#allocation24_spill] sm:$0xff]  ;;  %v962_v58 = vadd.f32 %v3962_v54, %v3958_v29  ;;  %v5255_v51 = vld [vmem:[#allocation27_spill] sm:$0xff] }
 0x255   :  { %v2642_v5 = vmin.f32 %v2578_v23, 6.0  ;;  %v2258_v59 = vadd.f32 %v2257_v62, %v1981_v15  ;;  %1716 = vmatmul.f32.gmra.mxu3 %v5245_v36  ;;  %2324 = vmatmul.f32.gmra.mxu1 %v5244_v50  ;;  %v958_v62 = vadd.f32 %v3951_v46, %v3947_v41  ;;  %v5254_v23 = vand.u32 4294901760, %v5252_v63 }
 0x257   :  { %2707 = vst.msk [vmem:[%s4760_s4 + $0xb0] sm:$0xff] %vm2684_vm2, %v2642_v5  ;;  %v2447_v60 = vmul.f32 %v4025_v33, %v2258_v59  ;;  %1339 = vmatmul.f32.gmra.mxu2 %v5246_v52 }
 0x258   :  { %v1621_v11 = vpop.f32.mrf.mxu3  ;;  %v1988_v34 = vpop.f32.mrf.mxu0 }
 0x259   :  { %v2515_v20 = vadd.f32 %v4033_v37, %v2447_v60  ;;  %v1622_v26 = vadd.f32 %v1621_v11, %v1256_v14  ;;  %v5256_v11 = vld [vmem:[#allocation26_spill] sm:$0xff] }
 0x25a   :  { %v1260_v17 = vpop.f32.mrf.mxu2  ;;  %v2265_v45 = vpop.f32.mrf.mxu1 }
 0x25b   :  { %v2579_v57 = vmax.f32 %v2515_v20, 0.0  ;;  %v1985_v8 = vadd.f32 %v1984_v24, %v1622_v26  ;;  %2051 = vmatmul.f32.gmra.mxu0 %v5247_v1  ;;  %v1261_v4 = vadd.f32 %v1260_v17, %v954_v32  ;;  %v5257_v17 = vand.u32 4294901760, %v5255_v51 }
 0x25d   :  { %v2643_v31 = vmin.f32 %v2579_v57, 6.0  ;;  %v2262_v9 = vadd.f32 %v2261_v48, %v1985_v8  ;;  %1722 = vmatmul.f32.gmra.mxu3 %v5248_v3  ;;  %2328 = vmatmul.f32.gmra.mxu1 %v5247_v1  ;;  %v5258_v8 = vld [vmem:[#allocation29_spill] sm:$0xff] }
 0x25f   :  { %2708 = vst.msk [vmem:[%s4760_s4 + $0xb8] sm:$0xff] %vm2684_vm2, %v2643_v31  ;;  %v2448_v6 = vmul.f32 %v4025_v33, %v2262_v9  ;;  %1344 = vmatmul.f32.gmra.mxu2 %v5249_v25  ;;  %v970_v25 = vadd.f32 %v3984_v27, %v3980_v49  ;;  %v5261_v27 = vld [vmem:[#allocation31_spill] sm:$0xff] }
 0x260   :  { %v1627_v53 = vpop.f32.mrf.mxu3  ;;  %v1992_v40 = vpop.f32.mrf.mxu0 }
 0x261   :  { %v2516_v55 = vadd.f32 %v4033_v37, %v2448_v6  ;;  %v1628_v30 = vadd.f32 %v1627_v53, %v1261_v4  ;;  %v5259_v6 = vld [vmem:[#allocation28_spill] sm:$0xff] }
 0x262   :  { %v1265_v21 = vpop.f32.mrf.mxu2  ;;  %v2269_v61 = vpop.f32.mrf.mxu1 }
 0x263   :  { %v2580_v35 = vmax.f32 %v2516_v55, 0.0  ;;  %v1989_v18 = vadd.f32 %v1988_v34, %v1628_v30  ;;  %2055 = vmatmul.f32.gmra.mxu0 %v5250_v10  ;;  %v1266_v13 = vadd.f32 %v1265_v21, %v958_v62  ;;  %v966_v34 = vadd.f32 %v3973_v12, %v3969_v22  ;;  %v4405_v55 = vld [vmem:[%s4758_s2] ss:$0 sm:$0xff] }
 0x265   :  { %v2644_v38 = vmin.f32 %v2580_v35, 6.0  ;;  %v2266_v19 = vadd.f32 %v2265_v45, %v1989_v18  ;;  %1728 = vmatmul.f32.gmra.mxu3 %v5251_v43  ;;  %2332 = vmatmul.f32.gmra.mxu1 %v5250_v10  ;;  %v5262_v43 = vld [vmem:[#allocation30_spill] sm:$0xff] }
 0x267   :  { %2709 = vst.msk [vmem:[%s4760_s4 + $0xc0] sm:$0xff] %vm2684_vm2, %v2644_v38  ;;  %v2449_v2 = vmul.f32 %v4025_v33, %v2266_v19  ;;  %1349 = vmatmul.f32.gmra.mxu2 %v5252_v63 }
 0x268   :  { %v1633_v42 = vpop.f32.mrf.mxu3  ;;  %v1996_v44 = vpop.f32.mrf.mxu0 }
 0x269   :  { %v2517_v41 = vadd.f32 %v4033_v37, %v2449_v2  ;;  %v1634_v46 = vadd.f32 %v1633_v42, %v1266_v13  ;;  %v974_v13 = vadd.f32 %v3995_v47, %v3991_v7  ;;  %v5263_v42 = vand.u32 4294901760, %v5261_v27 }
 0x26a   :  { %v1270_v16 = vpop.f32.mrf.mxu2  ;;  %v2273_v28 = vpop.f32.mrf.mxu1 }
 0x26b   :  { %v2581_v0 = vmax.f32 %v2517_v41, 0.0  ;;  %v1993_v24 = vadd.f32 %v1992_v40, %v1634_v46  ;;  %2059 = vmatmul.f32.gmra.mxu0 %v5253_v56  ;;  %v1271_v15 = vadd.f32 %v1270_v16, %v962_v58  ;;  %v5264_v46 = vld [vmem:[#allocation33_spill] sm:$0xff] }
 0x26d   :  { %v2645_v39 = vmin.f32 %v2581_v0, 6.0  ;;  %v2270_v48 = vadd.f32 %v2269_v61, %v1993_v24  ;;  %1734 = vmatmul.f32.gmra.mxu3 %v5254_v23  ;;  %2336 = vmatmul.f32.gmra.mxu1 %v5253_v56  ;;  %v4412_v61 = vld [vmem:[%s4759_s3] ss:$0 sm:$0xff]  ;;  %v5267_v23 = vld [vmem:[#allocation143_spill] sm:$0xff] }
 0x26f   :  { %2710 = vst.msk [vmem:[%s4760_s4 + $0xc8] sm:$0xff] %vm2684_vm2, %v2645_v39  ;;  %v2450_v50 = vmul.f32 %v4025_v33, %v2270_v48  ;;  %1354 = vmatmul.f32.gmra.mxu2 %v5255_v51  ;;  %v5265_v39 = vld [vmem:[#allocation32_spill] sm:$0xff]  ;;  %v5266_v48 = vld [vmem:[#allocation141_spill] sm:$0xff] }
 0x270   :  { %v1639_v5 = vpop.f32.mrf.mxu3  ;;  %v2000_v59 = vpop.f32.mrf.mxu0 }
 0x271   :  { %v2518_v29 = vadd.f32 %v4033_v37, %v2450_v50  ;;  %v1640_v54 = vadd.f32 %v1639_v5, %v1271_v15  ;;  %v978_v15 = vadd.f32 %v5267_v23, %v5266_v48  ;;  %v5268_v5 = vand.u32 4294901760, %v5264_v46 }
 0x272   :  { %v1275_v36 = vpop.f32.mrf.mxu2  ;;  %v2277_v14 = vpop.f32.mrf.mxu1 }
 0x273   :  { %v2582_v60 = vmax.f32 %v2518_v29, 0.0  ;;  %v1997_v52 = vadd.f32 %v1996_v44, %v1640_v54  ;;  %2063 = vmatmul.f32.gmra.mxu0 %v5256_v11  ;;  %v1276_v45 = vadd.f32 %v1275_v36, %v966_v34  ;;  %v5269_v54 = vld [vmem:[#allocation35_spill] sm:$0xff] }
 0x275   :  { %v2646_v20 = vmin.f32 %v2582_v60, 6.0  ;;  %v2274_v26 = vadd.f32 %v2273_v28, %v1997_v52  ;;  %1740 = vmatmul.f32.gmra.mxu3 %v5257_v17  ;;  %2340 = vmatmul.f32.gmra.mxu1 %v5256_v11  ;;  %v5270_v17 = vld [vmem:[#allocation34_spill] sm:$0xff] }
 0x277   :  { %2711 = vst.msk [vmem:[%s4760_s4 + $0xd0] sm:$0xff] %vm2684_vm2, %v2646_v20  ;;  %v2451_v57 = vmul.f32 %v4025_v33, %v2274_v26  ;;  %1359 = vmatmul.f32.gmra.mxu2 %v5258_v8  ;;  %v5260_v33 = vand.u32 4294901760, %v5258_v8  ;;  %v5271_v8 = vand.u32 4294901760, %v5269_v54 }
 0x278   :  { %v1645_v1 = vpop.f32.mrf.mxu3  ;;  %v2004_v32 = vpop.f32.mrf.mxu0 }
 0x279   :  { %v2519_v22 = vadd.f32 %v4033_v37, %v2451_v57  ;;  %v1646_v12 = vadd.f32 %v1645_v1, %v1276_v45  ;;  %v5272_v1 = vld [vmem:[#allocation45_spill] sm:$0xff] }
 0x27a   :  { %v1280_v31 = vpop.f32.mrf.mxu2  ;;  %v2281_v9 = vpop.f32.mrf.mxu1 }
 0x27b   :  { %v2583_v3 = vmax.f32 %v2519_v22, 0.0  ;;  %v2001_v4 = vadd.f32 %v2000_v59, %v1646_v12  ;;  %2067 = vmatmul.f32.gmra.mxu0 %v5259_v6  ;;  %v1281_v37 = vadd.f32 %v1280_v31, %v970_v25  ;;  %v5273_v12 = vld [vmem:[#allocation37_spill] sm:$0xff] }
 0x27d   :  { %v2647_v53 = vmin.f32 %v2583_v3, 6.0  ;;  %v2278_v40 = vadd.f32 %v2277_v14, %v2001_v4  ;;  %1746 = vmatmul.f32.gmra.mxu3 %v5260_v33  ;;  %2344 = vmatmul.f32.gmra.mxu1 %v5259_v6  ;;  %v5274_v33 = vld [vmem:[#allocation36_spill] sm:$0xff] }
 0x27f   :  { %2712 = vst.msk [vmem:[%s4760_s4 + $0xd8] sm:$0xff] %vm2684_vm2, %v2647_v53  ;;  %v2452_v49 = vmul.f32 %v4405_v55, %v2278_v40  ;;  %1364 = vmatmul.f32.gmra.mxu2 %v5261_v27  ;;  %v5275_v27 = vand.u32 4294901760, %v5273_v12 }
 0x280   :  { %v1651_v30 = vpop.f32.mrf.mxu3  ;;  %v2008_v21 = vpop.f32.mrf.mxu0 }
 0x281   :  { %v2520_v35 = vadd.f32 %v4412_v61, %v2452_v49  ;;  %v1652_v18 = vadd.f32 %v1651_v30, %v1281_v37  ;;  %v5276_v30 = vld [vmem:[#allocation51_spill] sm:$0xff] }
 0x282   :  { %v1285_v10 = vpop.f32.mrf.mxu2  ;;  %v2285_v62 = vpop.f32.mrf.mxu1 }
 0x283   :  { %v2584_v38 = vmax.f32 %v2520_v35, 0.0  ;;  %v2005_v19 = vadd.f32 %v2004_v32, %v1652_v18  ;;  %2071 = vmatmul.f32.gmra.mxu0 %v5262_v43  ;;  %v1286_v44 = vadd.f32 %v1285_v10, %v974_v13  ;;  %v5277_v18 = vld [vmem:[#allocation39_spill] sm:$0xff] }
 0x285   :  { %v2648_v2 = vmin.f32 %v2584_v38, 6.0  ;;  %v2282_v63 = vadd.f32 %v2281_v9, %v2005_v19  ;;  %1752 = vmatmul.f32.gmra.mxu3 %v5263_v42  ;;  %2348 = vmatmul.f32.gmra.mxu1 %v5262_v43  ;;  %v5278_v42 = vld [vmem:[#allocation38_spill] sm:$0xff] }
 0x287   :  { %2713 = vst.msk [vmem:[%s4760_s4 + $0xe0] sm:$0xff] %vm2684_vm2, %v2648_v2  ;;  %v2453_v41 = vmul.f32 %v4405_v55, %v2282_v63  ;;  %1369 = vmatmul.f32.gmra.mxu2 %v5264_v46  ;;  %v5279_v46 = vand.u32 4294901760, %v5277_v18 }
 0x288   :  { %v1657_v16 = vpop.f32.mrf.mxu3  ;;  %v2012_v28 = vpop.f32.mrf.mxu0 }
 0x289   :  { %v2521_v7 = vadd.f32 %v4412_v61, %v2453_v41  ;;  %v1658_v47 = vadd.f32 %v1657_v16, %v1286_v44  ;;  %v5280_v16 = vld [vmem:[#allocation58_spill] sm:$0xff] }
 0x28a   :  { %v1290_v0 = vpop.f32.mrf.mxu2  ;;  %v2289_v24 = vpop.f32.mrf.mxu1 }
 0x28b   :  { %v2585_v56 = vmax.f32 %v2521_v7, 0.0  ;;  %v2009_v58 = vadd.f32 %v2008_v21, %v1658_v47  ;;  %2075 = vmatmul.f32.gmra.mxu0 %v5265_v39  ;;  %v1291_v59 = vadd.f32 %v1290_v0, %v978_v15  ;;  %v5281_v47 = vld [vmem:[#allocation43_spill] sm:$0xff] }
 0x28d   :  { %v2649_v50 = vmin.f32 %v2585_v56, 6.0  ;;  %v2286_v51 = vadd.f32 %v2285_v62, %v2009_v58  ;;  %1758 = vmatmul.f32.gmra.mxu3 %v5268_v5  ;;  %2352 = vmatmul.f32.gmra.mxu1 %v5265_v39 }
 0x28f   :  { %2714 = vst.msk [vmem:[%s4760_s4 + $0xe8] sm:$0xff] %vm2684_vm2, %v2649_v50  ;;  %v2454_v29 = vmul.f32 %v4405_v55, %v2286_v51  ;;  %1374 = vmatmul.f32.gmra.mxu2 %v5269_v54  ;;  %v5282_v50 = vld [vmem:[#allocation41_spill] sm:$0xff] }
 0x290   :  { %v1663_v36 = vpop.f32.mrf.mxu3  ;;  %v2016_v14 = vpop.f32.mrf.mxu0 }
 0x291   :  { %v2522_v60 = vadd.f32 %v4412_v61, %v2454_v29  ;;  %v1664_v52 = vadd.f32 %v1663_v36, %v1291_v59  ;;  %v5283_v59 = vand.u32 4294901760, %v5281_v47  ;;  %v5284_v29 = vld [vmem:[#allocation65_spill] sm:$0xff] }
 0x292   :  { %v1295_v11 = vpop.f32.mrf.mxu2  ;;  %v2293_v34 = vpop.f32.mrf.mxu1 }
 0x293   :  { %v2586_v20 = vmax.f32 %v2522_v60, 0.0  ;;  %v2013_v26 = vadd.f32 %v2012_v28, %v1664_v52  ;;  %2079 = vmatmul.f32.gmra.mxu0 %v5270_v17  ;;  %v1296_v32 = vadd.f32 %v1295_v11, %v5272_v1 }
 0x295   :  { %v2650_v45 = vmin.f32 %v2586_v20, 6.0  ;;  %v2290_v57 = vadd.f32 %v2289_v24, %v2013_v26  ;;  %1764 = vmatmul.f32.gmra.mxu3 %v5271_v8  ;;  %2356 = vmatmul.f32.gmra.mxu1 %v5270_v17 }
 0x297   :  { %2715 = vst.msk [vmem:[%s4760_s4 + $0xf0] sm:$0xff] %vm2684_vm2, %v2650_v45  ;;  %v2455_v22 = vmul.f32 %v4405_v55, %v2290_v57  ;;  %1379 = vmatmul.f32.gmra.mxu2 %v5273_v12  ;;  %v5286_v57 = vld [vmem:[#allocation46_spill] sm:$0xff] }
 0x298   :  { %v1669_v31 = vpop.f32.mrf.mxu3  ;;  %v2020_v9 = vpop.f32.mrf.mxu0 }
 0x299   :  { %v2523_v3 = vadd.f32 %v4412_v61, %v2455_v22  ;;  %v1670_v4 = vadd.f32 %v1669_v31, %v1296_v32  ;;  %v5288_v22 = vld [vmem:[#allocation72_spill] sm:$0xff] }
 0x29a   :  { %v1300_v6 = vpop.f32.mrf.mxu2  ;;  %v2297_v25 = vpop.f32.mrf.mxu1 }
 0x29b   :  { %v2587_v53 = vmax.f32 %v2523_v3, 0.0  ;;  %v2017_v40 = vadd.f32 %v2016_v14, %v1670_v4  ;;  %2083 = vmatmul.f32.gmra.mxu0 %v5274_v33  ;;  %v1301_v21 = vadd.f32 %v1300_v6, %v5276_v30  ;;  %v5285_v14 = vld [vmem:[#allocation48_spill] sm:$0xff] }
 0x29c   :  { %v5287_v32 = vand.u32 4294901760, %v5285_v14 }
 0x29d   :  { %v2651_v37 = vmin.f32 %v2587_v53, 6.0  ;;  %v2294_v49 = vadd.f32 %v2293_v34, %v2017_v40  ;;  %1770 = vmatmul.f32.gmra.mxu3 %v5275_v27  ;;  %2360 = vmatmul.f32.gmra.mxu1 %v5274_v33 }
 0x29f   :  { %2716 = vst.msk [vmem:[%s4760_s4 + $0xf8] sm:$0xff] %vm2684_vm2, %v2651_v37  ;;  %v2456_v35 = vmul.f32 %v4405_v55, %v2294_v49  ;;  %1384 = vmatmul.f32.gmra.mxu2 %v5277_v18  ;;  %v5290_v49 = vld [vmem:[#allocation53_spill] sm:$0xff] }
 0x2a0   :  { %v1675_v10 = vpop.f32.mrf.mxu3  ;;  %v2024_v62 = vpop.f32.mrf.mxu0 }
 0x2a1   :  { %v2524_v38 = vadd.f32 %v4412_v61, %v2456_v35  ;;  %v1676_v19 = vadd.f32 %v1675_v10, %v1301_v21  ;;  %v5292_v35 = vld [vmem:[#allocation79_spill] sm:$0xff] }
 0x2a2   :  { %v1305_v43 = vpop.f32.mrf.mxu2  ;;  %v2301_v13 = vpop.f32.mrf.mxu1 }
 0x2a3   :  { %v2588_v2 = vmax.f32 %v2524_v38, 0.0  ;;  %v2021_v63 = vadd.f32 %v2020_v9, %v1676_v19  ;;  %2087 = vmatmul.f32.gmra.mxu0 %v5278_v42  ;;  %v1306_v28 = vadd.f32 %v1305_v43, %v5280_v16  ;;  %v5289_v9 = vld [vmem:[#allocation55_spill] sm:$0xff] }
 0x2a4   :  { %v5291_v21 = vand.u32 4294901760, %v5289_v9 }
 0x2a5   :  { %v2652_v44 = vmin.f32 %v2588_v2, 6.0  ;;  %v2298_v41 = vadd.f32 %v2297_v25, %v2021_v63  ;;  %1776 = vmatmul.f32.gmra.mxu3 %v5279_v46  ;;  %2364 = vmatmul.f32.gmra.mxu1 %v5278_v42 }
 0x2a7   :  { %2717 = vst.msk [vmem:[%s4760_s4 + $0x100] sm:$0xff] %vm2684_vm2, %v2652_v44  ;;  %v2457_v7 = vmul.f32 %v4405_v55, %v2298_v41  ;;  %1389 = vmatmul.f32.gmra.mxu2 %v5281_v47  ;;  %v5294_v41 = vld [vmem:[#allocation60_spill] sm:$0xff] }
 0x2a8   :  { %v1681_v0 = vpop.f32.mrf.mxu3  ;;  %v2028_v24 = vpop.f32.mrf.mxu0 }
 0x2a9   :  { %v2525_v56 = vadd.f32 %v4412_v61, %v2457_v7  ;;  %v1682_v58 = vadd.f32 %v1681_v0, %v1306_v28  ;;  %v5296_v7 = vld [vmem:[#allocation86_spill] sm:$0xff] }
 0x2aa   :  { %v1310_v39 = vpop.f32.mrf.mxu2  ;;  %v2305_v48 = vpop.f32.mrf.mxu1 }
 0x2ab   :  { %v2589_v23 = vmax.f32 %v2525_v56, 0.0  ;;  %v2025_v15 = vadd.f32 %v2024_v62, %v1682_v58  ;;  %2091 = vmatmul.f32.gmra.mxu0 %v5282_v50  ;;  %v1311_v54 = vadd.f32 %v1310_v39, %v5284_v29  ;;  %v5293_v62 = vld [vmem:[#allocation62_spill] sm:$0xff] }
 0x2ac   :  { %v5295_v28 = vand.u32 4294901760, %v5293_v62 }
 0x2ad   :  { %v2653_v51 = vmin.f32 %v2589_v23, 6.0  ;;  %v2302_v5 = vadd.f32 %v2301_v13, %v2025_v15  ;;  %1782 = vmatmul.f32.gmra.mxu3 %v5283_v59  ;;  %2368 = vmatmul.f32.gmra.mxu1 %v5282_v50 }
 0x2af   :  { %2718 = vst.msk [vmem:[%s4760_s4 + $0x108] sm:$0xff] %vm2684_vm2, %v2653_v51  ;;  %v2458_v36 = vmul.f32 %v4405_v55, %v2302_v5  ;;  %1394 = vmatmul.f32.gmra.mxu2 %v5285_v14  ;;  %v5298_v5 = vld [vmem:[#allocation67_spill] sm:$0xff] }
 0x2b0   :  { %v1687_v60 = vpop.f32.mrf.mxu3  ;;  %v2032_v52 = vpop.f32.mrf.mxu0 }
 0x2b1   :  { %v2526_v11 = vadd.f32 %v4412_v61, %v2458_v36  ;;  %v1688_v34 = vadd.f32 %v1687_v60, %v1311_v54  ;;  %v5300_v36 = vld [vmem:[#allocation93_spill] sm:$0xff] }
 0x2b2   :  { %v1315_v20 = vpop.f32.mrf.mxu2  ;;  %v2309_v26 = vpop.f32.mrf.mxu1 }
 0x2b3   :  { %v2590_v17 = vmax.f32 %v2526_v11, 0.0  ;;  %v2029_v45 = vadd.f32 %v2028_v24, %v1688_v34  ;;  %2095 = vmatmul.f32.gmra.mxu0 %v5286_v57  ;;  %v1316_v12 = vadd.f32 %v1315_v20, %v5288_v22  ;;  %v5297_v24 = vld [vmem:[#allocation69_spill] sm:$0xff] }
 0x2b4   :  { %v5299_v54 = vand.u32 4294901760, %v5297_v24 }
 0x2b5   :  { %v2654_v8 = vmin.f32 %v2590_v17, 6.0  ;;  %v2306_v1 = vadd.f32 %v2305_v48, %v2029_v45  ;;  %1788 = vmatmul.f32.gmra.mxu3 %v5287_v32  ;;  %2372 = vmatmul.f32.gmra.mxu1 %v5286_v57 }
 0x2b7   :  { %2719 = vst.msk [vmem:[%s4760_s4 + $0x110] sm:$0xff] %vm2684_vm2, %v2654_v8  ;;  %v2459_v31 = vmul.f32 %v4405_v55, %v2306_v1  ;;  %1399 = vmatmul.f32.gmra.mxu2 %v5289_v9  ;;  %v5302_v1 = vld [vmem:[#allocation74_spill] sm:$0xff] }
 0x2b8   :  { %v1693_v3 = vpop.f32.mrf.mxu3  ;;  %v2036_v4 = vpop.f32.mrf.mxu0 }
 0x2b9   :  { %v2527_v6 = vadd.f32 %v4412_v61, %v2459_v31  ;;  %v1694_v25 = vadd.f32 %v1693_v3, %v1316_v12  ;;  %v5304_v31 = vld [vmem:[#allocation100_spill] sm:$0xff] }
 0x2ba   :  { %v1320_v53 = vpop.f32.mrf.mxu2  ;;  %v2313_v40 = vpop.f32.mrf.mxu1 }
 0x2bb   :  { %v2591_v33 = vmax.f32 %v2527_v6, 0.0  ;;  %v2033_v37 = vadd.f32 %v2032_v52, %v1694_v25  ;;  %2099 = vmatmul.f32.gmra.mxu0 %v5290_v49  ;;  %v1321_v18 = vadd.f32 %v1320_v53, %v5292_v35  ;;  %v5301_v52 = vld [vmem:[#allocation76_spill] sm:$0xff] }
 0x2bc   :  { %v5303_v12 = vand.u32 4294901760, %v5301_v52 }
 0x2bd   :  { %v2655_v27 = vmin.f32 %v2591_v33, 6.0  ;;  %v2310_v30 = vadd.f32 %v2309_v26, %v2033_v37  ;;  %1794 = vmatmul.f32.gmra.mxu3 %v5291_v21  ;;  %2376 = vmatmul.f32.gmra.mxu1 %v5290_v49 }
 0x2bf   :  { %2720 = vst.msk [vmem:[%s4760_s4 + $0x118] sm:$0xff] %vm2684_vm2, %v2655_v27  ;;  %v2460_v10 = vmul.f32 %v4405_v55, %v2310_v30  ;;  %1404 = vmatmul.f32.gmra.mxu2 %v5293_v62  ;;  %v5306_v30 = vld [vmem:[#allocation81_spill] sm:$0xff] }
 0x2c0   :  { %v1699_v38 = vpop.f32.mrf.mxu3  ;;  %v2040_v19 = vpop.f32.mrf.mxu0 }
 0x2c1   :  { %v2528_v43 = vadd.f32 %v4412_v61, %v2460_v10  ;;  %v1700_v13 = vadd.f32 %v1699_v38, %v1321_v18  ;;  %v5308_v10 = vld [vmem:[#allocation107_spill] sm:$0xff] }
 0x2c2   :  { %v1325_v2 = vpop.f32.mrf.mxu2  ;;  %v2317_v63 = vpop.f32.mrf.mxu1 }
 0x2c3   :  { %v2592_v42 = vmax.f32 %v2528_v43, 0.0  ;;  %v2037_v44 = vadd.f32 %v2036_v4, %v1700_v13  ;;  %2103 = vmatmul.f32.gmra.mxu0 %v5294_v41  ;;  %v1326_v47 = vadd.f32 %v1325_v2, %v5296_v7  ;;  %v5305_v4 = vld [vmem:[#allocation83_spill] sm:$0xff] }
 0x2c4   :  { %v5307_v18 = vand.u32 4294901760, %v5305_v4 }
 0x2c5   :  { %v2656_v46 = vmin.f32 %v2592_v42, 6.0  ;;  %v2314_v16 = vadd.f32 %v2313_v40, %v2037_v44  ;;  %1800 = vmatmul.f32.gmra.mxu3 %v5295_v28  ;;  %2380 = vmatmul.f32.gmra.mxu1 %v5294_v41 }
 0x2c7   :  { %2721 = vst.msk [vmem:[%s4760_s4 + $0x120] sm:$0xff] %vm2684_vm2, %v2656_v46  ;;  %v2461_v0 = vmul.f32 %v4405_v55, %v2314_v16  ;;  %1409 = vmatmul.f32.gmra.mxu2 %v5297_v24  ;;  %v5310_v16 = vld [vmem:[#allocation88_spill] sm:$0xff] }
 0x2c8   :  { %v1705_v56 = vpop.f32.mrf.mxu3  ;;  %v2044_v58 = vpop.f32.mrf.mxu0 }
 0x2c9   :  { %v2529_v39 = vadd.f32 %v4412_v61, %v2461_v0  ;;  %v1706_v48 = vadd.f32 %v1705_v56, %v1326_v47  ;;  %v5312_v0 = vld [vmem:[#allocation113_spill] sm:$0xff] }
 0x2ca   :  { %v1330_v23 = vpop.f32.mrf.mxu2  ;;  %v2321_v15 = vpop.f32.mrf.mxu1 }
 0x2cb   :  { %v2593_v50 = vmax.f32 %v2529_v39, 0.0  ;;  %v2041_v51 = vadd.f32 %v2040_v19, %v1706_v48  ;;  %2107 = vmatmul.f32.gmra.mxu0 %v5298_v5  ;;  %v1331_v14 = vadd.f32 %v1330_v23, %v5300_v36  ;;  %v5309_v19 = vld [vmem:[#allocation90_spill] sm:$0xff] }
 0x2cc   :  { %v5311_v47 = vand.u32 4294901760, %v5309_v19 }
 0x2cd   :  { %v2657_v59 = vmin.f32 %v2593_v50, 6.0  ;;  %v2318_v29 = vadd.f32 %v2317_v63, %v2041_v51  ;;  %1806 = vmatmul.f32.gmra.mxu3 %v5299_v54  ;;  %2384 = vmatmul.f32.gmra.mxu1 %v5298_v5 }
 0x2cf   :  { %2722 = vst.msk [vmem:[%s4760_s4 + $0x128] sm:$0xff] %vm2684_vm2, %v2657_v59  ;;  %v2462_v60 = vmul.f32 %v4405_v55, %v2318_v29  ;;  %1414 = vmatmul.f32.gmra.mxu2 %v5301_v52  ;;  %v5314_v29 = vld [vmem:[#allocation95_spill] sm:$0xff] }
 0x2d0   :  { %v1711_v11 = vpop.f32.mrf.mxu3  ;;  %v2048_v34 = vpop.f32.mrf.mxu0 }
 0x2d1   :  { %v2530_v20 = vadd.f32 %v4412_v61, %v2462_v60  ;;  %v1712_v26 = vadd.f32 %v1711_v11, %v1331_v14  ;;  %v5316_v60 = vld [vmem:[#allocation119_spill] sm:$0xff] }
 0x2d2   :  { %v1335_v17 = vpop.f32.mrf.mxu2  ;;  %v2325_v45 = vpop.f32.mrf.mxu1 }
 0x2d3   :  { %v2594_v57 = vmax.f32 %v2530_v20, 0.0  ;;  %v2045_v8 = vadd.f32 %v2044_v58, %v1712_v26  ;;  %2111 = vmatmul.f32.gmra.mxu0 %v5302_v1  ;;  %v1336_v9 = vadd.f32 %v1335_v17, %v5304_v31  ;;  %v5313_v58 = vld [vmem:[#allocation97_spill] sm:$0xff] }
 0x2d4   :  { %v5315_v14 = vand.u32 4294901760, %v5313_v58 }
 0x2d5   :  { %v2658_v32 = vmin.f32 %v2594_v57, 6.0  ;;  %v2322_v22 = vadd.f32 %v2321_v15, %v2045_v8  ;;  %1812 = vmatmul.f32.gmra.mxu3 %v5303_v12  ;;  %2388 = vmatmul.f32.gmra.mxu1 %v5302_v1 }
 0x2d7   :  { %2723 = vst.msk [vmem:[%s4760_s4 + $0x130] sm:$0xff] %vm2684_vm2, %v2658_v32  ;;  %v2463_v3 = vmul.f32 %v4405_v55, %v2322_v22  ;;  %1419 = vmatmul.f32.gmra.mxu2 %v5305_v4  ;;  %v5318_v22 = vld [vmem:[#allocation102_spill] sm:$0xff] }
 0x2d8   :  { %v1717_v6 = vpop.f32.mrf.mxu3  ;;  %v2052_v25 = vpop.f32.mrf.mxu0 }
 0x2d9   :  { %v2531_v53 = vadd.f32 %v4412_v61, %v2463_v3  ;;  %v1718_v40 = vadd.f32 %v1717_v6, %v1336_v9  ;;  %v5320_v3 = vld [vmem:[#allocation123_spill] sm:$0xff] }
 0x2da   :  { %v1340_v33 = vpop.f32.mrf.mxu2  ;;  %v2329_v37 = vpop.f32.mrf.mxu1 }
 0x2db   :  { %v2595_v49 = vmax.f32 %v2531_v53, 0.0  ;;  %v2049_v27 = vadd.f32 %v2048_v34, %v1718_v40  ;;  %2115 = vmatmul.f32.gmra.mxu0 %v5306_v30  ;;  %v1341_v62 = vadd.f32 %v1340_v33, %v5308_v10  ;;  %v5317_v34 = vld [vmem:[#allocation104_spill] sm:$0xff] }
 0x2dc   :  { %v5319_v9 = vand.u32 4294901760, %v5317_v34 }
 0x2dd   :  { %v2659_v21 = vmin.f32 %v2595_v49, 6.0  ;;  %v2326_v35 = vadd.f32 %v2325_v45, %v2049_v27  ;;  %1818 = vmatmul.f32.gmra.mxu3 %v5307_v18  ;;  %2392 = vmatmul.f32.gmra.mxu1 %v5306_v30 }
 0x2df   :  { %2724 = vst.msk [vmem:[%s4760_s4 + $0x138] sm:$0xff] %vm2684_vm2, %v2659_v21  ;;  %v2464_v38 = vmul.f32 %v4405_v55, %v2326_v35  ;;  %1424 = vmatmul.f32.gmra.mxu2 %v5309_v19  ;;  %v5322_v35 = vld [vmem:[#allocation109_spill] sm:$0xff] }
 0x2e0   :  { %v1723_v43 = vpop.f32.mrf.mxu3  ;;  %v2056_v13 = vpop.f32.mrf.mxu0 }
 0x2e1   :  { %v2532_v2 = vadd.f32 %v4412_v61, %v2464_v38  ;;  %v1724_v63 = vadd.f32 %v1723_v43, %v1341_v62  ;;  %v5324_v38 = vld [vmem:[#allocation124_spill] sm:$0xff] }
 0x2e2   :  { %v1345_v42 = vpop.f32.mrf.mxu2  ;;  %v2333_v44 = vpop.f32.mrf.mxu1 }
 0x2e3   :  { %v2596_v41 = vmax.f32 %v2532_v2, 0.0  ;;  %v2053_v46 = vadd.f32 %v2052_v25, %v1724_v63  ;;  %2119 = vmatmul.f32.gmra.mxu0 %v5310_v16  ;;  %v1346_v24 = vadd.f32 %v1345_v42, %v5312_v0  ;;  %v5321_v25 = vld [vmem:[#allocation111_spill] sm:$0xff] }
 0x2e4   :  { %v5323_v62 = vand.u32 4294901760, %v5321_v25 }
 0x2e5   :  { %v2660_v28 = vmin.f32 %v2596_v41, 6.0  ;;  %v2330_v7 = vadd.f32 %v2329_v37, %v2053_v46  ;;  %1824 = vmatmul.f32.gmra.mxu3 %v5311_v47  ;;  %2396 = vmatmul.f32.gmra.mxu1 %v5310_v16 }
 0x2e7   :  { %2725 = vst.msk [vmem:[%s4760_s4 + $0x140] sm:$0xff] %vm2684_vm2, %v2660_v28  ;;  %v2465_v56 = vmul.f32 %v4405_v55, %v2330_v7  ;;  %1429 = vmatmul.f32.gmra.mxu2 %v5313_v58  ;;  %v5326_v7 = vld [vmem:[#allocation115_spill] sm:$0xff] }
 0x2e8   :  { %v1729_v39 = vpop.f32.mrf.mxu3  ;;  %v2060_v48 = vpop.f32.mrf.mxu0 }
 0x2e9   :  { %v2533_v23 = vadd.f32 %v4412_v61, %v2465_v56  ;;  %v1730_v15 = vadd.f32 %v1729_v39, %v1346_v24  ;;  %v5328_v56 = vld [vmem:[#allocation125_spill] sm:$0xff] }
 0x2ea   :  { %v1350_v50 = vpop.f32.mrf.mxu2  ;;  %v2337_v51 = vpop.f32.mrf.mxu1 }
 0x2eb   :  { %v2597_v5 = vmax.f32 %v2533_v23, 0.0  ;;  %v2057_v59 = vadd.f32 %v2056_v13, %v1730_v15  ;;  %2123 = vmatmul.f32.gmra.mxu0 %v5314_v29  ;;  %v1351_v52 = vadd.f32 %v1350_v50, %v5316_v60  ;;  %v5325_v13 = vld [vmem:[#allocation117_spill] sm:$0xff] }
 0x2ec   :  { %v5327_v24 = vand.u32 4294901760, %v5325_v13 }
 0x2ed   :  { %v2661_v54 = vmin.f32 %v2597_v5, 6.0  ;;  %v2334_v36 = vadd.f32 %v2333_v44, %v2057_v59  ;;  %1830 = vmatmul.f32.gmra.mxu3 %v5315_v14  ;;  %2400 = vmatmul.f32.gmra.mxu1 %v5314_v29 }
 0x2ef   :  { %2726 = vst.msk [vmem:[%s4760_s4 + $0x148] sm:$0xff] %vm2684_vm2, %v2661_v54  ;;  %v2466_v11 = vmul.f32 %v4405_v55, %v2334_v36  ;;  %1434 = vmatmul.f32.gmra.mxu2 %v5317_v34  ;;  %v5330_v36 = vld [vmem:[#allocation121_spill] sm:$0xff] }
 0x2f0   :  { %v1735_v20 = vpop.f32.mrf.mxu3  ;;  %v2064_v26 = vpop.f32.mrf.mxu0 }
 0x2f1   :  { %v2534_v17 = vadd.f32 %v4412_v61, %v2466_v11  ;;  %v1736_v45 = vadd.f32 %v1735_v20, %v1351_v52  ;;  %v5332_v11 = vld [vmem:[#allocation126_spill] sm:$0xff] }
 0x2f2   :  { %v1355_v57 = vpop.f32.mrf.mxu2  ;;  %v2341_v8 = vpop.f32.mrf.mxu1 }
 0x2f3   :  { %v2598_v1 = vmax.f32 %v2534_v17, 0.0  ;;  %v2061_v32 = vadd.f32 %v2060_v48, %v1736_v45  ;;  %2127 = vmatmul.f32.gmra.mxu0 %v5318_v22  ;;  %v1356_v4 = vadd.f32 %v1355_v57, %v5320_v3  ;;  %v5329_v48 = vld [vmem:[#allocation122_spill] sm:$0xff] }
 0x2f4   :  { %v5331_v52 = vand.u32 4294901760, %v5329_v48 }
 0x2f5   :  { %v2662_v12 = vmin.f32 %v2598_v1, 6.0  ;;  %v2338_v31 = vadd.f32 %v2337_v51, %v2061_v32  ;;  %1836 = vmatmul.f32.gmra.mxu3 %v5319_v9  ;;  %2404 = vmatmul.f32.gmra.mxu1 %v5318_v22  ;;  %v5333_v9 = vld [vmem:[#allocation127_spill] sm:$0xff] }
 0x2f7   :  { %2727 = vst.msk [vmem:[%s4760_s4 + $0x150] sm:$0xff] %vm2684_vm2, %v2662_v12  ;;  %v2467_v6 = vmul.f32 %v4405_v55, %v2338_v31  ;;  %1439 = vmatmul.f32.gmra.mxu2 %v5321_v25 }
 0x2f8   :  { %v1741_v53 = vpop.f32.mrf.mxu3  ;;  %v2068_v40 = vpop.f32.mrf.mxu0 }
 0x2f9   :  { %v2535_v33 = vadd.f32 %v4412_v61, %v2467_v6  ;;  %v1742_v37 = vadd.f32 %v1741_v53, %v1356_v4 }
 0x2fa   :  { %v1360_v49 = vpop.f32.mrf.mxu2  ;;  %v2345_v27 = vpop.f32.mrf.mxu1 }
 0x2fb   :  { %v2599_v30 = vmax.f32 %v2535_v33, 0.0  ;;  %v2065_v21 = vadd.f32 %v2064_v26, %v1742_v37  ;;  %2131 = vmatmul.f32.gmra.mxu0 %v5322_v35  ;;  %v1361_v19 = vadd.f32 %v1360_v49, %v5324_v38 }
 0x2fd   :  { %v2663_v18 = vmin.f32 %v2599_v30, 6.0  ;;  %v2342_v10 = vadd.f32 %v2341_v8, %v2065_v21  ;;  %1842 = vmatmul.f32.gmra.mxu3 %v5323_v62  ;;  %2408 = vmatmul.f32.gmra.mxu1 %v5322_v35  ;;  %v5334_v35 = vld [vmem:[#allocation128_spill] sm:$0xff] }
 0x2ff   :  { %2728 = vst.msk [vmem:[%s4760_s4 + $0x158] sm:$0xff] %vm2684_vm2, %v2663_v18  ;;  %v2468_v43 = vmul.f32 %v4405_v55, %v2342_v10  ;;  %1444 = vmatmul.f32.gmra.mxu2 %v5325_v13 }
 0x300   :  { %v1747_v2 = vpop.f32.mrf.mxu3  ;;  %v2072_v63 = vpop.f32.mrf.mxu0 }
 0x301   :  { %v2536_v42 = vadd.f32 %v4412_v61, %v2468_v43  ;;  %v1748_v44 = vadd.f32 %v1747_v2, %v1361_v19 }
 0x302   :  { %v1365_v41 = vpop.f32.mrf.mxu2  ;;  %v2349_v46 = vpop.f32.mrf.mxu1 }
 0x303   :  { %v2600_v16 = vmax.f32 %v2536_v42, 0.0  ;;  %v2069_v28 = vadd.f32 %v2068_v40, %v1748_v44  ;;  %2135 = vmatmul.f32.gmra.mxu0 %v5326_v7  ;;  %v1366_v58 = vadd.f32 %v1365_v41, %v5328_v56 }
 0x305   :  { %v2664_v47 = vmin.f32 %v2600_v16, 6.0  ;;  %v2346_v0 = vadd.f32 %v2345_v27, %v2069_v28  ;;  %1848 = vmatmul.f32.gmra.mxu3 %v5327_v24  ;;  %2412 = vmatmul.f32.gmra.mxu1 %v5326_v7 }
 0x307   :  { %2729 = vst.msk [vmem:[%s4760_s4 + $0x160] sm:$0xff] %vm2684_vm2, %v2664_v47  ;;  %v2469_v39 = vmul.f32 %v4405_v55, %v2346_v0  ;;  %1449 = vmatmul.f32.gmra.mxu2 %v5329_v48 }
 0x308   :  { %v1753_v23 = vpop.f32.mrf.mxu3  ;;  %v2076_v15 = vpop.f32.mrf.mxu0 }
 0x309   :  { %v2537_v50 = vadd.f32 %v4412_v61, %v2469_v39  ;;  %v1754_v51 = vadd.f32 %v1753_v23, %v1366_v58 }
 0x30a   :  { %v1370_v5 = vpop.f32.mrf.mxu2  ;;  %v2353_v59 = vpop.f32.mrf.mxu1 }
 0x30b   :  { %v2601_v29 = vmax.f32 %v2537_v50, 0.0  ;;  %v2073_v54 = vadd.f32 %v2072_v63, %v1754_v51  ;;  %2139 = vmatmul.f32.gmra.mxu0 %v5330_v36  ;;  %v1371_v34 = vadd.f32 %v1370_v5, %v5332_v11  ;;  %v5336_v50 = vld [vmem:[#allocation130_spill] sm:$0xff] }
 0x30d   :  { %v2665_v14 = vmin.f32 %v2601_v29, 6.0  ;;  %v2350_v60 = vadd.f32 %v2349_v46, %v2073_v54  ;;  %1854 = vmatmul.f32.gmra.mxu3 %v5331_v52  ;;  %2416 = vmatmul.f32.gmra.mxu1 %v5330_v36  ;;  %v5335_v46 = vld [vmem:[#allocation129_spill] sm:$0xff] }
 0x30f   :  { %2730 = vst.msk [vmem:[%s4760_s4 + $0x168] sm:$0xff] %vm2684_vm2, %v2665_v14  ;;  %v2470_v20 = vmul.f32 %v4405_v55, %v2350_v60 }
 0x310   :  { %v1759_v26 = vpop.f32.mrf.mxu3  ;;  %v2080_v17 = vpop.f32.mrf.mxu0 }
 0x311   :  { %v2538_v45 = vadd.f32 %v4412_v61, %v2470_v20  ;;  %v1760_v57 = vadd.f32 %v1759_v26, %v1371_v34  ;;  %v5337_v26 = vld [vmem:[#allocation131_spill] sm:$0xff] }
 0x312   :  { %v1375_v8 = vpop.f32.mrf.mxu2  ;;  %v2357_v1 = vpop.f32.mrf.mxu1 }
 0x313   :  { %v2602_v32 = vmax.f32 %v2538_v45, 0.0  ;;  %v2077_v22 = vadd.f32 %v2076_v15, %v1760_v57  ;;  %v1376_v3 = vadd.f32 %v1375_v8, %v5333_v9 }
 0x315   :  { %v2666_v12 = vmin.f32 %v2602_v32, 6.0  ;;  %v2354_v31 = vadd.f32 %v2353_v59, %v2077_v22 }
 0x317   :  { %2731 = vst.msk [vmem:[%s4760_s4 + $0x170] sm:$0xff] %vm2684_vm2, %v2666_v12  ;;  %v2471_v4 = vmul.f32 %v4405_v55, %v2354_v31 }
 0x318   :  { %v1765_v6 = vpop.f32.mrf.mxu3  ;;  %v2084_v25 = vpop.f32.mrf.mxu0 }
 0x319   :  { %v2539_v53 = vadd.f32 %v4412_v61, %v2471_v4  ;;  %v1766_v40 = vadd.f32 %v1765_v6, %v1376_v3  ;;  %v5338_v6 = vld [vmem:[#allocation132_spill] sm:$0xff] }
 0x31a   :  { %v1380_v33 = vpop.f32.mrf.mxu2  ;;  %v2361_v37 = vpop.f32.mrf.mxu1 }
 0x31b   :  { %v2603_v49 = vmax.f32 %v2539_v53, 0.0  ;;  %v2081_v27 = vadd.f32 %v2080_v17, %v1766_v40  ;;  %v1381_v18 = vadd.f32 %v1380_v33, %v5334_v35 }
 0x31d   :  { %v2667_v30 = vmin.f32 %v2603_v49, 6.0  ;;  %v2358_v21 = vadd.f32 %v2357_v1, %v2081_v27 }
 0x31f   :  { %2732 = vst.msk [vmem:[%s4760_s4 + $0x178] sm:$0xff] %vm2684_vm2, %v2667_v30  ;;  %v2472_v10 = vmul.f32 %v4405_v55, %v2358_v21 }
 0x320   :  { %v1771_v62 = vpop.f32.mrf.mxu3  ;;  %v2088_v38 = vpop.f32.mrf.mxu0 }
 0x321   :  { %v2540_v19 = vadd.f32 %v4412_v61, %v2472_v10  ;;  %v1772_v43 = vadd.f32 %v1771_v62, %v1381_v18  ;;  %v5339_v62 = vld [vmem:[#allocation133_spill] sm:$0xff] }
 0x322   :  { %v1385_v13 = vpop.f32.mrf.mxu2  ;;  %v2365_v2 = vpop.f32.mrf.mxu1 }
 0x323   :  { %v2604_v63 = vmax.f32 %v2540_v19, 0.0  ;;  %v2085_v42 = vadd.f32 %v2084_v25, %v1772_v43  ;;  %v1386_v16 = vadd.f32 %v1385_v13, %v5335_v46 }
 0x325   :  { %v2668_v44 = vmin.f32 %v2604_v63, 6.0  ;;  %v2362_v41 = vadd.f32 %v2361_v37, %v2085_v42 }
 0x327   :  { %2733 = vst.msk [vmem:[%s4760_s4 + $0x180] sm:$0xff] %vm2684_vm2, %v2668_v44  ;;  %v2473_v28 = vmul.f32 %v4405_v55, %v2362_v41 }
 0x328   :  { %v1777_v7 = vpop.f32.mrf.mxu3  ;;  %v2092_v47 = vpop.f32.mrf.mxu0 }
 0x329   :  { %v2541_v0 = vadd.f32 %v4412_v61, %v2473_v28  ;;  %v1778_v24 = vadd.f32 %v1777_v7, %v1386_v16  ;;  %v5340_v7 = vld [vmem:[#allocation134_spill] sm:$0xff] }
 0x32a   :  { %v1390_v56 = vpop.f32.mrf.mxu2  ;;  %v2369_v58 = vpop.f32.mrf.mxu1 }
 0x32b   :  { %v2605_v39 = vmax.f32 %v2541_v0, 0.0  ;;  %v2089_v48 = vadd.f32 %v2088_v38, %v1778_v24  ;;  %v1391_v51 = vadd.f32 %v1390_v56, %v5336_v50 }
 0x32d   :  { %v2669_v23 = vmin.f32 %v2605_v39, 6.0  ;;  %v2366_v15 = vadd.f32 %v2365_v2, %v2089_v48 }
 0x32f   :  { %2734 = vst.msk [vmem:[%s4760_s4 + $0x188] sm:$0xff] %vm2684_vm2, %v2669_v23  ;;  %v2474_v5 = vmul.f32 %v4405_v55, %v2366_v15 }
 0x330   :  { %v1783_v59 = vpop.f32.mrf.mxu3  ;;  %v2096_v29 = vpop.f32.mrf.mxu0 }
 0x331   :  { %v2542_v54 = vadd.f32 %v4412_v61, %v2474_v5  ;;  %v1784_v36 = vadd.f32 %v1783_v59, %v1391_v51  ;;  %v5341_v59 = vld [vmem:[#allocation135_spill] sm:$0xff] }
 0x332   :  { %v1395_v14 = vpop.f32.mrf.mxu2  ;;  %v2373_v60 = vpop.f32.mrf.mxu1 }
 0x333   :  { %v2606_v52 = vmax.f32 %v2542_v54, 0.0  ;;  %v2093_v11 = vadd.f32 %v2092_v47, %v1784_v36  ;;  %v1396_v17 = vadd.f32 %v1395_v14, %v5337_v26 }
 0x335   :  { %v2670_v34 = vmin.f32 %v2606_v52, 6.0  ;;  %v2370_v20 = vadd.f32 %v2369_v58, %v2093_v11 }
 0x337   :  { %2735 = vst.msk [vmem:[%s4760_s4 + $0x190] sm:$0xff] %vm2684_vm2, %v2670_v34  ;;  %v2475_v45 = vmul.f32 %v4405_v55, %v2370_v20 }
 0x338   :  { %v1789_v57 = vpop.f32.mrf.mxu3  ;;  %v2100_v8 = vpop.f32.mrf.mxu0 }
 0x339   :  { %v2543_v1 = vadd.f32 %v4412_v61, %v2475_v45  ;;  %v1790_v32 = vadd.f32 %v1789_v57, %v1396_v17  ;;  %v5342_v57 = vld [vmem:[#allocation136_spill] sm:$0xff] }
 0x33a   :  { %v1400_v22 = vpop.f32.mrf.mxu2  ;;  %v2377_v12 = vpop.f32.mrf.mxu1 }
 0x33b   :  { %v2607_v31 = vmax.f32 %v2543_v1, 0.0  ;;  %v2097_v9 = vadd.f32 %v2096_v29, %v1790_v32  ;;  %v1401_v25 = vadd.f32 %v1400_v22, %v5338_v6 }
 0x33d   :  { %v2671_v3 = vmin.f32 %v2607_v31, 6.0  ;;  %v2374_v4 = vadd.f32 %v2373_v60, %v2097_v9 }
 0x33f   :  { %2736 = vst.msk [vmem:[%s4760_s4 + $0x198] sm:$0xff] %vm2684_vm2, %v2671_v3  ;;  %v2476_v53 = vmul.f32 %v4405_v55, %v2374_v4 }
 0x340   :  { %v1795_v40 = vpop.f32.mrf.mxu3  ;;  %v2104_v33 = vpop.f32.mrf.mxu0 }
 0x341   :  { %v2544_v37 = vadd.f32 %v4412_v61, %v2476_v53  ;;  %v1796_v49 = vadd.f32 %v1795_v40, %v1401_v25  ;;  %v5343_v40 = vld [vmem:[#allocation137_spill] sm:$0xff] }
 0x342   :  { %v1405_v27 = vpop.f32.mrf.mxu2  ;;  %v2381_v30 = vpop.f32.mrf.mxu1 }
 0x343   :  { %v2608_v21 = vmax.f32 %v2544_v37, 0.0  ;;  %v2101_v35 = vadd.f32 %v2100_v8, %v1796_v49  ;;  %v1406_v38 = vadd.f32 %v1405_v27, %v5339_v62 }
 0x345   :  { %v2672_v18 = vmin.f32 %v2608_v21, 6.0  ;;  %v2378_v10 = vadd.f32 %v2377_v12, %v2101_v35 }
 0x347   :  { %2737 = vst.msk [vmem:[%s4760_s4 + $0x1a0] sm:$0xff] %vm2684_vm2, %v2672_v18  ;;  %v2477_v19 = vmul.f32 %v4405_v55, %v2378_v10 }
 0x348   :  { %v1801_v43 = vpop.f32.mrf.mxu3  ;;  %v2108_v13 = vpop.f32.mrf.mxu0 }
 0x349   :  { %v2545_v2 = vadd.f32 %v4412_v61, %v2477_v19  ;;  %v1802_v63 = vadd.f32 %v1801_v43, %v1406_v38  ;;  %v5344_v43 = vld [vmem:[#allocation138_spill] sm:$0xff] }
 0x34a   :  { %v1410_v42 = vpop.f32.mrf.mxu2  ;;  %v2385_v44 = vpop.f32.mrf.mxu1 }
 0x34b   :  { %v2609_v41 = vmax.f32 %v2545_v2, 0.0  ;;  %v2105_v46 = vadd.f32 %v2104_v33, %v1802_v63  ;;  %v1411_v47 = vadd.f32 %v1410_v42, %v5340_v7 }
 0x34d   :  { %v2673_v16 = vmin.f32 %v2609_v41, 6.0  ;;  %v2382_v28 = vadd.f32 %v2381_v30, %v2105_v46 }
 0x34f   :  { %2738 = vst.msk [vmem:[%s4760_s4 + $0x1a8] sm:$0xff] %vm2684_vm2, %v2673_v16  ;;  %v2478_v0 = vmul.f32 %v4405_v55, %v2382_v28 }
 0x350   :  { %v1807_v24 = vpop.f32.mrf.mxu3  ;;  %v2112_v56 = vpop.f32.mrf.mxu0 }
 0x351   :  { %v2546_v58 = vadd.f32 %v4412_v61, %v2478_v0  ;;  %v1808_v39 = vadd.f32 %v1807_v24, %v1411_v47  ;;  %v5345_v24 = vld [vmem:[#allocation139_spill] sm:$0xff] }
 0x352   :  { %v1415_v48 = vpop.f32.mrf.mxu2  ;;  %v2389_v23 = vpop.f32.mrf.mxu1 }
 0x353   :  { %v2610_v15 = vmax.f32 %v2546_v58, 0.0  ;;  %v2109_v50 = vadd.f32 %v2108_v13, %v1808_v39  ;;  %v1416_v29 = vadd.f32 %v1415_v48, %v5341_v59 }
 0x355   :  { %v2674_v51 = vmin.f32 %v2610_v15, 6.0  ;;  %v2386_v5 = vadd.f32 %v2385_v44, %v2109_v50 }
 0x357   :  { %2739 = vst.msk [vmem:[%s4760_s4 + $0x1b0] sm:$0xff] %vm2684_vm2, %v2674_v51  ;;  %v2479_v54 = vmul.f32 %v4405_v55, %v2386_v5 }
 0x358   :  { %v1813_v36 = vpop.f32.mrf.mxu3  ;;  %v2116_v14 = vpop.f32.mrf.mxu0 }
 0x359   :  { %v2547_v60 = vadd.f32 %v4412_v61, %v2479_v54  ;;  %v1814_v52 = vadd.f32 %v1813_v36, %v1416_v29  ;;  %v5346_v36 = vld [vmem:[#allocation140_spill] sm:$0xff] }
 0x35a   :  { %v1420_v11 = vpop.f32.mrf.mxu2  ;;  %v2393_v34 = vpop.f32.mrf.mxu1 }
 0x35b   :  { %v2611_v20 = vmax.f32 %v2547_v60, 0.0  ;;  %v2113_v26 = vadd.f32 %v2112_v56, %v1814_v52  ;;  %v1421_v8 = vadd.f32 %v1420_v11, %v5342_v57 }
 0x35d   :  { %v2675_v17 = vmin.f32 %v2611_v20, 6.0  ;;  %v2390_v45 = vadd.f32 %v2389_v23, %v2113_v26 }
 0x35f   :  { %2740 = vst.msk [vmem:[%s4760_s4 + $0x1b8] sm:$0xff] %vm2684_vm2, %v2675_v17  ;;  %v2480_v1 = vmul.f32 %v4405_v55, %v2390_v45 }
 0x360   :  { %v1819_v32 = vpop.f32.mrf.mxu3  ;;  %v2120_v22 = vpop.f32.mrf.mxu0 }
 0x361   :  { %v2548_v12 = vadd.f32 %v4412_v61, %v2480_v1  ;;  %v1820_v31 = vadd.f32 %v1819_v32, %v1421_v8  ;;  %v5347_v1 = vld [vmem:[#allocation142_spill] sm:$0xff] }
 0x362   :  { %v1425_v9 = vpop.f32.mrf.mxu2  ;;  %v2397_v3 = vpop.f32.mrf.mxu1 }
 0x363   :  { %v2612_v4 = vmax.f32 %v2548_v12, 0.0  ;;  %v2117_v6 = vadd.f32 %v2116_v14, %v1820_v31  ;;  %v1426_v33 = vadd.f32 %v1425_v9, %v5343_v40 }
 0x365   :  { %v2676_v25 = vmin.f32 %v2612_v4, 6.0  ;;  %v2394_v53 = vadd.f32 %v2393_v34, %v2117_v6 }
 0x367   :  { %2741 = vst.msk [vmem:[%s4760_s4 + $0x1c0] sm:$0xff] %vm2684_vm2, %v2676_v25  ;;  %v2481_v37 = vmul.f32 %v4405_v55, %v2394_v53 }
 0x368   :  { %v1825_v49 = vpop.f32.mrf.mxu3  ;;  %v2124_v27 = vpop.f32.mrf.mxu0 }
 0x369   :  { %v2549_v30 = vadd.f32 %v4412_v61, %v2481_v37  ;;  %v1826_v21 = vadd.f32 %v1825_v49, %v1426_v33  ;;  %v5348_v33 = vld [vmem:[#allocation144_spill] sm:$0xff] }
 0x36a   :  { %v1430_v35 = vpop.f32.mrf.mxu2  ;;  %v2401_v18 = vpop.f32.mrf.mxu1 }
 0x36b   :  { %v2613_v10 = vmax.f32 %v2549_v30, 0.0  ;;  %v2121_v62 = vadd.f32 %v2120_v22, %v1826_v21  ;;  %v1431_v13 = vadd.f32 %v1430_v35, %v5344_v43  ;;  %v2766_v30 = vld [vmem:[%s4759_s3] ss:$0 sm:$0xff] }
 0x36d   :  { %v2677_v38 = vmin.f32 %v2613_v10, 6.0  ;;  %v2398_v19 = vadd.f32 %v2397_v3, %v2121_v62 }
 0x36f   :  { %2742 = vst.msk [vmem:[%s4760_s4 + $0x1c8] sm:$0xff] %vm2684_vm2, %v2677_v38  ;;  %v2482_v2 = vmul.f32 %v4405_v55, %v2398_v19 }
 0x370   :  { %v1831_v63 = vpop.f32.mrf.mxu3  ;;  %v2128_v46 = vpop.f32.mrf.mxu0 }
 0x371   :  { %v2550_v42 = vadd.f32 %v4412_v61, %v2482_v2  ;;  %v1832_v44 = vadd.f32 %v1831_v63, %v1431_v13 }
 0x372   :  { %v1435_v41 = vpop.f32.mrf.mxu2  ;;  %v2405_v7 = vpop.f32.mrf.mxu1 }
 0x373   :  { %v2614_v16 = vmax.f32 %v2550_v42, 0.0  ;;  %v2125_v28 = vadd.f32 %v2124_v27, %v1832_v44  ;;  %v1436_v56 = vadd.f32 %v1435_v41, %v5345_v24 }
 0x375   :  { %v2678_v47 = vmin.f32 %v2614_v16, 6.0  ;;  %v2402_v0 = vadd.f32 %v2401_v18, %v2125_v28 }
 0x377   :  { %2743 = vst.msk [vmem:[%s4760_s4 + $0x1d0] sm:$0xff] %vm2684_vm2, %v2678_v47  ;;  %v2483_v58 = vmul.f32 %v4405_v55, %v2402_v0 }
 0x378   :  { %v1837_v39 = vpop.f32.mrf.mxu3  ;;  %v2132_v5 = vpop.f32.mrf.mxu0 }
 0x379   :  { %v2551_v48 = vadd.f32 %v4412_v61, %v2483_v58  ;;  %v1838_v23 = vadd.f32 %v1837_v39, %v1436_v56 }
 0x37a   :  { %v1440_v15 = vpop.f32.mrf.mxu2  ;;  %v2409_v54 = vpop.f32.mrf.mxu1 }
 0x37b   :  { %v2615_v50 = vmax.f32 %v2551_v48, 0.0  ;;  %v2129_v51 = vadd.f32 %v2128_v46, %v1838_v23  ;;  %v1441_v14 = vadd.f32 %v1440_v15, %v5346_v36 }
 0x37d   :  { %v2679_v59 = vmin.f32 %v2615_v50, 6.0  ;;  %v2406_v29 = vadd.f32 %v2405_v7, %v2129_v51 }
 0x37f   :  { %2744 = vst.msk [vmem:[%s4760_s4 + $0x1d8] sm:$0xff] %vm2684_vm2, %v2679_v59  ;;  %v2484_v60 = vmul.f32 %v4405_v55, %v2406_v29 }
 0x380   :  { %v1843_v52 = vpop.f32.mrf.mxu3  ;;  %v2136_v8 = vpop.f32.mrf.mxu0 }
 0x381   :  { %v2552_v11 = vadd.f32 %v4412_v61, %v2484_v60  ;;  %v1844_v34 = vadd.f32 %v1843_v52, %v1441_v14 }
 0x382   :  { %v1445_v20 = vpop.f32.mrf.mxu2  ;;  %v2413_v31 = vpop.f32.mrf.mxu1 }
 0x383   :  { %v2616_v26 = vmax.f32 %v2552_v11, 0.0  ;;  %v2133_v17 = vadd.f32 %v2132_v5, %v1844_v34  ;;  %v1446_v32 = vadd.f32 %v1445_v20, %v5347_v1 }
 0x385   :  { %v2680_v45 = vmin.f32 %v2616_v26, 6.0  ;;  %v2410_v57 = vadd.f32 %v2409_v54, %v2133_v17 }
 0x387   :  { %2745 = vst.msk [vmem:[%s4760_s4 + $0x1e0] sm:$0xff] %vm2684_vm2, %v2680_v45  ;;  %v2485_v22 = vmul.f32 %v4405_v55, %v2410_v57  ;;  %v2765_v55 = vld [vmem:[%s4758_s2] ss:$0 sm:$0xff] }
 0x388   :  { %v1849_v12 = vpop.f32.mrf.mxu3 }
 0x389   :  { %v2553_v9 = vadd.f32 %v4412_v61, %v2485_v22  ;;  %v1850_v3 = vadd.f32 %v1849_v12, %v1446_v32  ;;  %v2140_v61 = vpop.f32.mrf.mxu0 }
 0x38a   :  { %v1450_v25 = vpop.f32.mrf.mxu2  ;;  %v2417_v18 = vpop.f32.mrf.mxu1 }
 0x38b   :  { %v2617_v4 = vmax.f32 %v2553_v9, 0.0  ;;  %v2137_v6 = vadd.f32 %v2136_v8, %v1850_v3  ;;  %v1451_v37 = vadd.f32 %v1450_v25, %v5348_v33 }
 0x38d   :  { %v2681_v53 = vmin.f32 %v2617_v4, 6.0  ;;  %v2414_v40 = vadd.f32 %v2413_v31, %v2137_v6 }
 0x38f   :  { %2746 = vst.msk [vmem:[%s4760_s4 + $0x1e8] sm:$0xff] %vm2684_vm2, %v2681_v53  ;;  %v2486_v49 = vmul.f32 %v2765_v55, %v2414_v40 }
 0x390   :  { %v1855_v27 = vpop.f32.mrf.mxu3 }
 0x391   :  { %v2554_v21 = vadd.f32 %v2766_v30, %v2486_v49  ;;  %v1856_v35 = vadd.f32 %v1855_v27, %v1451_v37 }
 0x393   :  { %v2618_v10 = vmax.f32 %v2554_v21, 0.0  ;;  %v2141_v62 = vadd.f32 %v2140_v61, %v1856_v35 }
 0x395   :  { %v2682_v38 = vmin.f32 %v2618_v10, 6.0  ;;  %v2418_v19 = vadd.f32 %v2417_v18, %v2141_v62 }
 0x397   :  { %2747 = vst.msk [vmem:[%s4760_s4 + $0x1f0] sm:$0xff] %vm2684_vm2, %v2682_v38  ;;  %v2487_v43 = vmul.f32 %v2765_v55, %v2418_v19 }
 0x399   :  { %v2555_v13 = vadd.f32 %v2766_v30, %v2487_v43 }
 0x39b   :  { %v2619_v2 = vmax.f32 %v2555_v13, 0.0 }
 0x39d   :  { %v2683_v63 = vmin.f32 %v2619_v2, 6.0 }
 0x39f   :  { %2748 = vst.msk [vmem:[%s4760_s4 + $0x1f8] sm:$0xff] %vm2684_vm2, %v2683_v63 }

</bundles_post_ra>
